<compile_context>
chip_gen: v6e
topology: v6e:2x2x1
jax: 0.10.0
libtpu: 0.0.40
codegen_flags: <defaults>
</compile_context>

<pallas_src>
import functools

import jax
import jax.numpy as jnp
from jax import lax
from jax.experimental import pallas as pl
from jax.experimental.pallas import tpu as pltpu


def _add_relu_conv1x1_kernel(x1_ref, x2_ref, w_ref, o_ref, *, tk, kb):
    """One (row-block i, C_in-chunk k) grid step.

    x1_ref, x2_ref : (tk, HW)    k-th C_in chunk of the two activations.
    w_ref          : (rb, C_in)  full-width row slab of the 1x1-conv weight.
    o_ref          : (rb, HW)    resident f32 accumulator / output block.
    """
    k = pl.program_id(1)

    # VPU: elementwise add + ReLU on the small streamed chunk (f32, v5e-safe).
    x = jnp.maximum(x1_ref[...] + x2_ref[...], 0.0)              # (tk, HW)

    # Pick the matching *static* column slab of W (avoids dynamic lane
    # slicing), run the MXU partial matmul, accumulate into the resident
    # output block (P3: init at k == 0, accumulate afterwards).
    for kk in range(kb):
        @pl.when(k == kk)
        def _(kk=kk):
            w_slab = w_ref[:, kk * tk:(kk + 1) * tk]             # (rb, tk)
            part = lax.dot_general(
                w_slab, x,
                dimension_numbers=(((1,), (0,)), ((), ())),
                preferred_element_type=jnp.float32,
            )
            if kk == 0:
                o_ref[...] = part
            else:
                o_ref[...] = o_ref[...] + part


def _build_call(c_in, c_out, hw, dtype, *, row_blocks, kb, core_parallel):
    tk = c_in // kb
    rb = c_out // row_blocks

    if core_parallel:
        semantics = (pltpu.CORE_PARALLEL, pltpu.ARBITRARY)
    else:
        semantics = ("arbitrary", "arbitrary")

    cost = pl.CostEstimate(
        flops=2 * c_out * c_in * hw,                       # ~44.3 MFLOP
        transcendentals=0,
        bytes_accessed=4 * (2 * c_in * hw + c_out * c_in + c_out * hw),
    )

    return pl.pallas_call(
        functools.partial(_add_relu_conv1x1_kernel, tk=tk, kb=kb),
        out_shape=jax.ShapeDtypeStruct((c_out, hw), dtype),
        grid=(row_blocks, kb),
        in_specs=[
            pl.BlockSpec((tk, hw), lambda i, k: (k, 0)),     # x1 C_in chunk
            pl.BlockSpec((tk, hw), lambda i, k: (k, 0)),     # x2 C_in chunk
            pl.BlockSpec((rb, c_in), lambda i, k: (i, 0)),   # W row slab, full width
        ],
        out_specs=pl.BlockSpec((rb, hw), lambda i, k: (i, 0)),
        compiler_params=pltpu.CompilerParams(dimension_semantics=semantics),
        cost_estimate=cost,
    )


def _num_tensorcores_per_chip():
    # Heuristic: v7x exposes two TensorCores per addressable device; earlier
    # generations (v4/v5e/v5p/v6e) expose one.
    try:
        kind = jax.devices()[0].device_kind.lower()
    except Exception:
        return 1
    return 2 if "7" in kind else 1


def add_relu_conv1x1(x281, x295, conv_weight):
    """out = Conv2d(C, C, 1, bias=False)(relu(x281 + x295)), NCHW, N == 1."""
    n, c_in, h, w = x281.shape
    c_out = conv_weight.shape[0]
    hw = h * w
    if n != 1:
        raise NotImplementedError("module spec is N=1")  # TODO(synk): batch>1 would need a batch grid axis

    # Free (contiguous) reshapes — no transpose HLOs anywhere around the call.
    a = x281.reshape(c_in, hw)                 # (C_in, H*W)
    b = x295.reshape(c_in, hw)
    wmat = conv_weight.reshape(c_out, c_in)    # (C_out, C_in), untransposed

    # C_in chunking: prefer 3 chunks (tk = 112 for C=336), keep 8-row alignment.
    kb = 1
    for cand in (3, 2):
        if c_in % cand == 0 and (c_in // cand) % 8 == 0:
            kb = cand
            break

    # Row split only helps on multi-TC chips; single-TC keeps row_blocks=1 so
    # nothing is duplicated.
    n_tc = _num_tensorcores_per_chip()
    row_blocks = 1
    if n_tc > 1 and c_out % n_tc == 0 and (c_out // n_tc) % 8 == 0:
        row_blocks = n_tc

    def run(rbk, kbk, core_parallel):
        call = _build_call(c_in, c_out, hw, x281.dtype,
                           row_blocks=rbk, kb=kbk, core_parallel=core_parallel)
        return call(a, b, wmat)

    try:
        out = run(row_blocks, kb, core_parallel=row_blocks > 1)
    except Exception:
        # Conservative, previously-validated shape of the same math: one grid
        # step, one row block, full-extent blocks.
        out = run(1, 1, core_parallel=False)

    # (C_out, H*W) -> NCHW is again a free bitcast.
    return out.reshape(n, c_out, h, w)


if __name__ == "__main__":
    key = jax.random.PRNGKey(0)
    k1, k2, k3 = jax.random.split(key, 3)

    N, C, H, W = 1, 336, 14, 14  # shapes implied by the module
    x281 = jax.random.normal(k1, (N, C, H, W), dtype=jnp.float32)
    x295 = jax.random.normal(k2, (N, C, H, W), dtype=jnp.float32)
    # Conv2d(336, 336, kernel_size=1, bias=False) weight, deterministic init.
    conv_w = jax.random.normal(k3, (C, C, 1, 1), dtype=jnp.float32) * (
        1.0 / jnp.sqrt(jnp.float32(C))
    )

    out = add_relu_conv1x1(x281, x295, conv_w)
    out = jax.block_until_ready(out)

    # Pure-JAX reference of the same math at highest matmul precision.
    ref = jnp.einsum(
        "nchw,oc->nohw",
        jnp.maximum(x281 + x295, 0.0),
        conv_w[:, :, 0, 0],
        precision=lax.Precision.HIGHEST,
    )
    assert out.shape == (N, C, H, W)
    assert jnp.allclose(out, ref, atol=1e-4, rtol=1e-4)

    print("KERNEL_OK")
</pallas_src>

<mosaic_0001>
module attributes {stable_mosaic.version = 11 : i64} {
  func.func @_add_relu_conv1x1_kernel(%arg0: i32, %arg1: i32, %arg2: memref<112x196xf32, #tpu.memory_space<vmem>>, %arg3: memref<112x196xf32, #tpu.memory_space<vmem>>, %arg4: memref<336x336xf32, #tpu.memory_space<vmem>>, %arg5: memref<336x196xf32, #tpu.memory_space<vmem>>) attributes {dimension_semantics = [#tpu.dimension_semantics<arbitrary>, #tpu.dimension_semantics<arbitrary>], iteration_bounds = array<i64: 1, 3>, scalar_prefetch = 0 : i64, scratch_operands = 0 : i64, tpu.core_type = #tpu.core_type<tc>, window_params = [{transform_indices = @transform_0, window_bounds = array<i64: 112, 196>}, {transform_indices = @transform_1, window_bounds = array<i64: 112, 196>}, {transform_indices = @transform_2, window_bounds = array<i64: 336, 336>}, {transform_indices = @transform_3, window_bounds = array<i64: 336, 196>}]} {
    %c0 = arith.constant 0 : index
    %c0_0 = arith.constant 0 : index
    %0 = vector.load %arg2[%c0, %c0_0] : memref<112x196xf32, #tpu.memory_space<vmem>>, vector<112x196xf32>
    %c0_1 = arith.constant 0 : index
    %c0_2 = arith.constant 0 : index
    %1 = vector.load %arg3[%c0_1, %c0_2] : memref<112x196xf32, #tpu.memory_space<vmem>>, vector<112x196xf32>
    %2 = arith.addf %0, %1 : vector<112x196xf32>
    %cst = arith.constant 0.000000e+00 : f32
    %3 = vector.broadcast %cst : f32 to vector<112x196xf32>
    %4 = arith.maximumf %2, %3 : vector<112x196xf32>
    %c0_i32 = arith.constant 0 : i32
    %5 = arith.cmpi eq, %arg1, %c0_i32 : i32
    %6 = arith.extui %5 : i1 to i32
    %c0_i32_3 = arith.constant 0 : i32
    %7 = arith.cmpi ne, %6, %c0_i32_3 : i32
    scf.if %7 {
      %c0_6 = arith.constant 0 : index
      %c0_7 = arith.constant 0 : index
      %14 = vector.load %arg4[%c0_6, %c0_7] : memref<336x336xf32, #tpu.memory_space<vmem>>, vector<336x112xf32>
      %cst_8 = arith.constant dense<0.000000e+00> : vector<336x196xf32>
      %15 = tpu.matmul %14, %4, %cst_8 {dimension_numbers = #tpu.dot_dimension_numbers<[1], [0], [0], [1], [0, 0, 1, 1], [], []>} : vector<336x112xf32>, vector<112x196xf32>, vector<336x196xf32> -> vector<336x196xf32>
      %c0_9 = arith.constant 0 : index
      %c0_10 = arith.constant 0 : index
      %16 = vector.load %arg5[%c0_9, %c0_10] : memref<336x196xf32, #tpu.memory_space<vmem>>, vector<336x196xf32>
      tpu.vector_store %arg5[%c0_9, %c0_10], %15 {strides = array<i32>} : memref<336x196xf32, #tpu.memory_space<vmem>>, vector<336x196xf32>,
    } else {
    }
    %c1_i32 = arith.constant 1 : i32
    %8 = arith.cmpi eq, %arg1, %c1_i32 : i32
    %9 = arith.extui %8 : i1 to i32
    %c0_i32_4 = arith.constant 0 : i32
    %10 = arith.cmpi ne, %9, %c0_i32_4 : i32
    scf.if %10 {
      %c0_6 = arith.constant 0 : index
      %c112 = arith.constant 112 : index
      %14 = vector.load %arg4[%c0_6, %c112] : memref<336x336xf32, #tpu.memory_space<vmem>>, vector<336x112xf32>
      %cst_7 = arith.constant dense<0.000000e+00> : vector<336x196xf32>
      %15 = tpu.matmul %14, %4, %cst_7 {dimension_numbers = #tpu.dot_dimension_numbers<[1], [0], [0], [1], [0, 0, 1, 1], [], []>} : vector<336x112xf32>, vector<112x196xf32>, vector<336x196xf32> -> vector<336x196xf32>
      %c0_8 = arith.constant 0 : index
      %c0_9 = arith.constant 0 : index
      %16 = vector.load %arg5[%c0_8, %c0_9] : memref<336x196xf32, #tpu.memory_space<vmem>>, vector<336x196xf32>
      %17 = arith.addf %16, %15 : vector<336x196xf32>
      %c0_10 = arith.constant 0 : index
      %c0_11 = arith.constant 0 : index
      %18 = vector.load %arg5[%c0_10, %c0_11] : memref<336x196xf32, #tpu.memory_space<vmem>>, vector<336x196xf32>
      tpu.vector_store %arg5[%c0_10, %c0_11], %17 {strides = array<i32>} : memref<336x196xf32, #tpu.memory_space<vmem>>, vector<336x196xf32>,
    } else {
    }
    %c2_i32 = arith.constant 2 : i32
    %11 = arith.cmpi eq, %arg1, %c2_i32 : i32
    %12 = arith.extui %11 : i1 to i32
    %c0_i32_5 = arith.constant 0 : i32
    %13 = arith.cmpi ne, %12, %c0_i32_5 : i32
    scf.if %13 {
      %c0_6 = arith.constant 0 : index
      %c224 = arith.constant 224 : index
      %14 = vector.load %arg4[%c0_6, %c224] : memref<336x336xf32, #tpu.memory_space<vmem>>, vector<336x112xf32>
      %cst_7 = arith.constant dense<0.000000e+00> : vector<336x196xf32>
      %15 = tpu.matmul %14, %4, %cst_7 {dimension_numbers = #tpu.dot_dimension_numbers<[1], [0], [0], [1], [0, 0, 1, 1], [], []>} : vector<336x112xf32>, vector<112x196xf32>, vector<336x196xf32> -> vector<336x196xf32>
      %c0_8 = arith.constant 0 : index
      %c0_9 = arith.constant 0 : index
      %16 = vector.load %arg5[%c0_8, %c0_9] : memref<336x196xf32, #tpu.memory_space<vmem>>, vector<336x196xf32>
      %17 = arith.addf %16, %15 : vector<336x196xf32>
      %c0_10 = arith.constant 0 : index
      %c0_11 = arith.constant 0 : index
      %18 = vector.load %arg5[%c0_10, %c0_11] : memref<336x196xf32, #tpu.memory_space<vmem>>, vector<336x196xf32>
      tpu.vector_store %arg5[%c0_10, %c0_11], %17 {strides = array<i32>} : memref<336x196xf32, #tpu.memory_space<vmem>>, vector<336x196xf32>,
    } else {
    }
    return
  }
  func.func @transform_0(%arg0: i32, %arg1: i32) -> (i32, i32) {
    %c0_i32 = arith.constant 0 : i32
    %c0_i32_0 = arith.constant 0 : i32
    return %arg1, %c0_i32 : i32, i32
  }
  func.func @transform_1(%arg0: i32, %arg1: i32) -> (i32, i32) {
    %c0_i32 = arith.constant 0 : i32
    %c0_i32_0 = arith.constant 0 : i32
    return %arg1, %c0_i32 : i32, i32
  }
  func.func @transform_2(%arg0: i32, %arg1: i32) -> (i32, i32) {
    %c0_i32 = arith.constant 0 : i32
    %c0_i32_0 = arith.constant 0 : i32
    return %arg0, %c0_i32 : i32, i32
  }
  func.func @transform_3(%arg0: i32, %arg1: i32) -> (i32, i32) {
    %c0_i32 = arith.constant 0 : i32
    %c0_i32_0 = arith.constant 0 : i32
    return %arg0, %c0_i32 : i32, i32
  }
}

module attributes {stable_mosaic.version = 11 : i64} {
  func.func @_add_relu_conv1x1_kernel(%arg0: i32, %arg1: i32, %arg2: memref<336x196xf32, #tpu.memory_space<vmem>>, %arg3: memref<336x196xf32, #tpu.memory_space<vmem>>, %arg4: memref<336x336xf32, #tpu.memory_space<vmem>>, %arg5: memref<336x196xf32, #tpu.memory_space<vmem>>) attributes {dimension_semantics = [#tpu.dimension_semantics<arbitrary>, #tpu.dimension_semantics<arbitrary>], iteration_bounds = array<i64: 1, 1>, scalar_prefetch = 0 : i64, scratch_operands = 0 : i64, tpu.core_type = #tpu.core_type<tc>, window_params = [{transform_indices = @transform_0, window_bounds = array<i64: 336, 196>}, {transform_indices = @transform_1, window_bounds = array<i64: 336, 196>}, {transform_indices = @transform_2, window_bounds = array<i64: 336, 336>}, {transform_indices = @transform_3, window_bounds = array<i64: 336, 196>}]} {
    %c0 = arith.constant 0 : index
    %c0_0 = arith.constant 0 : index
    %0 = vector.load %arg2[%c0, %c0_0] : memref<336x196xf32, #tpu.memory_space<vmem>>, vector<336x196xf32>
    %c0_1 = arith.constant 0 : index
    %c0_2 = arith.constant 0 : index
    %1 = vector.load %arg3[%c0_1, %c0_2] : memref<336x196xf32, #tpu.memory_space<vmem>>, vector<336x196xf32>
    %2 = arith.addf %0, %1 : vector<336x196xf32>
    %cst = arith.constant 0.000000e+00 : f32
    %3 = vector.broadcast %cst : f32 to vector<336x196xf32>
    %4 = arith.maximumf %2, %3 : vector<336x196xf32>
    %c0_i32 = arith.constant 0 : i32
    %5 = arith.cmpi eq, %arg1, %c0_i32 : i32
    %6 = arith.extui %5 : i1 to i32
    %c0_i32_3 = arith.constant 0 : i32
    %7 = arith.cmpi ne, %6, %c0_i32_3 : i32
    scf.if %7 {
      %c0_4 = arith.constant 0 : index
      %c0_5 = arith.constant 0 : index
      %8 = vector.load %arg4[%c0_4, %c0_5] : memref<336x336xf32, #tpu.memory_space<vmem>>, vector<336x336xf32>
      %cst_6 = arith.constant dense<0.000000e+00> : vector<336x196xf32>
      %9 = tpu.matmul %8, %4, %cst_6 {dimension_numbers = #tpu.dot_dimension_numbers<[1], [0], [0], [1], [0, 0, 1, 1], [], []>} : vector<336x336xf32>, vector<336x196xf32>, vector<336x196xf32> -> vector<336x196xf32>
      %c0_7 = arith.constant 0 : index
      %c0_8 = arith.constant 0 : index
      %10 = vector.load %arg5[%c0_7, %c0_8] : memref<336x196xf32, #tpu.memory_space<vmem>>, vector<336x196xf32>
      tpu.vector_store %arg5[%c0_7, %c0_8], %9 {strides = array<i32>} : memref<336x196xf32, #tpu.memory_space<vmem>>, vector<336x196xf32>,
    } else {
    }
    return
  }
  func.func @transform_0(%arg0: i32, %arg1: i32) -> (i32, i32) {
    %c0_i32 = arith.constant 0 : i32
    %c0_i32_0 = arith.constant 0 : i32
    return %arg1, %c0_i32 : i32, i32
  }
  func.func @transform_1(%arg0: i32, %arg1: i32) -> (i32, i32) {
    %c0_i32 = arith.constant 0 : i32
    %c0_i32_0 = arith.constant 0 : i32
    return %arg1, %c0_i32 : i32, i32
  }
  func.func @transform_2(%arg0: i32, %arg1: i32) -> (i32, i32) {
    %c0_i32 = arith.constant 0 : i32
    %c0_i32_0 = arith.constant 0 : i32
    return %arg0, %c0_i32 : i32, i32
  }
  func.func @transform_3(%arg0: i32, %arg1: i32) -> (i32, i32) {
    %c0_i32 = arith.constant 0 : i32
    %c0_i32_0 = arith.constant 0 : i32
    return %arg0, %c0_i32 : i32, i32
  }
}

</mosaic_0001>

<bundles_post_ra>
// kernel: tpu_custom_call.1
= control target key start
LH: loop header
LB: loop body
LE: loop exit
PB: predicated region body
PF: predicated region fallthrough
CT: control target
= control target key end

     0   :  { %s3401_s12 = smov 0   ;;  %s3403_s13 = smov 0   ;;  %s6244_s0 = inlined_call_operand.vmem [shape: f32[336,196], index: 0, kind: input, shape index: {}]   ;;  %s6245_s1 = inlined_call_operand.vmem [shape: f32[336,196], index: 1, kind: input, shape index: {}]   ;;  %s6246_s2 = inlined_call_operand.vmem [shape: f32[336,336], index: 2, kind: input, shape index: {}]   ;;  %s6247_s3 = inlined_call_operand.vmem [shape: f32[336,196], index: 3, kind: output, shape index: {}]  }
   0x1   :  { %s3405_s14 = smov 0  }
   0x2 LB: > { %s22_s15 = sadd.s32 1, %s3370_s13  ;;  %p3099_p0 = scmp.ge.s32.totalorder %s3374_s14, 1  ;;  %s3374_s14 = sphi %s3405_s14, %s13_s14   ;;  %s3370_s13 = sphi %s3403_s13, %s6249_s13   ;;  %s3366_s12 = sphi %s3401_s12, %s6248_s12  }
   0x3   : > { %p23_p1 = scmp.ge.s32.totalorder %s22_s15, 3  ;;  %p175_p2 = scmp.lt.s32.totalorder %s3374_s14, 4 }
   0x5   : > { %s6251_s15 = smov (%p23_p1, %s22_s15), 0  ;;  %p176_p3 = pnand %p3099_p0, %p175_p2 }
   0x6   : > { %s213_s16 = smul.u32 (!%p176_p3), 14, %s3366_s12  ;;  %p3104_p5 = scmp.ne.s32.totalorder (!%p176_p3), %s3366_s12, 0 }
   0x7   : > { %179 = sbr.rel (%p176_p3) target bundleno = 1319 (0x527), region = 32 }
   0x8   : > { %p214_p4 = scmp.lt.s32.totalorder (!%p176_p3), %s213_s16, 41 }
   0xc   : > { %s6253_s16 = smov (!%p214_p4, %s213_s16), 41 }
   0xd   : > { %s3237_s17 = sshll.u32 %s6253_s16, 4 }
   0xe   : > { %s3425_s20 = scalar_lea.vmem %s6244_s0, %s3237_s17  ;;  %s3432_s23 = scalar_lea.vmem %s6245_s1, %s3237_s17 }
   0xf   : > { %v241_v0 = vld [vmem:[%s3425_s20] sm:$0xff]  ;;  %v242_v1 = vld [vmem:[%s3425_s20 + $0x8] sm:$0xff]  ;;  %v243_v2 = vld [vmem:[%s3425_s20 + $0x10] sm:$0xff] }
  0x10   : > { %v244_v3 = vld [vmem:[%s3425_s20 + $0x18] sm:$0xff]  ;;  %v245_v4 = vld [vmem:[%s3425_s20 + $0x20] sm:$0xff]  ;;  %v246_v5 = vld [vmem:[%s3425_s20 + $0x28] sm:$0xff] }
  0x11   : > { %v247_v6 = vld [vmem:[%s3425_s20 + $0x30] sm:$0xff]  ;;  %v248_v7 = vld [vmem:[%s3425_s20 + $0x38] sm:$0xff]  ;;  %v249_v8 = vld [vmem:[%s3425_s20 + $0x40] sm:$0xff] }
  0x12   : > { %v250_v9 = vld [vmem:[%s3425_s20 + $0x48] sm:$0xff]  ;;  %v251_v10 = vld [vmem:[%s3425_s20 + $0x50] sm:$0xff]  ;;  %v252_v11 = vld [vmem:[%s3425_s20 + $0x58] sm:$0xff] }
  0x13   : > { %v253_v12 = vld [vmem:[%s3425_s20 + $0x60] sm:$0xff]  ;;  %v254_v13 = vld [vmem:[%s3425_s20 + $0x68] sm:$0xff]  ;;  %v255_v16 = vld [vmem:[%s3425_s20 + $0x70] sm:$0xff] }
  0x14   : > { %v269_v14 = vld [vmem:[%s3432_s23] sm:$0xff]  ;;  %v270_v15 = vld [vmem:[%s3432_s23 + $0x8] sm:$0xff]  ;;  %v256_v17 = vld [vmem:[%s3425_s20 + $0x78] sm:$0xff] }
  0x15   : > { %v257_v18 = vld [vmem:[%s3425_s20 + $0x80] sm:$0xff]  ;;  %v271_v19 = vld [vmem:[%s3432_s23 + $0x10] sm:$0xff]  ;;  %v272_v20 = vld [vmem:[%s3432_s23 + $0x18] sm:$0xff]  ;;  %v297_v22 = vadd.f32 %v269_v14, %v241_v0  ;;  %v298_v23 = vadd.f32 %v270_v15, %v242_v1 }
  0x16   : > { %v273_v21 = vld [vmem:[%s3432_s23 + $0x20] sm:$0xff]  ;;  %v258_v24 = vld [vmem:[%s3425_s20 + $0x88] sm:$0xff]  ;;  %v259_v25 = vld [vmem:[%s3425_s20 + $0x90] sm:$0xff]  ;;  %v299_v30 = vadd.f32 %v271_v19, %v243_v2  ;;  %v300_v31 = vadd.f32 %v272_v20, %v244_v3 }
  0x17   : > { %v260_v26 = vld [vmem:[%s3425_s20 + $0x98] sm:$0xff]  ;;  %v274_v27 = vld [vmem:[%s3432_s23 + $0x28] sm:$0xff]  ;;  %v275_v28 = vld [vmem:[%s3432_s23 + $0x30] sm:$0xff]  ;;  %v301_v32 = vadd.f32 %v273_v21, %v245_v4  ;;  %v3466_v42 = vmax.f32 %v297_v22, 0.0  ;;  %v3474_v52 = vmax.f32 %v298_v23, 0.0 }
  0x18   : > { %v276_v29 = vld [vmem:[%s3432_s23 + $0x38] sm:$0xff]  ;;  %v261_v33 = vld [vmem:[%s3425_s20 + $0xa0] sm:$0xff]  ;;  %v262_v34 = vld [vmem:[%s3425_s20 + $0xa8] sm:$0xff]  ;;  %v302_v39 = vadd.f32 %v274_v27, %v246_v5  ;;  %v303_v40 = vadd.f32 %v275_v28, %v247_v6  ;;  %v3481_v61 = vmax.f32 %v299_v30, 0.0  ;;  %v3486_v4 = vmax.f32 %v300_v31, 0.0 }
  0x19   : > { %v263_v35 = vld [vmem:[%s3425_s20 + $0xb0] sm:$0xff]  ;;  %v277_v36 = vld [vmem:[%s3432_s23 + $0x40] sm:$0xff]  ;;  %v278_v37 = vld [vmem:[%s3432_s23 + $0x48] sm:$0xff]  ;;  %v304_v41 = vadd.f32 %v276_v29, %v248_v7 }
  0x1a   : > { %v279_v38 = vld [vmem:[%s3432_s23 + $0x50] sm:$0xff]  ;;  %v264_v43 = vld [vmem:[%s3425_s20 + $0xb8] sm:$0xff]  ;;  %v265_v44 = vld [vmem:[%s3425_s20 + $0xc0] sm:$0xff]  ;;  %v305_v49 = vadd.f32 %v277_v36, %v249_v8  ;;  %v306_v50 = vadd.f32 %v278_v37, %v250_v9  ;;  %v3500_v27 = vmax.f32 %v303_v40, 0.0 }
  0x1b   : > { %v266_v45 = vld [vmem:[%s3425_s20 + $0xc8] sm:$0xff]  ;;  %v280_v46 = vld [vmem:[%s3432_s23 + $0x58] sm:$0xff]  ;;  %v281_v47 = vld [vmem:[%s3432_s23 + $0x60] sm:$0xff]  ;;  %v307_v51 = vadd.f32 %v279_v38, %v251_v10 }
  0x1c   : > { %v282_v48 = vld [vmem:[%s3432_s23 + $0x68] sm:$0xff]  ;;  %v267_v53 = vld [vmem:[%s3425_s20 + $0xd0] sm:$0xff]  ;;  %v268_v54 = vld [vmem:[%s3425_s20 + $0xd8] sm:$0xff]  ;;  %v308_v58 = vadd.f32 %v280_v46, %v252_v11  ;;  %v309_v59 = vadd.f32 %v281_v47, %v253_v12  ;;  %v3491_v11 = vmax.f32 %v301_v32, 0.0  ;;  %v3504_v28 = vmax.f32 %v305_v49, 0.0 }
  0x1d   : > { %v283_v55 = vld [vmem:[%s3432_s23 + $0x70] sm:$0xff]  ;;  %v284_v56 = vld [vmem:[%s3432_s23 + $0x78] sm:$0xff]  ;;  %v285_v57 = vld [vmem:[%s3432_s23 + $0x80] sm:$0xff]  ;;  %v310_v60 = vadd.f32 %v282_v48, %v254_v13  ;;  %v3506_v29 = vmax.f32 %v306_v50, 0.0  ;;  %v3508_v30 = vmax.f32 %v307_v51, 0.0 }
  0x1e   : > { %v286_v62 = vld [vmem:[%s3432_s23 + $0x88] sm:$0xff]  ;;  %v287_v63 = vld [vmem:[%s3432_s23 + $0x90] sm:$0xff]  ;;  %v288_v0 = vld [vmem:[%s3432_s23 + $0x98] sm:$0xff]  ;;  %v311_v1 = vadd.f32 %v283_v55, %v255_v16  ;;  %v312_v2 = vadd.f32 %v284_v56, %v256_v17  ;;  %v313_v3 = vadd.f32 %v285_v57, %v257_v18  ;;  %v3496_v17 = vmax.f32 %v302_v39, 0.0 }
  0x1f   : > { %v289_v5 = vld [vmem:[%s3432_s23 + $0xa0] sm:$0xff]  ;;  %v290_v6 = vld [vmem:[%s3432_s23 + $0xa8] sm:$0xff]  ;;  %v291_v7 = vld [vmem:[%s3432_s23 + $0xb0] sm:$0xff]  ;;  %v314_v8 = vadd.f32 %v286_v62, %v258_v24  ;;  %v315_v9 = vadd.f32 %v287_v63, %v259_v25  ;;  %v316_v10 = vadd.f32 %v288_v0, %v260_v26  ;;  %v3502_v26 = vmax.f32 %v304_v41, 0.0 }
  0x20   : > { %v292_v12 = vld [vmem:[%s3432_s23 + $0xb8] sm:$0xff]  ;;  %v293_v13 = vld [vmem:[%s3432_s23 + $0xc0] sm:$0xff]  ;;  %v294_v14 = vld [vmem:[%s3432_s23 + $0xc8] sm:$0xff]  ;;  %v317_v15 = vadd.f32 %v289_v5, %v261_v33  ;;  %v318_v19 = vadd.f32 %v290_v6, %v262_v34  ;;  %v319_v16 = vadd.f32 %v291_v7, %v263_v35  ;;  %v3510_v31 = vmax.f32 %v308_v58, 0.0 }
  0x21   : > { %v295_v18 = vld [vmem:[%s3432_s23 + $0xd0] sm:$0xff]  ;;  %v296_v20 = vld [vmem:[%s3432_s23 + $0xd8] sm:$0xff]  ;;  %v320_v21 = vadd.f32 %v292_v12, %v264_v43  ;;  %v321_v22 = vadd.f32 %v293_v13, %v265_v44  ;;  %v322_v23 = vadd.f32 %v294_v14, %v266_v45  ;;  %v3512_v32 = vmax.f32 %v309_v59, 0.0 }
  0x22   : > { %v323_v24 = vadd.f32 %v295_v18, %v267_v53  ;;  %v324_v25 = vadd.f32 %v296_v20, %v268_v54  ;;  %v3514_v33 = vmax.f32 %v310_v60, 0.0  ;;  %v3516_v34 = vmax.f32 %v311_v1, 0.0  ;;  %356 = sbr.rel (%p3104_p5) target bundleno = 345 (0x159), region = 36 }
  0x23   : > { %v3518_v35 = vmax.f32 %v312_v2, 0.0  ;;  %v3520_v36 = vmax.f32 %v313_v3, 0.0  ;;  %v3522_v37 = vmax.f32 %v314_v8, 0.0  ;;  %v3524_v38 = vmax.f32 %v315_v9, 0.0 }
  0x24   : > { %v3526_v39 = vmax.f32 %v316_v10, 0.0  ;;  %v3528_v40 = vmax.f32 %v317_v15, 0.0  ;;  %v3530_v41 = vmax.f32 %v318_v19, 0.0  ;;  %v3532_v43 = vmax.f32 %v319_v16, 0.0 }
  0x25   : > { %v3534_v44 = vmax.f32 %v320_v21, 0.0  ;;  %v3536_v45 = vmax.f32 %v321_v22, 0.0  ;;  %v3538_v46 = vmax.f32 %v322_v23, 0.0  ;;  %v3540_v47 = vmax.f32 %v323_v24, 0.0 }
  0x26   : > { %v3542_v48 = vmax.f32 %v324_v25, 0.0 }
  0x27   : > { %v357_v49 = vld [vmem:[%s6246_s2] sm:$0xff]  ;;  %vm399_vm0 = vcmask 916480   ;;  %v378_v50 = vld [vmem:[%s6246_s2 + $0x1f8] sm:$0xff]  ;;  %v3376_v51 = vmov 0.0   ;;  %v379_v54 = vld [vmem:[%s6246_s2 + $0x210] sm:$0xff]  ;;  %vm844_vm1 = vcmask 556032  }
  0x28   : > { %530 = vmatprep.subr.mxu0 %v3542_v48  ;;  %3239 = vmatprep.subr.mxu1 %v3542_v48  ;;  %v358_v53 = vld [vmem:[%s6246_s2 + $0x18] sm:$0xff]  ;;  %v359_v55 = vld [vmem:[%s6246_s2 + $0x30] sm:$0xff]  ;;  %v380_v56 = vld [vmem:[%s6246_s2 + $0x228] sm:$0xff] }
  0x29   : > { %531 = vmatpush1.msra.mxu0 %v3540_v47  ;;  %3253 = vmatpush1.msra.mxu1 %v3540_v47  ;;  %v360_v57 = vld [vmem:[%s6246_s2 + $0x48] sm:$0xff]  ;;  %v381_v58 = vld [vmem:[%s6246_s2 + $0x240] sm:$0xff]  ;;  %v382_v60 = vld [vmem:[%s6246_s2 + $0x258] sm:$0xff] }
  0x2a   : > { %532 = vmatprep.subr.mxu0 %v3538_v46  ;;  %3240 = vmatprep.subr.mxu1 %v3538_v46  ;;  %v361_v59 = vld [vmem:[%s6246_s2 + $0x60] sm:$0xff]  ;;  %v362_v62 = vld [vmem:[%s6246_s2 + $0x78] sm:$0xff]  ;;  %v383_v63 = vld [vmem:[%s6246_s2 + $0x270] sm:$0xff] }
  0x2b   : > { %533 = vmatpush1.msra.mxu0 %v3536_v45  ;;  %3254 = vmatpush1.msra.mxu1 %v3536_v45  ;;  %v363_v0 = vld [vmem:[%s6246_s2 + $0x90] sm:$0xff]  ;;  %v384_v1 = vld [vmem:[%s6246_s2 + $0x288] sm:$0xff]  ;;  %v385_v3 = vld [vmem:[%s6246_s2 + $0x2a0] sm:$0xff] }
  0x2c   : > { %534 = vmatprep.subr.mxu0 %v3534_v44  ;;  %3241 = vmatprep.subr.mxu1 %v3534_v44  ;;  %v364_v2 = vld [vmem:[%s6246_s2 + $0xa8] sm:$0xff]  ;;  %v365_v5 = vld [vmem:[%s6246_s2 + $0xc0] sm:$0xff]  ;;  %v386_v6 = vld [vmem:[%s6246_s2 + $0x2b8] sm:$0xff] }
  0x2d   : > { %535 = vmatpush1.msra.mxu0 %v3532_v43  ;;  %3255 = vmatpush1.msra.mxu1 %v3532_v43  ;;  %v366_v7 = vld [vmem:[%s6246_s2 + $0xd8] sm:$0xff]  ;;  %v387_v8 = vld [vmem:[%s6246_s2 + $0x2d0] sm:$0xff]  ;;  %v388_v10 = vld [vmem:[%s6246_s2 + $0x2e8] sm:$0xff] }
  0x2e   : > { %536 = vmatprep.subr.mxu0 %v3530_v41  ;;  %3242 = vmatprep.subr.mxu1 %v3530_v41  ;;  %v367_v9 = vld [vmem:[%s6246_s2 + $0xf0] sm:$0xff]  ;;  %v368_v12 = vld [vmem:[%s6246_s2 + $0x108] sm:$0xff]  ;;  %v389_v13 = vld [vmem:[%s6246_s2 + $0x300] sm:$0xff] }
  0x2f   : > { %537 = vmatpush1.msra.mxu0 %v3528_v40  ;;  %3256 = vmatpush1.msra.mxu1 %v3528_v40  ;;  %v369_v14 = vld [vmem:[%s6246_s2 + $0x120] sm:$0xff]  ;;  %v390_v15 = vld [vmem:[%s6246_s2 + $0x318] sm:$0xff]  ;;  %v391_v16 = vld [vmem:[%s6246_s2 + $0x330] sm:$0xff] }
  0x30   : > { %538 = vmatprep.subr.mxu0 %v3526_v39  ;;  %3243 = vmatprep.subr.mxu1 %v3526_v39  ;;  %v370_v19 = vld [vmem:[%s6246_s2 + $0x138] sm:$0xff]  ;;  %v371_v18 = vld [vmem:[%s6246_s2 + $0x150] sm:$0xff]  ;;  %v392_v20 = vld [vmem:[%s6246_s2 + $0x348] sm:$0xff] }
  0x31   : > { %539 = vmatpush1.msra.mxu0 %v3524_v38  ;;  %3257 = vmatpush1.msra.mxu1 %v3524_v38  ;;  %v372_v21 = vld [vmem:[%s6246_s2 + $0x168] sm:$0xff]  ;;  %v393_v22 = vld [vmem:[%s6246_s2 + $0x360] sm:$0xff]  ;;  %v394_v24 = vld [vmem:[%s6246_s2 + $0x378] sm:$0xff] }
  0x32   : > { %540 = vmatprep.subr.mxu0 %v3522_v37  ;;  %3244 = vmatprep.subr.mxu1 %v3522_v37  ;;  %v373_v23 = vld [vmem:[%s6246_s2 + $0x180] sm:$0xff]  ;;  %v374_v25 = vld [vmem:[%s6246_s2 + $0x198] sm:$0xff] }
  0x33   : > { %541 = vmatpush1.msra.mxu0 %v3520_v36  ;;  %3258 = vmatpush1.msra.mxu1 %v3520_v36 }
  0x34   : > { %542 = vmatprep.subr.mxu0 %v3518_v35  ;;  %3245 = vmatprep.subr.mxu1 %v3518_v35 }
  0x35   : > { %543 = vmatpush1.msra.mxu0 %v3516_v34  ;;  %3259 = vmatpush1.msra.mxu1 %v3516_v34 }
  0x36   : > { %544 = vmatprep.subr.mxu0 %v3514_v33  ;;  %3246 = vmatprep.subr.mxu1 %v3514_v33 }
  0x37   : > { %545 = vmatpush1.msra.mxu0 %v3512_v32  ;;  %3260 = vmatpush1.msra.mxu1 %v3512_v32 }
  0x38   : > { %546 = vmatprep.subr.mxu0 %v3510_v31  ;;  %3247 = vmatprep.subr.mxu1 %v3510_v31 }
  0x39   : > { %547 = vmatpush1.msra.mxu0 %v3508_v30  ;;  %3261 = vmatpush1.msra.mxu1 %v3508_v30 }
  0x3a   : > { %548 = vmatprep.subr.mxu0 %v3506_v29  ;;  %3248 = vmatprep.subr.mxu1 %v3506_v29 }
  0x3b   : > { %549 = vmatpush1.msra.mxu0 %v3504_v28  ;;  %3262 = vmatpush1.msra.mxu1 %v3504_v28 }
  0x3c   : > { %550 = vmatprep.subr.mxu0 %v3502_v26  ;;  %3249 = vmatprep.subr.mxu1 %v3502_v26 }
  0x3d   : > { %551 = vmatpush1.msra.mxu0 %v3500_v27  ;;  %3263 = vmatpush1.msra.mxu1 %v3500_v27 }
  0x3e   : > { %552 = vmatprep.subr.mxu0 %v3496_v17  ;;  %3250 = vmatprep.subr.mxu1 %v3496_v17 }
  0x3f   : > { %553 = vmatpush1.msra.mxu0 %v3491_v11  ;;  %3264 = vmatpush1.msra.mxu1 %v3491_v11 }
  0x40   : > { %554 = vmatprep.subr.mxu0 %v3486_v4  ;;  %3251 = vmatprep.subr.mxu1 %v3486_v4 }
  0x41   : > { %555 = vmatpush1.msra.mxu0 %v3481_v61  ;;  %3265 = vmatpush1.msra.mxu1 %v3481_v61 }
  0x42   : > { %556 = vmatprep.subr.mxu0 %v3474_v52  ;;  %3252 = vmatprep.subr.mxu1 %v3474_v52 }
  0x43   : > { %557 = vmatpush1.msra.mxu0 %v3466_v42  ;;  %3266 = vmatpush1.msra.mxu1 %v3466_v42 }
  0x44   : > { %590 = vmatprep.mubr.f32.mxu0 %v3376_v51  ;;  %716 = vmatprep.mubr.f32.mxu1 %v3376_v51 }
  0x45   : > { %3105 = vmatmul.mubr.msk.f32.vlgmr.msra.gmra.mxu0 %vm399_vm0, %v357_v49  ;;  %3126 = vmatmul.mubr.msk.f32.vlgmr.msra.gmra.mxu1 %vm399_vm0, %v378_v50  ;;  %v395_v49 = vld [vmem:[%s6246_s2 + $0x390] sm:$0xff] }
  0x46   : > { %596 = vmatprep.mubr.f32.mxu0 %v3376_v51  ;;  %722 = vmatprep.mubr.f32.mxu1 %v3376_v51  ;;  %v375_v50 = vld [vmem:[%s6246_s2 + $0x1b0] sm:$0xff] }
  0x49   : > { %3106 = vmatmul.mubr.msk.f32.gmra.mxu0 %vm399_vm0, %v358_v53  ;;  %3127 = vmatmul.mubr.msk.f32.gmra.mxu1 %vm399_vm0, %v379_v54  ;;  %v396_v53 = vld [vmem:[%s6246_s2 + $0x3a8] sm:$0xff] }
  0x4a   : > { %602 = vmatprep.mubr.f32.mxu0 %v3376_v51  ;;  %728 = vmatprep.mubr.f32.mxu1 %v3376_v51  ;;  %v376_v54 = vld [vmem:[%s6246_s2 + $0x1c8] sm:$0xff] }
  0x4d   : > { %3107 = vmatmul.mubr.msk.f32.gmra.mxu0 %vm399_vm0, %v359_v55  ;;  %3128 = vmatmul.mubr.msk.f32.gmra.mxu1 %vm399_vm0, %v380_v56  ;;  %v397_v55 = vld [vmem:[%s6246_s2 + $0x3c0] sm:$0xff] }
  0x4e   : > { %608 = vmatprep.mubr.f32.mxu0 %v3376_v51  ;;  %734 = vmatprep.mubr.f32.mxu1 %v3376_v51  ;;  %v377_v56 = vld [vmem:[%s6246_s2 + $0x1e0] sm:$0xff] }
  0x51   : > { %3108 = vmatmul.mubr.msk.f32.gmra.mxu0 %vm399_vm0, %v360_v57  ;;  %3129 = vmatmul.mubr.msk.f32.gmra.mxu1 %vm399_vm0, %v381_v58  ;;  %v398_v57 = vld [vmem:[%s6246_s2 + $0x3d8] sm:$0xff] }
  0x52   : > { %614 = vmatprep.mubr.f32.mxu0 %v3376_v51  ;;  %740 = vmatprep.mubr.f32.mxu1 %v3376_v51 }
  0x55   : > { %3109 = vmatmul.mubr.msk.f32.gmra.mxu0 %vm399_vm0, %v361_v59  ;;  %3130 = vmatmul.mubr.msk.f32.gmra.mxu1 %vm399_vm0, %v382_v60 }
  0x56   : > { %620 = vmatprep.mubr.f32.mxu0 %v3376_v51  ;;  %746 = vmatprep.mubr.f32.mxu1 %v3376_v51 }
  0x59   : > { %3110 = vmatmul.mubr.msk.f32.gmra.mxu0 %vm399_vm0, %v362_v62  ;;  %3131 = vmatmul.mubr.msk.f32.gmra.mxu1 %vm399_vm0, %v383_v63 }
  0x5a   : > { %626 = vmatprep.mubr.f32.mxu0 %v3376_v51  ;;  %752 = vmatprep.mubr.f32.mxu1 %v3376_v51 }
  0x5d   : > { %3111 = vmatmul.mubr.msk.f32.gmra.mxu0 %vm399_vm0, %v363_v0  ;;  %3132 = vmatmul.mubr.msk.f32.gmra.mxu1 %vm399_vm0, %v384_v1 }
  0x5e   : > { %632 = vmatprep.mubr.f32.mxu0 %v3376_v51  ;;  %758 = vmatprep.mubr.f32.mxu1 %v3376_v51 }
  0x61   : > { %3112 = vmatmul.mubr.msk.f32.gmra.mxu0 %vm399_vm0, %v364_v2  ;;  %3133 = vmatmul.mubr.msk.f32.gmra.mxu1 %vm399_vm0, %v385_v3 }
  0x62   : > { %638 = vmatprep.mubr.f32.mxu0 %v3376_v51  ;;  %764 = vmatprep.mubr.f32.mxu1 %v3376_v51 }
  0x65   : > { %3113 = vmatmul.mubr.msk.f32.gmra.mxu0 %vm399_vm0, %v365_v5  ;;  %3134 = vmatmul.mubr.msk.f32.gmra.mxu1 %vm399_vm0, %v386_v6 }
  0x66   : > { %644 = vmatprep.mubr.f32.mxu0 %v3376_v51  ;;  %770 = vmatprep.mubr.f32.mxu1 %v3376_v51 }
  0x69   : > { %3114 = vmatmul.mubr.msk.f32.gmra.mxu0 %vm399_vm0, %v366_v7  ;;  %3135 = vmatmul.mubr.msk.f32.gmra.mxu1 %vm399_vm0, %v387_v8 }
  0x6a   : > { %650 = vmatprep.mubr.f32.mxu0 %v3376_v51  ;;  %776 = vmatprep.mubr.f32.mxu1 %v3376_v51 }
  0x6d   : > { %3115 = vmatmul.mubr.msk.f32.gmra.mxu0 %vm399_vm0, %v367_v9  ;;  %3136 = vmatmul.mubr.msk.f32.gmra.mxu1 %vm399_vm0, %v388_v10 }
  0x6e   : > { %656 = vmatprep.mubr.f32.mxu0 %v3376_v51  ;;  %782 = vmatprep.mubr.f32.mxu1 %v3376_v51 }
  0x71   : > { %3116 = vmatmul.mubr.msk.f32.gmra.mxu0 %vm399_vm0, %v368_v12  ;;  %3137 = vmatmul.mubr.msk.f32.gmra.mxu1 %vm399_vm0, %v389_v13 }
  0x72   : > { %662 = vmatprep.mubr.f32.mxu0 %v3376_v51  ;;  %788 = vmatprep.mubr.f32.mxu1 %v3376_v51 }
  0x75   : > { %3117 = vmatmul.mubr.msk.f32.gmra.mxu0 %vm399_vm0, %v369_v14  ;;  %3138 = vmatmul.mubr.msk.f32.gmra.mxu1 %vm399_vm0, %v390_v15 }
  0x76   : > { %668 = vmatprep.mubr.f32.mxu0 %v3376_v51  ;;  %794 = vmatprep.mubr.f32.mxu1 %v3376_v51 }
  0x79   : > { %3118 = vmatmul.mubr.msk.f32.gmra.mxu0 %vm399_vm0, %v370_v19  ;;  %3139 = vmatmul.mubr.msk.f32.gmra.mxu1 %vm399_vm0, %v391_v16 }
  0x7a   : > { %674 = vmatprep.mubr.f32.mxu0 %v3376_v51  ;;  %800 = vmatprep.mubr.f32.mxu1 %v3376_v51 }
  0x7d   : > { %3119 = vmatmul.mubr.msk.f32.gmra.mxu0 %vm399_vm0, %v371_v18  ;;  %3140 = vmatmul.mubr.msk.f32.gmra.mxu1 %vm399_vm0, %v392_v20 }
  0x7e   : > { %680 = vmatprep.mubr.f32.mxu0 %v3376_v51  ;;  %806 = vmatprep.mubr.f32.mxu1 %v3376_v51 }
  0x81   : > { %3120 = vmatmul.mubr.msk.f32.gmra.mxu0 %vm399_vm0, %v372_v21  ;;  %3141 = vmatmul.mubr.msk.f32.gmra.mxu1 %vm399_vm0, %v393_v22 }
  0x82   : > { %686 = vmatprep.mubr.f32.mxu0 %v3376_v51  ;;  %812 = vmatprep.mubr.f32.mxu1 %v3376_v51 }
  0x85   : > { %3121 = vmatmul.mubr.msk.f32.gmra.mxu0 %vm399_vm0, %v373_v23  ;;  %3142 = vmatmul.mubr.msk.f32.gmra.mxu1 %vm399_vm0, %v394_v24 }
  0x86   : > { %692 = vmatprep.mubr.f32.mxu0 %v3376_v51  ;;  %818 = vmatprep.mubr.f32.mxu1 %v3376_v51 }
  0x89   : > { %3122 = vmatmul.mubr.msk.f32.gmra.mxu0 %vm399_vm0, %v374_v25  ;;  %3143 = vmatmul.mubr.msk.f32.gmra.mxu1 %vm399_vm0, %v395_v49 }
  0x8a   : > { %698 = vmatprep.mubr.f32.mxu0 %v3376_v51  ;;  %824 = vmatprep.mubr.f32.mxu1 %v3376_v51 }
  0x8d   : > { %3123 = vmatmul.mubr.msk.f32.gmra.mxu0 %vm399_vm0, %v375_v50  ;;  %3144 = vmatmul.mubr.msk.f32.gmra.mxu1 %vm399_vm0, %v396_v53 }
  0x8e   : > { %704 = vmatprep.mubr.f32.mxu0 %v3376_v51  ;;  %830 = vmatprep.mubr.f32.mxu1 %v3376_v51 }
  0x91   : > { %3124 = vmatmul.mubr.msk.f32.gmra.mxu0 %vm399_vm0, %v376_v54  ;;  %3145 = vmatmul.mubr.msk.f32.gmra.mxu1 %vm399_vm0, %v397_v55 }
  0x92   : > { %710 = vmatprep.mubr.f32.mxu0 %v3376_v51  ;;  %836 = vmatprep.mubr.f32.mxu1 %v3376_v51 }
  0x95   : > { %3125 = vmatmul.mubr.msk.f32.gmra.mxu0 %vm399_vm0, %v377_v56  ;;  %3146 = vmatmul.mubr.msk.f32.gmra.mxu1 %vm399_vm0, %v398_v57 }
 0x105   : > { %v592_v58 = vpop.f32.mrf.mxu0  ;;  %v718_v59 = vpop.f32.mrf.mxu1 }
 0x106   : > { %843 = vst [vmem:[%s6247_s3] sm:$0xff] %v592_v58  ;;  %886 = vst [vmem:[%s6247_s3 + $0x150] sm:$0xff] %v718_v59 }
 0x107   : > { %v594_v51 = vpop.f32.mrf.mxu0  ;;  %v720_v60 = vpop.f32.mrf.mxu1 }
 0x108   : > { %845 = vst.msk [vmem:[%s6247_s3 + $0x8] sm:$0xff] %vm844_vm1, %v594_v51  ;;  %887 = vst.msk [vmem:[%s6247_s3 + $0x158] sm:$0xff] %vm844_vm1, %v720_v60 }
 0x109   : > { %v598_v62 = vpop.f32.mrf.mxu0  ;;  %v724_v63 = vpop.f32.mrf.mxu1 }
 0x10a   : > { %846 = vst [vmem:[%s6247_s3 + $0x10] sm:$0xff] %v598_v62  ;;  %888 = vst [vmem:[%s6247_s3 + $0x160] sm:$0xff] %v724_v63 }
 0x10b   : > { %v600_v0 = vpop.f32.mrf.mxu0  ;;  %v726_v1 = vpop.f32.mrf.mxu1 }
 0x10c   : > { %847 = vst.msk [vmem:[%s6247_s3 + $0x18] sm:$0xff] %vm844_vm1, %v600_v0  ;;  %889 = vst.msk [vmem:[%s6247_s3 + $0x168] sm:$0xff] %vm844_vm1, %v726_v1 }
 0x10d   : > { %v604_v2 = vpop.f32.mrf.mxu0  ;;  %v730_v3 = vpop.f32.mrf.mxu1 }
 0x10e   : > { %848 = vst [vmem:[%s6247_s3 + $0x20] sm:$0xff] %v604_v2  ;;  %890 = vst [vmem:[%s6247_s3 + $0x170] sm:$0xff] %v730_v3 }
 0x10f   : > { %v606_v5 = vpop.f32.mrf.mxu0  ;;  %v732_v6 = vpop.f32.mrf.mxu1 }
 0x110   : > { %849 = vst.msk [vmem:[%s6247_s3 + $0x28] sm:$0xff] %vm844_vm1, %v606_v5  ;;  %891 = vst.msk [vmem:[%s6247_s3 + $0x178] sm:$0xff] %vm844_vm1, %v732_v6 }
 0x111   : > { %v610_v7 = vpop.f32.mrf.mxu0  ;;  %v736_v8 = vpop.f32.mrf.mxu1 }
 0x112   : > { %850 = vst [vmem:[%s6247_s3 + $0x30] sm:$0xff] %v610_v7  ;;  %892 = vst [vmem:[%s6247_s3 + $0x180] sm:$0xff] %v736_v8 }
 0x113   : > { %v612_v9 = vpop.f32.mrf.mxu0  ;;  %v738_v10 = vpop.f32.mrf.mxu1 }
 0x114   : > { %851 = vst.msk [vmem:[%s6247_s3 + $0x38] sm:$0xff] %vm844_vm1, %v612_v9  ;;  %893 = vst.msk [vmem:[%s6247_s3 + $0x188] sm:$0xff] %vm844_vm1, %v738_v10 }
 0x115   : > { %v616_v12 = vpop.f32.mrf.mxu0  ;;  %v742_v13 = vpop.f32.mrf.mxu1 }
 0x116   : > { %852 = vst [vmem:[%s6247_s3 + $0x40] sm:$0xff] %v616_v12  ;;  %894 = vst [vmem:[%s6247_s3 + $0x190] sm:$0xff] %v742_v13 }
 0x117   : > { %v618_v14 = vpop.f32.mrf.mxu0  ;;  %v744_v15 = vpop.f32.mrf.mxu1 }
 0x118   : > { %853 = vst.msk [vmem:[%s6247_s3 + $0x48] sm:$0xff] %vm844_vm1, %v618_v14  ;;  %895 = vst.msk [vmem:[%s6247_s3 + $0x198] sm:$0xff] %vm844_vm1, %v744_v15 }
 0x119   : > { %v622_v19 = vpop.f32.mrf.mxu0  ;;  %v748_v16 = vpop.f32.mrf.mxu1 }
 0x11a   : > { %854 = vst [vmem:[%s6247_s3 + $0x50] sm:$0xff] %v622_v19  ;;  %896 = vst [vmem:[%s6247_s3 + $0x1a0] sm:$0xff] %v748_v16 }
 0x11b   : > { %v624_v18 = vpop.f32.mrf.mxu0  ;;  %v750_v20 = vpop.f32.mrf.mxu1 }
 0x11c   : > { %855 = vst.msk [vmem:[%s6247_s3 + $0x58] sm:$0xff] %vm844_vm1, %v624_v18  ;;  %897 = vst.msk [vmem:[%s6247_s3 + $0x1a8] sm:$0xff] %vm844_vm1, %v750_v20 }
 0x11d   : > { %v628_v21 = vpop.f32.mrf.mxu0  ;;  %v754_v22 = vpop.f32.mrf.mxu1 }
 0x11e   : > { %856 = vst [vmem:[%s6247_s3 + $0x60] sm:$0xff] %v628_v21  ;;  %898 = vst [vmem:[%s6247_s3 + $0x1b0] sm:$0xff] %v754_v22 }
 0x11f   : > { %v630_v23 = vpop.f32.mrf.mxu0  ;;  %v756_v24 = vpop.f32.mrf.mxu1 }
 0x120   : > { %857 = vst.msk [vmem:[%s6247_s3 + $0x68] sm:$0xff] %vm844_vm1, %v630_v23  ;;  %899 = vst.msk [vmem:[%s6247_s3 + $0x1b8] sm:$0xff] %vm844_vm1, %v756_v24 }
 0x121   : > { %v634_v25 = vpop.f32.mrf.mxu0  ;;  %v760_v49 = vpop.f32.mrf.mxu1 }
 0x122   : > { %858 = vst [vmem:[%s6247_s3 + $0x70] sm:$0xff] %v634_v25  ;;  %900 = vst [vmem:[%s6247_s3 + $0x1c0] sm:$0xff] %v760_v49 }
 0x123   : > { %v636_v50 = vpop.f32.mrf.mxu0  ;;  %v762_v53 = vpop.f32.mrf.mxu1 }
 0x124   : > { %859 = vst.msk [vmem:[%s6247_s3 + $0x78] sm:$0xff] %vm844_vm1, %v636_v50  ;;  %901 = vst.msk [vmem:[%s6247_s3 + $0x1c8] sm:$0xff] %vm844_vm1, %v762_v53 }
 0x125   : > { %v640_v54 = vpop.f32.mrf.mxu0  ;;  %v766_v55 = vpop.f32.mrf.mxu1 }
 0x126   : > { %860 = vst [vmem:[%s6247_s3 + $0x80] sm:$0xff] %v640_v54  ;;  %902 = vst [vmem:[%s6247_s3 + $0x1d0] sm:$0xff] %v766_v55 }
 0x127   : > { %v642_v56 = vpop.f32.mrf.mxu0  ;;  %v768_v57 = vpop.f32.mrf.mxu1 }
 0x128   : > { %861 = vst.msk [vmem:[%s6247_s3 + $0x88] sm:$0xff] %vm844_vm1, %v642_v56  ;;  %903 = vst.msk [vmem:[%s6247_s3 + $0x1d8] sm:$0xff] %vm844_vm1, %v768_v57 }
 0x129   : > { %v646_v58 = vpop.f32.mrf.mxu0  ;;  %v772_v59 = vpop.f32.mrf.mxu1 }
 0x12a   : > { %862 = vst [vmem:[%s6247_s3 + $0x90] sm:$0xff] %v646_v58  ;;  %904 = vst [vmem:[%s6247_s3 + $0x1e0] sm:$0xff] %v772_v59 }
 0x12b   : > { %v648_v51 = vpop.f32.mrf.mxu0  ;;  %v774_v60 = vpop.f32.mrf.mxu1 }
 0x12c   : > { %863 = vst.msk [vmem:[%s6247_s3 + $0x98] sm:$0xff] %vm844_vm1, %v648_v51  ;;  %905 = vst.msk [vmem:[%s6247_s3 + $0x1e8] sm:$0xff] %vm844_vm1, %v774_v60 }
 0x12d   : > { %v652_v62 = vpop.f32.mrf.mxu0  ;;  %v778_v63 = vpop.f32.mrf.mxu1 }
 0x12e   : > { %864 = vst [vmem:[%s6247_s3 + $0xa0] sm:$0xff] %v652_v62  ;;  %906 = vst [vmem:[%s6247_s3 + $0x1f0] sm:$0xff] %v778_v63 }
 0x12f   : > { %v654_v0 = vpop.f32.mrf.mxu0  ;;  %v780_v1 = vpop.f32.mrf.mxu1 }
 0x130   : > { %865 = vst.msk [vmem:[%s6247_s3 + $0xa8] sm:$0xff] %vm844_vm1, %v654_v0  ;;  %907 = vst.msk [vmem:[%s6247_s3 + $0x1f8] sm:$0xff] %vm844_vm1, %v780_v1 }
 0x131   : > { %v658_v2 = vpop.f32.mrf.mxu0  ;;  %v784_v3 = vpop.f32.mrf.mxu1 }
 0x132   : > { %866 = vst [vmem:[%s6247_s3 + $0xb0] sm:$0xff] %v658_v2  ;;  %908 = vst [vmem:[%s6247_s3 + $0x200] sm:$0xff] %v784_v3 }
 0x133   : > { %v660_v5 = vpop.f32.mrf.mxu0  ;;  %v786_v6 = vpop.f32.mrf.mxu1 }
 0x134   : > { %867 = vst.msk [vmem:[%s6247_s3 + $0xb8] sm:$0xff] %vm844_vm1, %v660_v5  ;;  %909 = vst.msk [vmem:[%s6247_s3 + $0x208] sm:$0xff] %vm844_vm1, %v786_v6 }
 0x135   : > { %v664_v7 = vpop.f32.mrf.mxu0  ;;  %v790_v8 = vpop.f32.mrf.mxu1 }
 0x136   : > { %868 = vst [vmem:[%s6247_s3 + $0xc0] sm:$0xff] %v664_v7  ;;  %910 = vst [vmem:[%s6247_s3 + $0x210] sm:$0xff] %v790_v8 }
 0x137   : > { %v666_v9 = vpop.f32.mrf.mxu0  ;;  %v792_v10 = vpop.f32.mrf.mxu1 }
 0x138   : > { %869 = vst.msk [vmem:[%s6247_s3 + $0xc8] sm:$0xff] %vm844_vm1, %v666_v9  ;;  %911 = vst.msk [vmem:[%s6247_s3 + $0x218] sm:$0xff] %vm844_vm1, %v792_v10 }
 0x139   : > { %v670_v12 = vpop.f32.mrf.mxu0  ;;  %v796_v13 = vpop.f32.mrf.mxu1 }
 0x13a   : > { %870 = vst [vmem:[%s6247_s3 + $0xd0] sm:$0xff] %v670_v12  ;;  %912 = vst [vmem:[%s6247_s3 + $0x220] sm:$0xff] %v796_v13 }
 0x13b   : > { %v672_v14 = vpop.f32.mrf.mxu0  ;;  %v798_v15 = vpop.f32.mrf.mxu1 }
 0x13c   : > { %871 = vst.msk [vmem:[%s6247_s3 + $0xd8] sm:$0xff] %vm844_vm1, %v672_v14  ;;  %913 = vst.msk [vmem:[%s6247_s3 + $0x228] sm:$0xff] %vm844_vm1, %v798_v15 }
 0x13d   : > { %v676_v19 = vpop.f32.mrf.mxu0  ;;  %v802_v16 = vpop.f32.mrf.mxu1 }
 0x13e   : > { %872 = vst [vmem:[%s6247_s3 + $0xe0] sm:$0xff] %v676_v19  ;;  %914 = vst [vmem:[%s6247_s3 + $0x230] sm:$0xff] %v802_v16 }
 0x13f   : > { %v678_v18 = vpop.f32.mrf.mxu0  ;;  %v804_v20 = vpop.f32.mrf.mxu1 }
 0x140   : > { %873 = vst.msk [vmem:[%s6247_s3 + $0xe8] sm:$0xff] %vm844_vm1, %v678_v18  ;;  %915 = vst.msk [vmem:[%s6247_s3 + $0x238] sm:$0xff] %vm844_vm1, %v804_v20 }
 0x141   : > { %v682_v21 = vpop.f32.mrf.mxu0  ;;  %v808_v22 = vpop.f32.mrf.mxu1 }
 0x142   : > { %874 = vst [vmem:[%s6247_s3 + $0xf0] sm:$0xff] %v682_v21  ;;  %916 = vst [vmem:[%s6247_s3 + $0x240] sm:$0xff] %v808_v22 }
 0x143   : > { %v684_v23 = vpop.f32.mrf.mxu0  ;;  %v810_v24 = vpop.f32.mrf.mxu1 }
 0x144   : > { %875 = vst.msk [vmem:[%s6247_s3 + $0xf8] sm:$0xff] %vm844_vm1, %v684_v23  ;;  %917 = vst.msk [vmem:[%s6247_s3 + $0x248] sm:$0xff] %vm844_vm1, %v810_v24 }
 0x145   : > { %v688_v25 = vpop.f32.mrf.mxu0  ;;  %v814_v49 = vpop.f32.mrf.mxu1 }
 0x146   : > { %876 = vst [vmem:[%s6247_s3 + $0x100] sm:$0xff] %v688_v25  ;;  %918 = vst [vmem:[%s6247_s3 + $0x250] sm:$0xff] %v814_v49 }
 0x147   : > { %v690_v50 = vpop.f32.mrf.mxu0  ;;  %v816_v53 = vpop.f32.mrf.mxu1 }
 0x148   : > { %877 = vst.msk [vmem:[%s6247_s3 + $0x108] sm:$0xff] %vm844_vm1, %v690_v50  ;;  %919 = vst.msk [vmem:[%s6247_s3 + $0x258] sm:$0xff] %vm844_vm1, %v816_v53 }
 0x149   : > { %v694_v54 = vpop.f32.mrf.mxu0  ;;  %v820_v55 = vpop.f32.mrf.mxu1 }
 0x14a   : > { %878 = vst [vmem:[%s6247_s3 + $0x110] sm:$0xff] %v694_v54  ;;  %920 = vst [vmem:[%s6247_s3 + $0x260] sm:$0xff] %v820_v55 }
 0x14b   : > { %v696_v56 = vpop.f32.mrf.mxu0  ;;  %v822_v57 = vpop.f32.mrf.mxu1 }
 0x14c   : > { %879 = vst.msk [vmem:[%s6247_s3 + $0x118] sm:$0xff] %vm844_vm1, %v696_v56  ;;  %921 = vst.msk [vmem:[%s6247_s3 + $0x268] sm:$0xff] %vm844_vm1, %v822_v57 }
 0x14d   : > { %v700_v58 = vpop.f32.mrf.mxu0  ;;  %v826_v59 = vpop.f32.mrf.mxu1 }
 0x14e   : > { %880 = vst [vmem:[%s6247_s3 + $0x120] sm:$0xff] %v700_v58  ;;  %922 = vst [vmem:[%s6247_s3 + $0x270] sm:$0xff] %v826_v59 }
 0x14f   : > { %v702_v51 = vpop.f32.mrf.mxu0  ;;  %v828_v60 = vpop.f32.mrf.mxu1 }
 0x150   : > { %881 = vst.msk [vmem:[%s6247_s3 + $0x128] sm:$0xff] %vm844_vm1, %v702_v51  ;;  %923 = vst.msk [vmem:[%s6247_s3 + $0x278] sm:$0xff] %vm844_vm1, %v828_v60 }
 0x151   : > { %v706_v62 = vpop.f32.mrf.mxu0  ;;  %v832_v63 = vpop.f32.mrf.mxu1 }
 0x152   : > { %882 = vst [vmem:[%s6247_s3 + $0x130] sm:$0xff] %v706_v62  ;;  %924 = vst [vmem:[%s6247_s3 + $0x280] sm:$0xff] %v832_v63 }
 0x153   : > { %v708_v0 = vpop.f32.mrf.mxu0  ;;  %v834_v1 = vpop.f32.mrf.mxu1 }
 0x154   : > { %883 = vst.msk [vmem:[%s6247_s3 + $0x138] sm:$0xff] %vm844_vm1, %v708_v0  ;;  %925 = vst.msk [vmem:[%s6247_s3 + $0x288] sm:$0xff] %vm844_vm1, %v834_v1 }
 0x155   : > { %v712_v2 = vpop.f32.mrf.mxu0  ;;  %v838_v3 = vpop.f32.mrf.mxu1 }
 0x156   : > { %884 = vst [vmem:[%s6247_s3 + $0x140] sm:$0xff] %v712_v2  ;;  %926 = vst [vmem:[%s6247_s3 + $0x290] sm:$0xff] %v838_v3 }
 0x157   : > { %v714_v5 = vpop.f32.mrf.mxu0  ;;  %v840_v6 = vpop.f32.mrf.mxu1 }
 0x158   : > { %885 = vst.msk [vmem:[%s6247_s3 + $0x148] sm:$0xff] %vm844_vm1, %v714_v5  ;;  %927 = vst.msk [vmem:[%s6247_s3 + $0x298] sm:$0xff] %vm844_vm1, %v840_v6 }
 0x159 PF: > { %p3147_p6 = scmp.ne.s32.totalorder %s3366_s12, 1 }
 0x15a   : > { %s3377_s27 = smov (!%p3147_p6), 16  }
 0x15b   : > { %931 = sbr.rel (%p3147_p6) target bundleno = 832 (0x340), region = 40 }
 0x160   : > { %v974_v7 = vld [vmem:[%s6246_s2 + $0x1f8] sm:$0xff]  ;;  %v932_v8 = vld [vmem:[%s6246_s2] sm:$0xff]  ;;  %1400 = vmatprep.subr.mxu0 %v3542_v48  ;;  %3267 = vmatprep.subr.mxu1 %v3542_v48  ;;  %v933_v10 = vld [vmem:[%s6246_s2 + $0x8] sm:$0xff]  ;;  %v3378_v56 = vmov 0.0   ;;  %vm1268_vm2 = vcmask 130048   ;;  %vm1311_vm3 = vcmask 916480  }
 0x161   : > { %1184 = vrot.lane.b32.xlu1 %v974_v7, %s3377_s27  ;;  %1100 = vrot.lane.b32.xlu0 %v932_v8, %s3377_s27  ;;  %v975_v9 = vld [vmem:[%s6246_s2 + $0x200] sm:$0xff]  ;;  %v934_v13 = vld [vmem:[%s6246_s2 + $0x18] sm:$0xff]  ;;  %vm1882_vm4 = vcmask 556032  }
 0x162   : > { %1401 = vmatpush1.msra.mxu0 %v3540_v47  ;;  %3281 = vmatpush1.msra.mxu1 %v3540_v47  ;;  %v935_v12 = vld [vmem:[%s6246_s2 + $0x20] sm:$0xff]  ;;  %v977_v14 = vld [vmem:[%s6246_s2 + $0x218] sm:$0xff]  ;;  %v976_v15 = vld [vmem:[%s6246_s2 + $0x210] sm:$0xff] }
 0x163   : > { %1402 = vmatprep.subr.mxu0 %v3538_v46  ;;  %3268 = vmatprep.subr.mxu1 %v3538_v46  ;;  %v937_v19 = vld [vmem:[%s6246_s2 + $0x38] sm:$0xff]  ;;  %v936_v16 = vld [vmem:[%s6246_s2 + $0x30] sm:$0xff]  ;;  %v978_v20 = vld [vmem:[%s6246_s2 + $0x228] sm:$0xff] }
 0x164   : > { %1403 = vmatpush1.msra.mxu0 %v3536_v45  ;;  %3282 = vmatpush1.msra.mxu1 %v3536_v45  ;;  %v979_v18 = vld [vmem:[%s6246_s2 + $0x230] sm:$0xff]  ;;  %v938_v22 = vld [vmem:[%s6246_s2 + $0x48] sm:$0xff]  ;;  %v980_v24 = vld [vmem:[%s6246_s2 + $0x240] sm:$0xff] }
 0x165   : > { %1186 = vrot.lane.b32.xlu1 %v975_v9, %s3377_s27  ;;  %1102 = vrot.lane.b32.xlu0 %v933_v10, %s3377_s27  ;;  %v939_v21 = vld [vmem:[%s6246_s2 + $0x50] sm:$0xff]  ;;  %v981_v23 = vld [vmem:[%s6246_s2 + $0x248] sm:$0xff] }
 0x166   : > { %1404 = vmatprep.subr.mxu0 %v3534_v44  ;;  %3269 = vmatprep.subr.mxu1 %v3534_v44  ;;  %v941_v25 = vld [vmem:[%s6246_s2 + $0x68] sm:$0xff]  ;;  %v940_v49 = vld [vmem:[%s6246_s2 + $0x60] sm:$0xff]  ;;  %v982_v53 = vld [vmem:[%s6246_s2 + $0x258] sm:$0xff] }
 0x167   : > { %1405 = vmatpush1.msra.mxu0 %v3532_v43  ;;  %3283 = vmatpush1.msra.mxu1 %v3532_v43  ;;  %v983_v50 = vld [vmem:[%s6246_s2 + $0x260] sm:$0xff]  ;;  %v942_v55 = vld [vmem:[%s6246_s2 + $0x78] sm:$0xff]  ;;  %v984_v58 = vld [vmem:[%s6246_s2 + $0x270] sm:$0xff] }
 0x168   : > { %1406 = vmatprep.subr.mxu0 %v3530_v41  ;;  %3270 = vmatprep.subr.mxu1 %v3530_v41  ;;  %v943_v54 = vld [vmem:[%s6246_s2 + $0x80] sm:$0xff]  ;;  %v985_v57 = vld [vmem:[%s6246_s2 + $0x278] sm:$0xff]  ;;  %v944_v51 = vld [vmem:[%s6246_s2 + $0x90] sm:$0xff] }
 0x169   : > { %1106 = vrot.lane.b32.xlu1 %v935_v12, %s3377_s27  ;;  %1104 = vrot.lane.b32.xlu0 %v934_v13, %s3377_s27  ;;  %v945_v59 = vld [vmem:[%s6246_s2 + $0x98] sm:$0xff]  ;;  %v987_v60 = vld [vmem:[%s6246_s2 + $0x290] sm:$0xff] }
 0x16a   : > { %1407 = vmatpush1.msra.mxu0 %v3528_v40  ;;  %3284 = vmatpush1.msra.mxu1 %v3528_v40  ;;  %v986_v62 = vld [vmem:[%s6246_s2 + $0x288] sm:$0xff]  ;;  %v947_v63 = vld [vmem:[%s6246_s2 + $0xb0] sm:$0xff]  ;;  %v988_v2 = vld [vmem:[%s6246_s2 + $0x2a0] sm:$0xff] }
 0x16b   : > { %1408 = vmatprep.subr.mxu0 %v3526_v39  ;;  %3271 = vmatprep.subr.mxu1 %v3526_v39  ;;  %v946_v0 = vld [vmem:[%s6246_s2 + $0xa8] sm:$0xff]  ;;  %v948_v5 = vld [vmem:[%s6246_s2 + $0xc0] sm:$0xff]  ;;  %v990_v7 = vld [vmem:[%s6246_s2 + $0x2b8] sm:$0xff] }
 0x16c   : > { %1409 = vmatpush1.msra.mxu0 %v3524_v38  ;;  %3285 = vmatpush1.msra.mxu1 %v3524_v38  ;;  %v989_v1 = vld [vmem:[%s6246_s2 + $0x2a8] sm:$0xff]  ;;  %v991_v6 = vld [vmem:[%s6246_s2 + $0x2c0] sm:$0xff]  ;;  %v950_v9 = vld [vmem:[%s6246_s2 + $0xd8] sm:$0xff] }
 0x16d   : > { %1190 = vrot.lane.b32.xlu1 %v977_v14, %s3377_s27  ;;  %1188 = vrot.lane.b32.xlu0 %v976_v15, %s3377_s27  ;;  %v949_v3 = vld [vmem:[%s6246_s2 + $0xc8] sm:$0xff]  ;;  %v951_v8 = vld [vmem:[%s6246_s2 + $0xe0] sm:$0xff] }
 0x16e   : > { %1410 = vmatprep.subr.mxu0 %v3522_v37  ;;  %3272 = vmatprep.subr.mxu1 %v3522_v37  ;;  %v993_v10 = vld [vmem:[%s6246_s2 + $0x2d8] sm:$0xff]  ;;  %v992_v12 = vld [vmem:[%s6246_s2 + $0x2d0] sm:$0xff] }
 0x16f   : > { %1411 = vmatpush1.msra.mxu0 %v3520_v36  ;;  %3286 = vmatpush1.msra.mxu1 %v3520_v36  ;;  %v953_v13 = vld [vmem:[%s6246_s2 + $0xf8] sm:$0xff]  ;;  %v952_v14 = vld [vmem:[%s6246_s2 + $0xf0] sm:$0xff] }
 0x170   : > { %1412 = vmatprep.subr.mxu0 %v3518_v35  ;;  %3273 = vmatprep.subr.mxu1 %v3518_v35  ;;  %v995_v15 = vld [vmem:[%s6246_s2 + $0x2f0] sm:$0xff] }
 0x171   : > { %1110 = vrot.lane.b32.xlu1 %v937_v19, %s3377_s27  ;;  %1108 = vrot.lane.b32.xlu0 %v936_v16, %s3377_s27  ;;  %v994_v19 = vld [vmem:[%s6246_s2 + $0x2e8] sm:$0xff]  ;;  %v955_v16 = vld [vmem:[%s6246_s2 + $0x110] sm:$0xff] }
 0x172   : > { %1413 = vmatpush1.msra.mxu0 %v3516_v34  ;;  %3287 = vmatpush1.msra.mxu1 %v3516_v34 }
 0x173   : > { %1414 = vmatprep.subr.mxu0 %v3514_v33  ;;  %3274 = vmatprep.subr.mxu1 %v3514_v33 }
 0x174   : > { %1415 = vmatpush1.msra.mxu0 %v3512_v32  ;;  %3288 = vmatpush1.msra.mxu1 %v3512_v32 }
 0x175   : > { %1194 = vrot.lane.b32.xlu1 %v979_v18, %s3377_s27  ;;  %1192 = vrot.lane.b32.xlu0 %v978_v20, %s3377_s27  ;;  %v954_v18 = vld [vmem:[%s6246_s2 + $0x108] sm:$0xff] }
 0x176   : > { %1416 = vmatprep.subr.mxu0 %v3510_v31  ;;  %3275 = vmatprep.subr.mxu1 %v3510_v31  ;;  %v997_v20 = vld [vmem:[%s6246_s2 + $0x308] sm:$0xff] }
 0x177   : > { %1417 = vmatpush1.msra.mxu0 %v3508_v30  ;;  %3289 = vmatpush1.msra.mxu1 %v3508_v30 }
 0x178   : > { %1418 = vmatprep.subr.mxu0 %v3506_v29  ;;  %3276 = vmatprep.subr.mxu1 %v3506_v29 }
 0x179   : > { %1114 = vrot.lane.b32.xlu1 %v939_v21, %s3377_s27  ;;  %1112 = vrot.lane.b32.xlu0 %v938_v22, %s3377_s27  ;;  %v996_v21 = vld [vmem:[%s6246_s2 + $0x300] sm:$0xff]  ;;  %v957_v22 = vld [vmem:[%s6246_s2 + $0x128] sm:$0xff] }
 0x17a   : > { %1419 = vmatpush1.msra.mxu0 %v3504_v28  ;;  %3290 = vmatpush1.msra.mxu1 %v3504_v28 }
 0x17b   : > { %1420 = vmatprep.subr.mxu0 %v3502_v26  ;;  %3277 = vmatprep.subr.mxu1 %v3502_v26 }
 0x17c   : > { %1421 = vmatpush1.msra.mxu0 %v3500_v27  ;;  %3291 = vmatpush1.msra.mxu1 %v3500_v27 }
 0x17d   : > { %1198 = vrot.lane.b32.xlu1 %v981_v23, %s3377_s27  ;;  %1196 = vrot.lane.b32.xlu0 %v980_v24, %s3377_s27  ;;  %v956_v23 = vld [vmem:[%s6246_s2 + $0x120] sm:$0xff] }
 0x17e   : > { %1422 = vmatprep.subr.mxu0 %v3496_v17  ;;  %3278 = vmatprep.subr.mxu1 %v3496_v17  ;;  %v999_v24 = vld [vmem:[%s6246_s2 + $0x320] sm:$0xff] }
 0x17f   : > { %1423 = vmatpush1.msra.mxu0 %v3491_v11  ;;  %3292 = vmatpush1.msra.mxu1 %v3491_v11 }
 0x180   : > { %1424 = vmatprep.subr.mxu0 %v3486_v4  ;;  %3279 = vmatprep.subr.mxu1 %v3486_v4 }
 0x181   : > { %1118 = vrot.lane.b32.xlu1 %v941_v25, %s3377_s27  ;;  %1116 = vrot.lane.b32.xlu0 %v940_v49, %s3377_s27  ;;  %v998_v25 = vld [vmem:[%s6246_s2 + $0x318] sm:$0xff]  ;;  %v959_v49 = vld [vmem:[%s6246_s2 + $0x140] sm:$0xff] }
 0x182   : > { %1425 = vmatpush1.msra.mxu0 %v3481_v61  ;;  %3293 = vmatpush1.msra.mxu1 %v3481_v61 }
 0x183   : > { %1426 = vmatprep.subr.mxu0 %v3474_v52  ;;  %3280 = vmatprep.subr.mxu1 %v3474_v52 }
 0x184   : > { %1427 = vmatpush1.msra.mxu0 %v3466_v42  ;;  %3294 = vmatpush1.msra.mxu1 %v3466_v42 }
 0x185   : > { %1202 = vrot.lane.b32.xlu1 %v983_v50, %s3377_s27  ;;  %1200 = vrot.lane.b32.xlu0 %v982_v53, %s3377_s27  ;;  %v958_v50 = vld [vmem:[%s6246_s2 + $0x138] sm:$0xff] }
 0x186   : > { %1460 = vmatprep.mubr.f32.mxu0 %v3378_v56  ;;  %1586 = vmatprep.mubr.f32.mxu1 %v3378_v56  ;;  %v1001_v53 = vld [vmem:[%s6246_s2 + $0x338] sm:$0xff] }
 0x189   : > { %1122 = vrot.lane.b32.xlu1 %v943_v54, %s3377_s27  ;;  %1120 = vrot.lane.b32.xlu0 %v942_v55, %s3377_s27  ;;  %v1000_v54 = vld [vmem:[%s6246_s2 + $0x330] sm:$0xff]  ;;  %v961_v55 = vld [vmem:[%s6246_s2 + $0x158] sm:$0xff] }
 0x18d   : > { %1206 = vrot.lane.b32.xlu1 %v985_v57, %s3377_s27  ;;  %1204 = vrot.lane.b32.xlu0 %v984_v58, %s3377_s27  ;;  %v960_v57 = vld [vmem:[%s6246_s2 + $0x150] sm:$0xff] }
 0x18e   : > { %v1003_v58 = vld [vmem:[%s6246_s2 + $0x350] sm:$0xff] }
 0x191   : > { %1126 = vrot.lane.b32.xlu1 %v945_v59, %s3377_s27  ;;  %1124 = vrot.lane.b32.xlu0 %v944_v51, %s3377_s27  ;;  %v1002_v59 = vld [vmem:[%s6246_s2 + $0x348] sm:$0xff] }
 0x195   : > { %1210 = vrot.lane.b32.xlu1 %v987_v60, %s3377_s27  ;;  %1208 = vrot.lane.b32.xlu0 %v986_v62, %s3377_s27  ;;  %v963_v62 = vld [vmem:[%s6246_s2 + $0x170] sm:$0xff] }
 0x199   : > { %1130 = vrot.lane.b32.xlu1 %v947_v63, %s3377_s27  ;;  %1128 = vrot.lane.b32.xlu0 %v946_v0, %s3377_s27 }
 0x19d   : > { %1214 = vrot.lane.b32.xlu1 %v989_v1, %s3377_s27  ;;  %1212 = vrot.lane.b32.xlu0 %v988_v2, %s3377_s27  ;;  %v962_v1 = vld [vmem:[%s6246_s2 + $0x168] sm:$0xff] }
 0x1a1   : > { %1134 = vrot.lane.b32.xlu1 %v949_v3, %s3377_s27  ;;  %1132 = vrot.lane.b32.xlu0 %v948_v5, %s3377_s27  ;;  %v1005_v5 = vld [vmem:[%s6246_s2 + $0x368] sm:$0xff] }
 0x1a5   : > { %1218 = vrot.lane.b32.xlu1 %v991_v6, %s3377_s27  ;;  %1216 = vrot.lane.b32.xlu0 %v990_v7, %s3377_s27 }
 0x1a9   : > { %1138 = vrot.lane.b32.xlu1 %v951_v8, %s3377_s27  ;;  %1136 = vrot.lane.b32.xlu0 %v950_v9, %s3377_s27  ;;  %v1004_v8 = vld [vmem:[%s6246_s2 + $0x360] sm:$0xff] }
 0x1ad   : > { %1222 = vrot.lane.b32.xlu1 %v993_v10, %s3377_s27  ;;  %1220 = vrot.lane.b32.xlu0 %v992_v12, %s3377_s27  ;;  %v965_v10 = vld [vmem:[%s6246_s2 + $0x188] sm:$0xff] }
 0x1b1   : > { %1142 = vrot.lane.b32.xlu1 %v953_v13, %s3377_s27  ;;  %1140 = vrot.lane.b32.xlu0 %v952_v14, %s3377_s27  ;;  %v964_v14 = vld [vmem:[%s6246_s2 + $0x180] sm:$0xff] }
 0x1b5   : > { %1226 = vrot.lane.b32.xlu1 %v995_v15, %s3377_s27  ;;  %1224 = vrot.lane.b32.xlu0 %v994_v19, %s3377_s27  ;;  %v1007_v19 = vld [vmem:[%s6246_s2 + $0x380] sm:$0xff] }
 0x1b9   : > { %1146 = vrot.lane.b32.xlu1 %v955_v16, %s3377_s27  ;;  %1144 = vrot.lane.b32.xlu0 %v954_v18, %s3377_s27 }
 0x1bd   : > { %1230 = vrot.lane.b32.xlu1 %v997_v20, %s3377_s27  ;;  %1228 = vrot.lane.b32.xlu0 %v996_v21, %s3377_s27  ;;  %v1006_v20 = vld [vmem:[%s6246_s2 + $0x378] sm:$0xff] }
 0x1c1   : > { %1150 = vrot.lane.b32.xlu1 %v957_v22, %s3377_s27  ;;  %1148 = vrot.lane.b32.xlu0 %v956_v23, %s3377_s27  ;;  %v967_v22 = vld [vmem:[%s6246_s2 + $0x1a0] sm:$0xff] }
 0x1c5   : > { %1234 = vrot.lane.b32.xlu1 %v999_v24, %s3377_s27  ;;  %1232 = vrot.lane.b32.xlu0 %v998_v25, %s3377_s27  ;;  %v966_v25 = vld [vmem:[%s6246_s2 + $0x198] sm:$0xff] }
 0x1c9   : > { %1154 = vrot.lane.b32.xlu1 %v959_v49, %s3377_s27  ;;  %1152 = vrot.lane.b32.xlu0 %v958_v50, %s3377_s27  ;;  %v1009_v50 = vld [vmem:[%s6246_s2 + $0x398] sm:$0xff] }
 0x1cd   : > { %1238 = vrot.lane.b32.xlu1 %v1001_v53, %s3377_s27  ;;  %1236 = vrot.lane.b32.xlu0 %v1000_v54, %s3377_s27 }
 0x1d1   : > { %1158 = vrot.lane.b32.xlu1 %v961_v55, %s3377_s27  ;;  %1156 = vrot.lane.b32.xlu0 %v960_v57, %s3377_s27  ;;  %v1008_v55 = vld [vmem:[%s6246_s2 + $0x390] sm:$0xff] }
 0x1d3   : > { %v1185_v51 = vpop.permute.xlu1 %1184  ;;  %v1101_v60 = vpop.permute.xlu0 %1100 }
 0x1d5   : > { %1242 = vrot.lane.b32.xlu1 %v1003_v58, %s3377_s27  ;;  %1240 = vrot.lane.b32.xlu0 %v1002_v59, %s3377_s27  ;;  %v969_v58 = vld [vmem:[%s6246_s2 + $0x1b8] sm:$0xff] }
 0x1d7   : > { %v1187_v63 = vpop.permute.xlu1 %1186  ;;  %v1103_v0 = vpop.permute.xlu0 %1102 }
 0x1d8   : > { %v1290_v2 = vsel %vm1268_vm2, %v1185_v51, %v1187_v63  ;;  %v1269_v3 = vsel %vm1268_vm2, %v1101_v60, %v1103_v0  ;;  %v968_v60 = vld [vmem:[%s6246_s2 + $0x1b0] sm:$0xff] }
 0x1d9   : > { %3169 = vmatmul.mubr.msk.f32.vlgmr.msra.gmra.mxu1 %vm1311_vm3, %v1290_v2  ;;  %1162 = vrot.lane.b32.xlu1 %v963_v62, %s3377_s27  ;;  %v1011_v63 = vld [vmem:[%s6246_s2 + $0x3b0] sm:$0xff]  ;;  %v1010_v2 = vld [vmem:[%s6246_s2 + $0x3a8] sm:$0xff] }
 0x1da   : > { %1160 = vrot.lane.b32.xlu0 %v962_v1, %s3377_s27  ;;  %3148 = vmatmul.mubr.msk.f32.vlgmr.msra.gmra.mxu0 %vm1311_vm3, %v1269_v3 }
 0x1db   : > { %v1107_v6 = vpop.permute.xlu1 %1106  ;;  %v1105_v7 = vpop.permute.xlu0 %1104  ;;  %1466 = vmatprep.mubr.f32.mxu0 %v3378_v56  ;;  %1592 = vmatprep.mubr.f32.mxu1 %v3378_v56 }
 0x1dc   : > { %v1270_v9 = vsel %vm1268_vm2, %v1105_v7, %v1107_v6 }
 0x1dd   : > { %1246 = vrot.lane.b32.xlu1 %v1005_v5, %s3377_s27  ;;  %v971_v5 = vld [vmem:[%s6246_s2 + $0x1d0] sm:$0xff] }
 0x1de   : > { %1244 = vrot.lane.b32.xlu0 %v1004_v8, %s3377_s27  ;;  %3149 = vmatmul.mubr.msk.f32.gmra.mxu0 %vm1311_vm3, %v1270_v9  ;;  %v970_v8 = vld [vmem:[%s6246_s2 + $0x1c8] sm:$0xff] }
 0x1df   : > { %v1191_v12 = vpop.permute.xlu1 %1190  ;;  %v1189_v13 = vpop.permute.xlu0 %1188  ;;  %1472 = vmatprep.mubr.f32.mxu0 %v3378_v56 }
 0x1e0   : > { %v1291_v15 = vsel %vm1268_vm2, %v1189_v13, %v1191_v12 }
 0x1e1   : > { %1166 = vrot.lane.b32.xlu1 %v965_v10, %s3377_s27  ;;  %3170 = vmatmul.mubr.msk.f32.gmra.mxu1 %vm1311_vm3, %v1291_v15  ;;  %v1013_v10 = vld [vmem:[%s6246_s2 + $0x3c8] sm:$0xff] }
 0x1e2   : > { %1164 = vrot.lane.b32.xlu0 %v964_v14, %s3377_s27  ;;  %1598 = vmatprep.mubr.f32.mxu1 %v3378_v56  ;;  %v1012_v14 = vld [vmem:[%s6246_s2 + $0x3c0] sm:$0xff] }
 0x1e3   : > { %v1111_v16 = vpop.permute.xlu1 %1110  ;;  %v1109_v18 = vpop.permute.xlu0 %1108 }
 0x1e4   : > { %v1271_v21 = vsel %vm1268_vm2, %v1109_v18, %v1111_v16 }
 0x1e5   : > { %1250 = vrot.lane.b32.xlu1 %v1007_v19, %s3377_s27  ;;  %3150 = vmatmul.mubr.msk.f32.gmra.mxu0 %vm1311_vm3, %v1271_v21  ;;  %v973_v19 = vld [vmem:[%s6246_s2 + $0x1e8] sm:$0xff] }
 0x1e6   : > { %1248 = vrot.lane.b32.xlu0 %v1006_v20, %s3377_s27  ;;  %1478 = vmatprep.mubr.f32.mxu0 %v3378_v56  ;;  %v972_v20 = vld [vmem:[%s6246_s2 + $0x1e0] sm:$0xff] }
 0x1e7   : > { %v1195_v23 = vpop.permute.xlu1 %1194  ;;  %v1193_v24 = vpop.permute.xlu0 %1192 }
 0x1e8   : > { %v1292_v49 = vsel %vm1268_vm2, %v1193_v24, %v1195_v23 }
 0x1e9   : > { %1170 = vrot.lane.b32.xlu1 %v967_v22, %s3377_s27  ;;  %3171 = vmatmul.mubr.msk.f32.gmra.mxu1 %vm1311_vm3, %v1292_v49  ;;  %v1015_v22 = vld [vmem:[%s6246_s2 + $0x3e0] sm:$0xff] }
 0x1ea   : > { %1168 = vrot.lane.b32.xlu0 %v966_v25, %s3377_s27  ;;  %1604 = vmatprep.mubr.f32.mxu1 %v3378_v56  ;;  %v1014_v25 = vld [vmem:[%s6246_s2 + $0x3d8] sm:$0xff] }
 0x1eb   : > { %v1115_v53 = vpop.permute.xlu1 %1114  ;;  %v1113_v54 = vpop.permute.xlu0 %1112 }
 0x1ec   : > { %v1272_v57 = vsel %vm1268_vm2, %v1113_v54, %v1115_v53 }
 0x1ed   : > { %1254 = vrot.lane.b32.xlu1 %v1009_v50, %s3377_s27  ;;  %3151 = vmatmul.mubr.msk.f32.gmra.mxu0 %vm1311_vm3, %v1272_v57 }
 0x1ee   : > { %1252 = vrot.lane.b32.xlu0 %v1008_v55, %s3377_s27  ;;  %1484 = vmatprep.mubr.f32.mxu0 %v3378_v56 }
 0x1ef   : > { %v1199_v59 = vpop.permute.xlu1 %1198  ;;  %v1197_v51 = vpop.permute.xlu0 %1196 }
 0x1f0   : > { %v1293_v62 = vsel %vm1268_vm2, %v1197_v51, %v1199_v59 }
 0x1f1   : > { %1174 = vrot.lane.b32.xlu1 %v969_v58, %s3377_s27  ;;  %3172 = vmatmul.mubr.msk.f32.gmra.mxu1 %vm1311_vm3, %v1293_v62 }
 0x1f2   : > { %1172 = vrot.lane.b32.xlu0 %v968_v60, %s3377_s27  ;;  %1610 = vmatprep.mubr.f32.mxu1 %v3378_v56 }
 0x1f3   : > { %v1119_v0 = vpop.permute.xlu1 %1118  ;;  %v1117_v1 = vpop.permute.xlu0 %1116 }
 0x1f4   : > { %v1273_v3 = vsel %vm1268_vm2, %v1117_v1, %v1119_v0 }
 0x1f5   : > { %1258 = vrot.lane.b32.xlu1 %v1011_v63, %s3377_s27  ;;  %3152 = vmatmul.mubr.msk.f32.gmra.mxu0 %vm1311_vm3, %v1273_v3 }
 0x1f6   : > { %1256 = vrot.lane.b32.xlu0 %v1010_v2, %s3377_s27  ;;  %1490 = vmatprep.mubr.f32.mxu0 %v3378_v56 }
 0x1f7   : > { %v1203_v6 = vpop.permute.xlu1 %1202  ;;  %v1201_v7 = vpop.permute.xlu0 %1200 }
 0x1f8   : > { %v1294_v9 = vsel %vm1268_vm2, %v1201_v7, %v1203_v6 }
 0x1f9   : > { %1178 = vrot.lane.b32.xlu1 %v971_v5, %s3377_s27  ;;  %3173 = vmatmul.mubr.msk.f32.gmra.mxu1 %vm1311_vm3, %v1294_v9 }
 0x1fa   : > { %1176 = vrot.lane.b32.xlu0 %v970_v8, %s3377_s27  ;;  %1616 = vmatprep.mubr.f32.mxu1 %v3378_v56 }
 0x1fb   : > { %v1123_v12 = vpop.permute.xlu1 %1122  ;;  %v1121_v13 = vpop.permute.xlu0 %1120 }
 0x1fc   : > { %v1274_v15 = vsel %vm1268_vm2, %v1121_v13, %v1123_v12 }
 0x1fd   : > { %1262 = vrot.lane.b32.xlu1 %v1013_v10, %s3377_s27  ;;  %3153 = vmatmul.mubr.msk.f32.gmra.mxu0 %vm1311_vm3, %v1274_v15 }
 0x1fe   : > { %1260 = vrot.lane.b32.xlu0 %v1012_v14, %s3377_s27  ;;  %1496 = vmatprep.mubr.f32.mxu0 %v3378_v56 }
 0x1ff   : > { %v1207_v16 = vpop.permute.xlu1 %1206  ;;  %v1205_v18 = vpop.permute.xlu0 %1204 }
 0x200   : > { %v1295_v21 = vsel %vm1268_vm2, %v1205_v18, %v1207_v16 }
 0x201   : > { %1182 = vrot.lane.b32.xlu1 %v973_v19, %s3377_s27  ;;  %3174 = vmatmul.mubr.msk.f32.gmra.mxu1 %vm1311_vm3, %v1295_v21 }
 0x202   : > { %1180 = vrot.lane.b32.xlu0 %v972_v20, %s3377_s27  ;;  %1622 = vmatprep.mubr.f32.mxu1 %v3378_v56 }
 0x203   : > { %v1127_v23 = vpop.permute.xlu1 %1126  ;;  %v1125_v24 = vpop.permute.xlu0 %1124 }
 0x204   : > { %v1275_v49 = vsel %vm1268_vm2, %v1125_v24, %v1127_v23 }
 0x205   : > { %1266 = vrot.lane.b32.xlu1 %v1015_v22, %s3377_s27  ;;  %3154 = vmatmul.mubr.msk.f32.gmra.mxu0 %vm1311_vm3, %v1275_v49 }
 0x206   : > { %1264 = vrot.lane.b32.xlu0 %v1014_v25, %s3377_s27  ;;  %1502 = vmatprep.mubr.f32.mxu0 %v3378_v56 }
 0x207   : > { %v1211_v50 = vpop.permute.xlu1 %1210  ;;  %v1209_v53 = vpop.permute.xlu0 %1208 }
 0x208   : > { %v1296_v54 = vsel %vm1268_vm2, %v1209_v53, %v1211_v50 }
 0x209   : > { %3175 = vmatmul.mubr.msk.f32.gmra.mxu1 %vm1311_vm3, %v1296_v54 }
 0x20a   : > { %1628 = vmatprep.mubr.f32.mxu1 %v3378_v56 }
 0x20b   : > { %v1131_v55 = vpop.permute.xlu1 %1130  ;;  %v1129_v57 = vpop.permute.xlu0 %1128 }
 0x20c   : > { %v1276_v58 = vsel %vm1268_vm2, %v1129_v57, %v1131_v55 }
 0x20d   : > { %3155 = vmatmul.mubr.msk.f32.gmra.mxu0 %vm1311_vm3, %v1276_v58 }
 0x20e   : > { %1508 = vmatprep.mubr.f32.mxu0 %v3378_v56 }
 0x20f   : > { %v1215_v59 = vpop.permute.xlu1 %1214  ;;  %v1213_v51 = vpop.permute.xlu0 %1212 }
 0x210   : > { %v1297_v60 = vsel %vm1268_vm2, %v1213_v51, %v1215_v59 }
 0x211   : > { %3176 = vmatmul.mubr.msk.f32.gmra.mxu1 %vm1311_vm3, %v1297_v60 }
 0x212   : > { %1634 = vmatprep.mubr.f32.mxu1 %v3378_v56 }
 0x213   : > { %v1135_v62 = vpop.permute.xlu1 %1134  ;;  %v1133_v63 = vpop.permute.xlu0 %1132 }
 0x214   : > { %v1277_v0 = vsel %vm1268_vm2, %v1133_v63, %v1135_v62 }
 0x215   : > { %3156 = vmatmul.mubr.msk.f32.gmra.mxu0 %vm1311_vm3, %v1277_v0 }
 0x216   : > { %1514 = vmatprep.mubr.f32.mxu0 %v3378_v56 }
 0x217   : > { %v1219_v1 = vpop.permute.xlu1 %1218  ;;  %v1217_v2 = vpop.permute.xlu0 %1216 }
 0x218   : > { %v1298_v3 = vsel %vm1268_vm2, %v1217_v2, %v1219_v1 }
 0x219   : > { %3177 = vmatmul.mubr.msk.f32.gmra.mxu1 %vm1311_vm3, %v1298_v3 }
 0x21a   : > { %1640 = vmatprep.mubr.f32.mxu1 %v3378_v56 }
 0x21b   : > { %v1139_v5 = vpop.permute.xlu1 %1138  ;;  %v1137_v6 = vpop.permute.xlu0 %1136 }
 0x21c   : > { %v1278_v7 = vsel %vm1268_vm2, %v1137_v6, %v1139_v5 }
 0x21d   : > { %3157 = vmatmul.mubr.msk.f32.gmra.mxu0 %vm1311_vm3, %v1278_v7 }
 0x21e   : > { %1520 = vmatprep.mubr.f32.mxu0 %v3378_v56 }
 0x21f   : > { %v1223_v8 = vpop.permute.xlu1 %1222  ;;  %v1221_v9 = vpop.permute.xlu0 %1220 }
 0x220   : > { %v1299_v10 = vsel %vm1268_vm2, %v1221_v9, %v1223_v8 }
 0x221   : > { %3178 = vmatmul.mubr.msk.f32.gmra.mxu1 %vm1311_vm3, %v1299_v10 }
 0x222   : > { %1646 = vmatprep.mubr.f32.mxu1 %v3378_v56 }
 0x223   : > { %v1143_v12 = vpop.permute.xlu1 %1142  ;;  %v1141_v13 = vpop.permute.xlu0 %1140 }
 0x224   : > { %v1279_v14 = vsel %vm1268_vm2, %v1141_v13, %v1143_v12 }
 0x225   : > { %3158 = vmatmul.mubr.msk.f32.gmra.mxu0 %vm1311_vm3, %v1279_v14 }
 0x226   : > { %1526 = vmatprep.mubr.f32.mxu0 %v3378_v56 }
 0x227   : > { %v1227_v15 = vpop.permute.xlu1 %1226  ;;  %v1225_v19 = vpop.permute.xlu0 %1224 }
 0x228   : > { %v1300_v16 = vsel %vm1268_vm2, %v1225_v19, %v1227_v15 }
 0x229   : > { %3179 = vmatmul.mubr.msk.f32.gmra.mxu1 %vm1311_vm3, %v1300_v16 }
 0x22a   : > { %1652 = vmatprep.mubr.f32.mxu1 %v3378_v56 }
 0x22b   : > { %v1147_v18 = vpop.permute.xlu1 %1146  ;;  %v1145_v20 = vpop.permute.xlu0 %1144 }
 0x22c   : > { %v1280_v21 = vsel %vm1268_vm2, %v1145_v20, %v1147_v18 }
 0x22d   : > { %3159 = vmatmul.mubr.msk.f32.gmra.mxu0 %vm1311_vm3, %v1280_v21 }
 0x22e   : > { %1532 = vmatprep.mubr.f32.mxu0 %v3378_v56 }
 0x22f   : > { %v1231_v22 = vpop.permute.xlu1 %1230  ;;  %v1229_v23 = vpop.permute.xlu0 %1228 }
 0x230   : > { %v1301_v24 = vsel %vm1268_vm2, %v1229_v23, %v1231_v22 }
 0x231   : > { %3180 = vmatmul.mubr.msk.f32.gmra.mxu1 %vm1311_vm3, %v1301_v24 }
 0x232   : > { %1658 = vmatprep.mubr.f32.mxu1 %v3378_v56 }
 0x233   : > { %v1151_v25 = vpop.permute.xlu1 %1150  ;;  %v1149_v49 = vpop.permute.xlu0 %1148 }
 0x234   : > { %v1281_v50 = vsel %vm1268_vm2, %v1149_v49, %v1151_v25 }
 0x235   : > { %3160 = vmatmul.mubr.msk.f32.gmra.mxu0 %vm1311_vm3, %v1281_v50 }
 0x236   : > { %1538 = vmatprep.mubr.f32.mxu0 %v3378_v56 }
 0x237   : > { %v1235_v53 = vpop.permute.xlu1 %1234  ;;  %v1233_v54 = vpop.permute.xlu0 %1232 }
 0x238   : > { %v1302_v55 = vsel %vm1268_vm2, %v1233_v54, %v1235_v53 }
 0x239   : > { %3181 = vmatmul.mubr.msk.f32.gmra.mxu1 %vm1311_vm3, %v1302_v55 }
 0x23a   : > { %1664 = vmatprep.mubr.f32.mxu1 %v3378_v56 }
 0x23b   : > { %v1155_v57 = vpop.permute.xlu1 %1154  ;;  %v1153_v58 = vpop.permute.xlu0 %1152 }
 0x23c   : > { %v1282_v59 = vsel %vm1268_vm2, %v1153_v58, %v1155_v57 }
 0x23d   : > { %3161 = vmatmul.mubr.msk.f32.gmra.mxu0 %vm1311_vm3, %v1282_v59 }
 0x23e   : > { %1544 = vmatprep.mubr.f32.mxu0 %v3378_v56 }
 0x23f   : > { %v1239_v51 = vpop.permute.xlu1 %1238  ;;  %v1237_v60 = vpop.permute.xlu0 %1236 }
 0x240   : > { %v1303_v62 = vsel %vm1268_vm2, %v1237_v60, %v1239_v51 }
 0x241   : > { %3182 = vmatmul.mubr.msk.f32.gmra.mxu1 %vm1311_vm3, %v1303_v62 }
 0x242   : > { %1670 = vmatprep.mubr.f32.mxu1 %v3378_v56 }
 0x243   : > { %v1159_v63 = vpop.permute.xlu1 %1158  ;;  %v1157_v0 = vpop.permute.xlu0 %1156 }
 0x244   : > { %v1283_v1 = vsel %vm1268_vm2, %v1157_v0, %v1159_v63 }
 0x245   : > { %3162 = vmatmul.mubr.msk.f32.gmra.mxu0 %vm1311_vm3, %v1283_v1 }
 0x246   : > { %1550 = vmatprep.mubr.f32.mxu0 %v3378_v56 }
 0x247   : > { %v1243_v2 = vpop.permute.xlu1 %1242  ;;  %v1241_v3 = vpop.permute.xlu0 %1240 }
 0x248   : > { %v1304_v5 = vsel %vm1268_vm2, %v1241_v3, %v1243_v2 }
 0x249   : > { %3183 = vmatmul.mubr.msk.f32.gmra.mxu1 %vm1311_vm3, %v1304_v5 }
 0x24a   : > { %1676 = vmatprep.mubr.f32.mxu1 %v3378_v56 }
 0x24b   : > { %v1163_v6 = vpop.permute.xlu1 %1162 }
 0x24c   : > { %v1161_v7 = vpop.permute.xlu0 %1160 }
 0x24d   : > { %v1284_v8 = vsel %vm1268_vm2, %v1161_v7, %v1163_v6  ;;  %v1755_v7 = vld [vmem:[%s6247_s3 + $0x150] sm:$0xff] }
 0x24e   : > { %3163 = vmatmul.mubr.msk.f32.gmra.mxu0 %vm1311_vm3, %v1284_v8  ;;  %v1713_v8 = vld [vmem:[%s6247_s3] sm:$0xff] }
 0x24f   : > { %v1247_v9 = vpop.permute.xlu1 %1246  ;;  %1556 = vmatprep.mubr.f32.mxu0 %v3378_v56 }
 0x250   : > { %v1245_v10 = vpop.permute.xlu0 %1244 }
 0x251   : > { %v1305_v12 = vsel %vm1268_vm2, %v1245_v10, %v1247_v9  ;;  %v1756_v9 = vld [vmem:[%s6247_s3 + $0x158] sm:$0xff] }
 0x252   : > { %3184 = vmatmul.mubr.msk.f32.gmra.mxu1 %vm1311_vm3, %v1305_v12 }
 0x253   : > { %v1167_v13 = vpop.permute.xlu1 %1166  ;;  %1682 = vmatprep.mubr.f32.mxu1 %v3378_v56 }
 0x254   : > { %v1165_v14 = vpop.permute.xlu0 %1164 }
 0x255   : > { %v1285_v15 = vsel %vm1268_vm2, %v1165_v14, %v1167_v13  ;;  %v1714_v13 = vld [vmem:[%s6247_s3 + $0x8] sm:$0xff] }
 0x256   : > { %3164 = vmatmul.mubr.msk.f32.gmra.mxu0 %vm1311_vm3, %v1285_v15 }
 0x257   : > { %v1251_v19 = vpop.permute.xlu1 %1250  ;;  %1562 = vmatprep.mubr.f32.mxu0 %v3378_v56 }
 0x258   : > { %v1249_v16 = vpop.permute.xlu0 %1248 }
 0x259   : > { %v1306_v18 = vsel %vm1268_vm2, %v1249_v16, %v1251_v19 }
 0x25a   : > { %3185 = vmatmul.mubr.msk.f32.gmra.mxu1 %vm1311_vm3, %v1306_v18  ;;  %v1715_v18 = vld [vmem:[%s6247_s3 + $0x10] sm:$0xff] }
 0x25b   : > { %v1171_v20 = vpop.permute.xlu1 %1170  ;;  %1688 = vmatprep.mubr.f32.mxu1 %v3378_v56 }
 0x25c   : > { %v1169_v21 = vpop.permute.xlu0 %1168 }
 0x25d   : > { %v1286_v22 = vsel %vm1268_vm2, %v1169_v21, %v1171_v20 }
 0x25e   : > { %3165 = vmatmul.mubr.msk.f32.gmra.mxu0 %vm1311_vm3, %v1286_v22  ;;  %v1716_v22 = vld [vmem:[%s6247_s3 + $0x18] sm:$0xff] }
 0x25f   : > { %v1255_v23 = vpop.permute.xlu1 %1254  ;;  %1568 = vmatprep.mubr.f32.mxu0 %v3378_v56 }
 0x260   : > { %v1253_v24 = vpop.permute.xlu0 %1252 }
 0x261   : > { %v1307_v25 = vsel %vm1268_vm2, %v1253_v24, %v1255_v23  ;;  %v1757_v24 = vld [vmem:[%s6247_s3 + $0x160] sm:$0xff] }
 0x262   : > { %3186 = vmatmul.mubr.msk.f32.gmra.mxu1 %vm1311_vm3, %v1307_v25 }
 0x263   : > { %v1175_v49 = vpop.permute.xlu1 %1174  ;;  %1694 = vmatprep.mubr.f32.mxu1 %v3378_v56 }
 0x264   : > { %v1173_v50 = vpop.permute.xlu0 %1172 }
 0x265   : > { %v1287_v53 = vsel %vm1268_vm2, %v1173_v50, %v1175_v49 }
 0x266   : > { %3166 = vmatmul.mubr.msk.f32.gmra.mxu0 %vm1311_vm3, %v1287_v53  ;;  %v1758_v53 = vld [vmem:[%s6247_s3 + $0x168] sm:$0xff] }
 0x267   : > { %v1259_v54 = vpop.permute.xlu1 %1258  ;;  %1574 = vmatprep.mubr.f32.mxu0 %v3378_v56 }
 0x268   : > { %v1257_v55 = vpop.permute.xlu0 %1256 }
 0x269   : > { %v1308_v57 = vsel %vm1268_vm2, %v1257_v55, %v1259_v54 }
 0x26a   : > { %3187 = vmatmul.mubr.msk.f32.gmra.mxu1 %vm1311_vm3, %v1308_v57  ;;  %v1717_v57 = vld [vmem:[%s6247_s3 + $0x20] sm:$0xff] }
 0x26b   : > { %v1179_v58 = vpop.permute.xlu1 %1178  ;;  %1700 = vmatprep.mubr.f32.mxu1 %v3378_v56 }
 0x26c   : > { %v1177_v59 = vpop.permute.xlu0 %1176 }
 0x26d   : > { %v1288_v51 = vsel %vm1268_vm2, %v1177_v59, %v1179_v58 }
 0x26e   : > { %3167 = vmatmul.mubr.msk.f32.gmra.mxu0 %vm1311_vm3, %v1288_v51  ;;  %v1718_v51 = vld [vmem:[%s6247_s3 + $0x28] sm:$0xff] }
 0x26f   : > { %v1263_v60 = vpop.permute.xlu1 %1262  ;;  %1580 = vmatprep.mubr.f32.mxu0 %v3378_v56 }
 0x270   : > { %v1261_v62 = vpop.permute.xlu0 %1260 }
 0x271   : > { %v1309_v63 = vsel %vm1268_vm2, %v1261_v62, %v1263_v60 }
 0x272   : > { %3188 = vmatmul.mubr.msk.f32.gmra.mxu1 %vm1311_vm3, %v1309_v63  ;;  %v1759_v63 = vld [vmem:[%s6247_s3 + $0x170] sm:$0xff] }
 0x273   : > { %v1183_v0 = vpop.permute.xlu1 %1182  ;;  %1706 = vmatprep.mubr.f32.mxu1 %v3378_v56 }
 0x274   : > { %v1181_v1 = vpop.permute.xlu0 %1180 }
 0x275   : > { %v1289_v2 = vsel %vm1268_vm2, %v1181_v1, %v1183_v0 }
 0x276   : > { %3168 = vmatmul.mubr.msk.f32.gmra.mxu0 %vm1311_vm3, %v1289_v2  ;;  %v1760_v2 = vld [vmem:[%s6247_s3 + $0x178] sm:$0xff] }
 0x277   : > { %v1267_v3 = vpop.permute.xlu1 %1266 }
 0x278   : > { %v1265_v5 = vpop.permute.xlu0 %1264 }
 0x279   : > { %v1310_v6 = vsel %vm1268_vm2, %v1265_v5, %v1267_v3 }
 0x27a   : > { %3189 = vmatmul.mubr.msk.f32.gmra.mxu1 %vm1311_vm3, %v1310_v6  ;;  %v1719_v6 = vld [vmem:[%s6247_s3 + $0x30] sm:$0xff] }
 0x299   : > { %v1588_v56 = vpop.f32.mrf.mxu1 }
 0x29a   : > { %v1462_v10 = vpop.f32.mrf.mxu0  ;;  %v1839_v12 = vadd.f32 %v1755_v7, %v1588_v56  ;;  %v1720_v56 = vld [vmem:[%s6247_s3 + $0x38] sm:$0xff] }
 0x29b   : > { %v1797_v14 = vadd.f32 %v1713_v8, %v1462_v10  ;;  %v1590_v15 = vpop.f32.mrf.mxu1 }
 0x29c   : > { %1924 = vst [vmem:[%s6247_s3 + $0x150] sm:$0xff] %v1839_v12  ;;  %v1464_v19 = vpop.f32.mrf.mxu0  ;;  %v1840_v16 = vadd.f32 %v1756_v9, %v1590_v15  ;;  %v1761_v12 = vld [vmem:[%s6247_s3 + $0x180] sm:$0xff]  ;;  %v1762_v15 = vld [vmem:[%s6247_s3 + $0x188] sm:$0xff] }
 0x29d   : > { %1881 = vst [vmem:[%s6247_s3] sm:$0xff] %v1797_v14  ;;  %v1798_v20 = vadd.f32 %v1714_v13, %v1464_v19 }
 0x29e   : > { %1925 = vst.msk [vmem:[%s6247_s3 + $0x158] sm:$0xff] %vm1882_vm4, %v1840_v16  ;;  %v1468_v21 = vpop.f32.mrf.mxu0 }
 0x29f   : > { %1883 = vst.msk [vmem:[%s6247_s3 + $0x8] sm:$0xff] %vm1882_vm4, %v1798_v20  ;;  %v1799_v23 = vadd.f32 %v1715_v18, %v1468_v21  ;;  %v1721_v18 = vld [vmem:[%s6247_s3 + $0x40] sm:$0xff] }
 0x2a0   : > { %v1470_v25 = vpop.f32.mrf.mxu0 }
 0x2a1   : > { %1884 = vst [vmem:[%s6247_s3 + $0x10] sm:$0xff] %v1799_v23  ;;  %v1800_v49 = vadd.f32 %v1716_v22, %v1470_v25  ;;  %v1594_v50 = vpop.f32.mrf.mxu1  ;;  %v1722_v22 = vld [vmem:[%s6247_s3 + $0x48] sm:$0xff]  ;;  %v1763_v25 = vld [vmem:[%s6247_s3 + $0x190] sm:$0xff] }
 0x2a2   : > { %v1841_v54 = vadd.f32 %v1757_v24, %v1594_v50 }
 0x2a3   : > { %1885 = vst.msk [vmem:[%s6247_s3 + $0x18] sm:$0xff] %vm1882_vm4, %v1800_v49  ;;  %v1596_v55 = vpop.f32.mrf.mxu1 }
 0x2a4   : > { %1926 = vst [vmem:[%s6247_s3 + $0x160] sm:$0xff] %v1841_v54  ;;  %v1842_v58 = vadd.f32 %v1758_v53, %v1596_v55  ;;  %v1764_v53 = vld [vmem:[%s6247_s3 + $0x198] sm:$0xff] }
 0x2a5   : > { %v1474_v59 = vpop.f32.mrf.mxu0 }
 0x2a6   : > { %1927 = vst.msk [vmem:[%s6247_s3 + $0x168] sm:$0xff] %vm1882_vm4, %v1842_v58  ;;  %v1801_v60 = vadd.f32 %v1717_v57, %v1474_v59  ;;  %v1723_v57 = vld [vmem:[%s6247_s3 + $0x50] sm:$0xff] }
 0x2a7   : > { %v1476_v62 = vpop.f32.mrf.mxu0 }
 0x2a8   : > { %1886 = vst [vmem:[%s6247_s3 + $0x20] sm:$0xff] %v1801_v60  ;;  %v1802_v0 = vadd.f32 %v1718_v51, %v1476_v62  ;;  %v1724_v51 = vld [vmem:[%s6247_s3 + $0x58] sm:$0xff] }
 0x2a9   : > { %v1600_v1 = vpop.f32.mrf.mxu1 }
 0x2aa   : > { %1887 = vst.msk [vmem:[%s6247_s3 + $0x28] sm:$0xff] %vm1882_vm4, %v1802_v0  ;;  %v1843_v3 = vadd.f32 %v1759_v63, %v1600_v1  ;;  %v1765_v63 = vld [vmem:[%s6247_s3 + $0x1a0] sm:$0xff] }
 0x2ab   : > { %v1602_v5 = vpop.f32.mrf.mxu1 }
 0x2ac   : > { %1928 = vst [vmem:[%s6247_s3 + $0x170] sm:$0xff] %v1843_v3  ;;  %v1844_v7 = vadd.f32 %v1760_v2, %v1602_v5  ;;  %v1766_v2 = vld [vmem:[%s6247_s3 + $0x1a8] sm:$0xff] }
 0x2ad   : > { %v1480_v8 = vpop.f32.mrf.mxu0 }
 0x2ae   : > { %1929 = vst.msk [vmem:[%s6247_s3 + $0x178] sm:$0xff] %vm1882_vm4, %v1844_v7  ;;  %v1803_v9 = vadd.f32 %v1719_v6, %v1480_v8  ;;  %v1725_v6 = vld [vmem:[%s6247_s3 + $0x60] sm:$0xff] }
 0x2af   : > { %v1482_v10 = vpop.f32.mrf.mxu0 }
 0x2b0   : > { %1888 = vst [vmem:[%s6247_s3 + $0x30] sm:$0xff] %v1803_v9  ;;  %v1804_v13 = vadd.f32 %v1720_v56, %v1482_v10  ;;  %v1726_v56 = vld [vmem:[%s6247_s3 + $0x68] sm:$0xff] }
 0x2b1   : > { %v1606_v14 = vpop.f32.mrf.mxu1 }
 0x2b2   : > { %1889 = vst.msk [vmem:[%s6247_s3 + $0x38] sm:$0xff] %vm1882_vm4, %v1804_v13  ;;  %v1845_v19 = vadd.f32 %v1761_v12, %v1606_v14  ;;  %v1767_v12 = vld [vmem:[%s6247_s3 + $0x1b0] sm:$0xff] }
 0x2b3   : > { %v1608_v16 = vpop.f32.mrf.mxu1 }
 0x2b4   : > { %1930 = vst [vmem:[%s6247_s3 + $0x180] sm:$0xff] %v1845_v19  ;;  %v1846_v20 = vadd.f32 %v1762_v15, %v1608_v16  ;;  %v1768_v15 = vld [vmem:[%s6247_s3 + $0x1b8] sm:$0xff] }
 0x2b5   : > { %v1486_v21 = vpop.f32.mrf.mxu0 }
 0x2b6   : > { %1931 = vst.msk [vmem:[%s6247_s3 + $0x188] sm:$0xff] %vm1882_vm4, %v1846_v20  ;;  %v1805_v23 = vadd.f32 %v1721_v18, %v1486_v21  ;;  %v1727_v18 = vld [vmem:[%s6247_s3 + $0x70] sm:$0xff] }
 0x2b7   : > { %v1488_v24 = vpop.f32.mrf.mxu0 }
 0x2b8   : > { %1890 = vst [vmem:[%s6247_s3 + $0x40] sm:$0xff] %v1805_v23  ;;  %v1806_v49 = vadd.f32 %v1722_v22, %v1488_v24  ;;  %v1728_v22 = vld [vmem:[%s6247_s3 + $0x78] sm:$0xff] }
 0x2b9   : > { %v1612_v50 = vpop.f32.mrf.mxu1 }
 0x2ba   : > { %1891 = vst.msk [vmem:[%s6247_s3 + $0x48] sm:$0xff] %vm1882_vm4, %v1806_v49  ;;  %v1847_v54 = vadd.f32 %v1763_v25, %v1612_v50  ;;  %v1769_v25 = vld [vmem:[%s6247_s3 + $0x1c0] sm:$0xff] }
 0x2bb   : > { %v1614_v55 = vpop.f32.mrf.mxu1 }
 0x2bc   : > { %1932 = vst [vmem:[%s6247_s3 + $0x190] sm:$0xff] %v1847_v54  ;;  %v1848_v58 = vadd.f32 %v1764_v53, %v1614_v55  ;;  %v1770_v53 = vld [vmem:[%s6247_s3 + $0x1c8] sm:$0xff] }
 0x2bd   : > { %v1492_v59 = vpop.f32.mrf.mxu0 }
 0x2be   : > { %1933 = vst.msk [vmem:[%s6247_s3 + $0x198] sm:$0xff] %vm1882_vm4, %v1848_v58  ;;  %v1807_v60 = vadd.f32 %v1723_v57, %v1492_v59  ;;  %v1729_v57 = vld [vmem:[%s6247_s3 + $0x80] sm:$0xff] }
 0x2bf   : > { %v1494_v62 = vpop.f32.mrf.mxu0 }
 0x2c0   : > { %1892 = vst [vmem:[%s6247_s3 + $0x50] sm:$0xff] %v1807_v60  ;;  %v1808_v0 = vadd.f32 %v1724_v51, %v1494_v62  ;;  %v1730_v51 = vld [vmem:[%s6247_s3 + $0x88] sm:$0xff] }
 0x2c1   : > { %v1618_v1 = vpop.f32.mrf.mxu1 }
 0x2c2   : > { %1893 = vst.msk [vmem:[%s6247_s3 + $0x58] sm:$0xff] %vm1882_vm4, %v1808_v0  ;;  %v1849_v3 = vadd.f32 %v1765_v63, %v1618_v1  ;;  %v1771_v63 = vld [vmem:[%s6247_s3 + $0x1d0] sm:$0xff] }
 0x2c3   : > { %v1620_v5 = vpop.f32.mrf.mxu1 }
 0x2c4   : > { %1934 = vst [vmem:[%s6247_s3 + $0x1a0] sm:$0xff] %v1849_v3  ;;  %v1850_v7 = vadd.f32 %v1766_v2, %v1620_v5  ;;  %v1772_v2 = vld [vmem:[%s6247_s3 + $0x1d8] sm:$0xff] }
 0x2c5   : > { %v1498_v8 = vpop.f32.mrf.mxu0 }
 0x2c6   : > { %1935 = vst.msk [vmem:[%s6247_s3 + $0x1a8] sm:$0xff] %vm1882_vm4, %v1850_v7  ;;  %v1809_v9 = vadd.f32 %v1725_v6, %v1498_v8  ;;  %v1731_v6 = vld [vmem:[%s6247_s3 + $0x90] sm:$0xff] }
 0x2c7   : > { %v1500_v10 = vpop.f32.mrf.mxu0 }
 0x2c8   : > { %1894 = vst [vmem:[%s6247_s3 + $0x60] sm:$0xff] %v1809_v9  ;;  %v1810_v13 = vadd.f32 %v1726_v56, %v1500_v10  ;;  %v1732_v56 = vld [vmem:[%s6247_s3 + $0x98] sm:$0xff] }
 0x2c9   : > { %v1624_v14 = vpop.f32.mrf.mxu1 }
 0x2ca   : > { %1895 = vst.msk [vmem:[%s6247_s3 + $0x68] sm:$0xff] %vm1882_vm4, %v1810_v13  ;;  %v1851_v19 = vadd.f32 %v1767_v12, %v1624_v14  ;;  %v1773_v12 = vld [vmem:[%s6247_s3 + $0x1e0] sm:$0xff] }
 0x2cb   : > { %v1626_v16 = vpop.f32.mrf.mxu1 }
 0x2cc   : > { %1936 = vst [vmem:[%s6247_s3 + $0x1b0] sm:$0xff] %v1851_v19  ;;  %v1852_v20 = vadd.f32 %v1768_v15, %v1626_v16  ;;  %v1774_v15 = vld [vmem:[%s6247_s3 + $0x1e8] sm:$0xff] }
 0x2cd   : > { %v1504_v21 = vpop.f32.mrf.mxu0 }
 0x2ce   : > { %1937 = vst.msk [vmem:[%s6247_s3 + $0x1b8] sm:$0xff] %vm1882_vm4, %v1852_v20  ;;  %v1811_v23 = vadd.f32 %v1727_v18, %v1504_v21  ;;  %v1733_v18 = vld [vmem:[%s6247_s3 + $0xa0] sm:$0xff] }
 0x2cf   : > { %v1506_v24 = vpop.f32.mrf.mxu0 }
 0x2d0   : > { %1896 = vst [vmem:[%s6247_s3 + $0x70] sm:$0xff] %v1811_v23  ;;  %v1812_v49 = vadd.f32 %v1728_v22, %v1506_v24  ;;  %v1734_v22 = vld [vmem:[%s6247_s3 + $0xa8] sm:$0xff] }
 0x2d1   : > { %v1630_v50 = vpop.f32.mrf.mxu1 }
 0x2d2   : > { %1897 = vst.msk [vmem:[%s6247_s3 + $0x78] sm:$0xff] %vm1882_vm4, %v1812_v49  ;;  %v1853_v54 = vadd.f32 %v1769_v25, %v1630_v50  ;;  %v1775_v25 = vld [vmem:[%s6247_s3 + $0x1f0] sm:$0xff] }
 0x2d3   : > { %v1632_v55 = vpop.f32.mrf.mxu1 }
 0x2d4   : > { %1938 = vst [vmem:[%s6247_s3 + $0x1c0] sm:$0xff] %v1853_v54  ;;  %v1854_v58 = vadd.f32 %v1770_v53, %v1632_v55  ;;  %v1776_v53 = vld [vmem:[%s6247_s3 + $0x1f8] sm:$0xff] }
 0x2d5   : > { %v1510_v59 = vpop.f32.mrf.mxu0 }
 0x2d6   : > { %1939 = vst.msk [vmem:[%s6247_s3 + $0x1c8] sm:$0xff] %vm1882_vm4, %v1854_v58  ;;  %v1813_v60 = vadd.f32 %v1729_v57, %v1510_v59  ;;  %v1735_v57 = vld [vmem:[%s6247_s3 + $0xb0] sm:$0xff] }
 0x2d7   : > { %v1512_v62 = vpop.f32.mrf.mxu0 }
 0x2d8   : > { %1898 = vst [vmem:[%s6247_s3 + $0x80] sm:$0xff] %v1813_v60  ;;  %v1814_v0 = vadd.f32 %v1730_v51, %v1512_v62  ;;  %v1736_v51 = vld [vmem:[%s6247_s3 + $0xb8] sm:$0xff] }
 0x2d9   : > { %v1636_v1 = vpop.f32.mrf.mxu1 }
 0x2da   : > { %1899 = vst.msk [vmem:[%s6247_s3 + $0x88] sm:$0xff] %vm1882_vm4, %v1814_v0  ;;  %v1855_v3 = vadd.f32 %v1771_v63, %v1636_v1  ;;  %v1777_v63 = vld [vmem:[%s6247_s3 + $0x200] sm:$0xff] }
 0x2db   : > { %v1638_v5 = vpop.f32.mrf.mxu1 }
 0x2dc   : > { %1940 = vst [vmem:[%s6247_s3 + $0x1d0] sm:$0xff] %v1855_v3  ;;  %v1856_v7 = vadd.f32 %v1772_v2, %v1638_v5  ;;  %v1778_v2 = vld [vmem:[%s6247_s3 + $0x208] sm:$0xff] }
 0x2dd   : > { %v1516_v8 = vpop.f32.mrf.mxu0 }
 0x2de   : > { %1941 = vst.msk [vmem:[%s6247_s3 + $0x1d8] sm:$0xff] %vm1882_vm4, %v1856_v7  ;;  %v1815_v9 = vadd.f32 %v1731_v6, %v1516_v8  ;;  %v1737_v6 = vld [vmem:[%s6247_s3 + $0xc0] sm:$0xff] }
 0x2df   : > { %v1518_v10 = vpop.f32.mrf.mxu0 }
 0x2e0   : > { %1900 = vst [vmem:[%s6247_s3 + $0x90] sm:$0xff] %v1815_v9  ;;  %v1816_v13 = vadd.f32 %v1732_v56, %v1518_v10  ;;  %v1738_v56 = vld [vmem:[%s6247_s3 + $0xc8] sm:$0xff] }
 0x2e1   : > { %v1642_v14 = vpop.f32.mrf.mxu1 }
 0x2e2   : > { %1901 = vst.msk [vmem:[%s6247_s3 + $0x98] sm:$0xff] %vm1882_vm4, %v1816_v13  ;;  %v1857_v19 = vadd.f32 %v1773_v12, %v1642_v14  ;;  %v1779_v12 = vld [vmem:[%s6247_s3 + $0x210] sm:$0xff] }
 0x2e3   : > { %v1644_v16 = vpop.f32.mrf.mxu1 }
 0x2e4   : > { %1942 = vst [vmem:[%s6247_s3 + $0x1e0] sm:$0xff] %v1857_v19  ;;  %v1858_v20 = vadd.f32 %v1774_v15, %v1644_v16  ;;  %v1780_v15 = vld [vmem:[%s6247_s3 + $0x218] sm:$0xff] }
 0x2e5   : > { %v1522_v21 = vpop.f32.mrf.mxu0 }
 0x2e6   : > { %1943 = vst.msk [vmem:[%s6247_s3 + $0x1e8] sm:$0xff] %vm1882_vm4, %v1858_v20  ;;  %v1817_v23 = vadd.f32 %v1733_v18, %v1522_v21  ;;  %v1739_v18 = vld [vmem:[%s6247_s3 + $0xd0] sm:$0xff] }
 0x2e7   : > { %v1524_v24 = vpop.f32.mrf.mxu0 }
 0x2e8   : > { %1902 = vst [vmem:[%s6247_s3 + $0xa0] sm:$0xff] %v1817_v23  ;;  %v1818_v49 = vadd.f32 %v1734_v22, %v1524_v24  ;;  %v1740_v22 = vld [vmem:[%s6247_s3 + $0xd8] sm:$0xff] }
 0x2e9   : > { %v1648_v50 = vpop.f32.mrf.mxu1 }
 0x2ea   : > { %1903 = vst.msk [vmem:[%s6247_s3 + $0xa8] sm:$0xff] %vm1882_vm4, %v1818_v49  ;;  %v1859_v54 = vadd.f32 %v1775_v25, %v1648_v50  ;;  %v1781_v25 = vld [vmem:[%s6247_s3 + $0x220] sm:$0xff] }
 0x2eb   : > { %v1650_v55 = vpop.f32.mrf.mxu1 }
 0x2ec   : > { %1944 = vst [vmem:[%s6247_s3 + $0x1f0] sm:$0xff] %v1859_v54  ;;  %v1860_v58 = vadd.f32 %v1776_v53, %v1650_v55  ;;  %v1782_v53 = vld [vmem:[%s6247_s3 + $0x228] sm:$0xff] }
 0x2ed   : > { %v1528_v59 = vpop.f32.mrf.mxu0 }
 0x2ee   : > { %1945 = vst.msk [vmem:[%s6247_s3 + $0x1f8] sm:$0xff] %vm1882_vm4, %v1860_v58  ;;  %v1819_v60 = vadd.f32 %v1735_v57, %v1528_v59  ;;  %v1741_v57 = vld [vmem:[%s6247_s3 + $0xe0] sm:$0xff] }
 0x2ef   : > { %v1530_v62 = vpop.f32.mrf.mxu0 }
 0x2f0   : > { %1904 = vst [vmem:[%s6247_s3 + $0xb0] sm:$0xff] %v1819_v60  ;;  %v1820_v0 = vadd.f32 %v1736_v51, %v1530_v62  ;;  %v1742_v51 = vld [vmem:[%s6247_s3 + $0xe8] sm:$0xff] }
 0x2f1   : > { %v1654_v1 = vpop.f32.mrf.mxu1 }
 0x2f2   : > { %1905 = vst.msk [vmem:[%s6247_s3 + $0xb8] sm:$0xff] %vm1882_vm4, %v1820_v0  ;;  %v1861_v3 = vadd.f32 %v1777_v63, %v1654_v1  ;;  %v1783_v63 = vld [vmem:[%s6247_s3 + $0x230] sm:$0xff] }
 0x2f3   : > { %v1656_v5 = vpop.f32.mrf.mxu1 }
 0x2f4   : > { %1946 = vst [vmem:[%s6247_s3 + $0x200] sm:$0xff] %v1861_v3  ;;  %v1862_v7 = vadd.f32 %v1778_v2, %v1656_v5  ;;  %v1784_v2 = vld [vmem:[%s6247_s3 + $0x238] sm:$0xff] }
 0x2f5   : > { %v1534_v8 = vpop.f32.mrf.mxu0 }
 0x2f6   : > { %1947 = vst.msk [vmem:[%s6247_s3 + $0x208] sm:$0xff] %vm1882_vm4, %v1862_v7  ;;  %v1821_v9 = vadd.f32 %v1737_v6, %v1534_v8  ;;  %v1743_v7 = vld [vmem:[%s6247_s3 + $0xf0] sm:$0xff] }
 0x2f7   : > { %v1536_v10 = vpop.f32.mrf.mxu0 }
 0x2f8   : > { %1906 = vst [vmem:[%s6247_s3 + $0xc0] sm:$0xff] %v1821_v9  ;;  %v1822_v13 = vadd.f32 %v1738_v56, %v1536_v10  ;;  %v1744_v56 = vld [vmem:[%s6247_s3 + $0xf8] sm:$0xff] }
 0x2f9   : > { %v1660_v14 = vpop.f32.mrf.mxu1 }
 0x2fa   : > { %1907 = vst.msk [vmem:[%s6247_s3 + $0xc8] sm:$0xff] %vm1882_vm4, %v1822_v13  ;;  %v1863_v19 = vadd.f32 %v1779_v12, %v1660_v14  ;;  %v1785_v12 = vld [vmem:[%s6247_s3 + $0x240] sm:$0xff] }
 0x2fb   : > { %v1662_v16 = vpop.f32.mrf.mxu1 }
 0x2fc   : > { %1948 = vst [vmem:[%s6247_s3 + $0x210] sm:$0xff] %v1863_v19  ;;  %v1864_v20 = vadd.f32 %v1780_v15, %v1662_v16  ;;  %v1786_v15 = vld [vmem:[%s6247_s3 + $0x248] sm:$0xff] }
 0x2fd   : > { %v1540_v21 = vpop.f32.mrf.mxu0 }
 0x2fe   : > { %1949 = vst.msk [vmem:[%s6247_s3 + $0x218] sm:$0xff] %vm1882_vm4, %v1864_v20  ;;  %v1823_v23 = vadd.f32 %v1739_v18, %v1540_v21  ;;  %v1745_v18 = vld [vmem:[%s6247_s3 + $0x100] sm:$0xff] }
 0x2ff   : > { %v1542_v24 = vpop.f32.mrf.mxu0 }
 0x300   : > { %1908 = vst [vmem:[%s6247_s3 + $0xd0] sm:$0xff] %v1823_v23  ;;  %v1824_v49 = vadd.f32 %v1740_v22, %v1542_v24  ;;  %v1746_v22 = vld [vmem:[%s6247_s3 + $0x108] sm:$0xff] }
 0x301   : > { %v1666_v50 = vpop.f32.mrf.mxu1 }
 0x302   : > { %1909 = vst.msk [vmem:[%s6247_s3 + $0xd8] sm:$0xff] %vm1882_vm4, %v1824_v49  ;;  %v1865_v54 = vadd.f32 %v1781_v25, %v1666_v50  ;;  %v1787_v25 = vld [vmem:[%s6247_s3 + $0x250] sm:$0xff] }
 0x303   : > { %v1668_v55 = vpop.f32.mrf.mxu1 }
 0x304   : > { %1950 = vst [vmem:[%s6247_s3 + $0x220] sm:$0xff] %v1865_v54  ;;  %v1866_v58 = vadd.f32 %v1782_v53, %v1668_v55  ;;  %v1788_v53 = vld [vmem:[%s6247_s3 + $0x258] sm:$0xff] }
 0x305   : > { %v1546_v59 = vpop.f32.mrf.mxu0 }
 0x306   : > { %1951 = vst.msk [vmem:[%s6247_s3 + $0x228] sm:$0xff] %vm1882_vm4, %v1866_v58  ;;  %v1825_v60 = vadd.f32 %v1741_v57, %v1546_v59  ;;  %v1747_v57 = vld [vmem:[%s6247_s3 + $0x110] sm:$0xff] }
 0x307   : > { %v1548_v62 = vpop.f32.mrf.mxu0 }
 0x308   : > { %1910 = vst [vmem:[%s6247_s3 + $0xe0] sm:$0xff] %v1825_v60  ;;  %v1826_v0 = vadd.f32 %v1742_v51, %v1548_v62  ;;  %v1748_v51 = vld [vmem:[%s6247_s3 + $0x118] sm:$0xff] }
 0x309   : > { %v1672_v1 = vpop.f32.mrf.mxu1 }
 0x30a   : > { %1911 = vst.msk [vmem:[%s6247_s3 + $0xe8] sm:$0xff] %vm1882_vm4, %v1826_v0  ;;  %v1867_v3 = vadd.f32 %v1783_v63, %v1672_v1  ;;  %v1789_v63 = vld [vmem:[%s6247_s3 + $0x260] sm:$0xff] }
 0x30b   : > { %v1674_v5 = vpop.f32.mrf.mxu1 }
 0x30c   : > { %1952 = vst [vmem:[%s6247_s3 + $0x230] sm:$0xff] %v1867_v3  ;;  %v1868_v6 = vadd.f32 %v1784_v2, %v1674_v5  ;;  %v1790_v2 = vld [vmem:[%s6247_s3 + $0x268] sm:$0xff] }
 0x30e   : > { %1953 = vst.msk [vmem:[%s6247_s3 + $0x238] sm:$0xff] %vm1882_vm4, %v1868_v6  ;;  %v1552_v8 = vpop.f32.mrf.mxu0  ;;  %v1749_v6 = vld [vmem:[%s6247_s3 + $0x120] sm:$0xff] }
 0x30f   : > { %v1827_v9 = vadd.f32 %v1743_v7, %v1552_v8 }
 0x310   : > { %v1554_v10 = vpop.f32.mrf.mxu0 }
 0x311   : > { %1912 = vst [vmem:[%s6247_s3 + $0xf0] sm:$0xff] %v1827_v9  ;;  %v1828_v13 = vadd.f32 %v1744_v56, %v1554_v10  ;;  %v1750_v56 = vld [vmem:[%s6247_s3 + $0x128] sm:$0xff] }
 0x312   : > { %v1678_v14 = vpop.f32.mrf.mxu1 }
 0x313   : > { %1913 = vst.msk [vmem:[%s6247_s3 + $0xf8] sm:$0xff] %vm1882_vm4, %v1828_v13  ;;  %v1869_v19 = vadd.f32 %v1785_v12, %v1678_v14  ;;  %v1791_v12 = vld [vmem:[%s6247_s3 + $0x270] sm:$0xff] }
 0x314   : > { %v1680_v16 = vpop.f32.mrf.mxu1 }
 0x315   : > { %1954 = vst [vmem:[%s6247_s3 + $0x240] sm:$0xff] %v1869_v19  ;;  %v1870_v20 = vadd.f32 %v1786_v15, %v1680_v16  ;;  %v1792_v15 = vld [vmem:[%s6247_s3 + $0x278] sm:$0xff] }
 0x316   : > { %v1558_v21 = vpop.f32.mrf.mxu0 }
 0x317   : > { %1955 = vst.msk [vmem:[%s6247_s3 + $0x248] sm:$0xff] %vm1882_vm4, %v1870_v20  ;;  %v1829_v23 = vadd.f32 %v1745_v18, %v1558_v21  ;;  %v1751_v18 = vld [vmem:[%s6247_s3 + $0x130] sm:$0xff] }
 0x318   : > { %v1560_v24 = vpop.f32.mrf.mxu0 }
 0x319   : > { %1914 = vst [vmem:[%s6247_s3 + $0x100] sm:$0xff] %v1829_v23  ;;  %v1830_v49 = vadd.f32 %v1746_v22, %v1560_v24  ;;  %v1752_v22 = vld [vmem:[%s6247_s3 + $0x138] sm:$0xff] }
 0x31a   : > { %v1684_v50 = vpop.f32.mrf.mxu1 }
 0x31b   : > { %1915 = vst.msk [vmem:[%s6247_s3 + $0x108] sm:$0xff] %vm1882_vm4, %v1830_v49  ;;  %v1871_v54 = vadd.f32 %v1787_v25, %v1684_v50  ;;  %v1793_v25 = vld [vmem:[%s6247_s3 + $0x280] sm:$0xff] }
 0x31c   : > { %v1686_v55 = vpop.f32.mrf.mxu1 }
 0x31d   : > { %1956 = vst [vmem:[%s6247_s3 + $0x250] sm:$0xff] %v1871_v54  ;;  %v1872_v58 = vadd.f32 %v1788_v53, %v1686_v55  ;;  %v1794_v53 = vld [vmem:[%s6247_s3 + $0x288] sm:$0xff] }
 0x31e   : > { %v1564_v59 = vpop.f32.mrf.mxu0 }
 0x31f   : > { %1957 = vst.msk [vmem:[%s6247_s3 + $0x258] sm:$0xff] %vm1882_vm4, %v1872_v58  ;;  %v1831_v60 = vadd.f32 %v1747_v57, %v1564_v59  ;;  %v1753_v57 = vld [vmem:[%s6247_s3 + $0x140] sm:$0xff] }
 0x320   : > { %v1566_v62 = vpop.f32.mrf.mxu0 }
 0x321   : > { %1916 = vst [vmem:[%s6247_s3 + $0x110] sm:$0xff] %v1831_v60  ;;  %v1832_v0 = vadd.f32 %v1748_v51, %v1566_v62  ;;  %v1754_v51 = vld [vmem:[%s6247_s3 + $0x148] sm:$0xff] }
 0x322   : > { %v1690_v1 = vpop.f32.mrf.mxu1 }
 0x323   : > { %1917 = vst.msk [vmem:[%s6247_s3 + $0x118] sm:$0xff] %vm1882_vm4, %v1832_v0  ;;  %v1873_v3 = vadd.f32 %v1789_v63, %v1690_v1  ;;  %v1795_v63 = vld [vmem:[%s6247_s3 + $0x290] sm:$0xff] }
 0x324   : > { %v1692_v5 = vpop.f32.mrf.mxu1 }
 0x325   : > { %1958 = vst [vmem:[%s6247_s3 + $0x260] sm:$0xff] %v1873_v3  ;;  %v1874_v7 = vadd.f32 %v1790_v2, %v1692_v5  ;;  %v1796_v2 = vld [vmem:[%s6247_s3 + $0x298] sm:$0xff] }
 0x326   : > { %v1570_v8 = vpop.f32.mrf.mxu0 }
 0x327   : > { %1959 = vst.msk [vmem:[%s6247_s3 + $0x268] sm:$0xff] %vm1882_vm4, %v1874_v7  ;;  %v1833_v9 = vadd.f32 %v1749_v6, %v1570_v8 }
 0x328   : > { %v1572_v10 = vpop.f32.mrf.mxu0 }
 0x329   : > { %1918 = vst [vmem:[%s6247_s3 + $0x120] sm:$0xff] %v1833_v9  ;;  %v1834_v13 = vadd.f32 %v1750_v56, %v1572_v10 }
 0x32a   : > { %v1696_v14 = vpop.f32.mrf.mxu1 }
 0x32b   : > { %1919 = vst.msk [vmem:[%s6247_s3 + $0x128] sm:$0xff] %vm1882_vm4, %v1834_v13  ;;  %v1875_v19 = vadd.f32 %v1791_v12, %v1696_v14 }
 0x32c   : > { %v1698_v16 = vpop.f32.mrf.mxu1 }
 0x32d   : > { %1960 = vst [vmem:[%s6247_s3 + $0x270] sm:$0xff] %v1875_v19  ;;  %v1876_v20 = vadd.f32 %v1792_v15, %v1698_v16 }
 0x32e   : > { %v1576_v21 = vpop.f32.mrf.mxu0 }
 0x32f   : > { %1961 = vst.msk [vmem:[%s6247_s3 + $0x278] sm:$0xff] %vm1882_vm4, %v1876_v20  ;;  %v1835_v23 = vadd.f32 %v1751_v18, %v1576_v21 }
 0x330   : > { %v1578_v24 = vpop.f32.mrf.mxu0 }
 0x331   : > { %1920 = vst [vmem:[%s6247_s3 + $0x130] sm:$0xff] %v1835_v23  ;;  %v1836_v49 = vadd.f32 %v1752_v22, %v1578_v24 }
 0x332   : > { %v1702_v50 = vpop.f32.mrf.mxu1 }
 0x333   : > { %1921 = vst.msk [vmem:[%s6247_s3 + $0x138] sm:$0xff] %vm1882_vm4, %v1836_v49  ;;  %v1877_v54 = vadd.f32 %v1793_v25, %v1702_v50 }
 0x334   : > { %v1704_v55 = vpop.f32.mrf.mxu1 }
 0x335   : > { %1962 = vst [vmem:[%s6247_s3 + $0x280] sm:$0xff] %v1877_v54  ;;  %v1878_v58 = vadd.f32 %v1794_v53, %v1704_v55 }
 0x336   : > { %v1582_v59 = vpop.f32.mrf.mxu0 }
 0x337   : > { %1963 = vst.msk [vmem:[%s6247_s3 + $0x288] sm:$0xff] %vm1882_vm4, %v1878_v58  ;;  %v1837_v60 = vadd.f32 %v1753_v57, %v1582_v59 }
 0x338   : > { %v1584_v62 = vpop.f32.mrf.mxu0 }
 0x339   : > { %1922 = vst [vmem:[%s6247_s3 + $0x140] sm:$0xff] %v1837_v60  ;;  %v1838_v0 = vadd.f32 %v1754_v51, %v1584_v62 }
 0x33a   : > { %v1708_v1 = vpop.f32.mrf.mxu1 }
 0x33b   : > { %1923 = vst.msk [vmem:[%s6247_s3 + $0x148] sm:$0xff] %vm1882_vm4, %v1838_v0  ;;  %v1879_v3 = vadd.f32 %v1795_v63, %v1708_v1 }
 0x33c   : > { %v1710_v5 = vpop.f32.mrf.mxu1 }
 0x33d   : > { %1964 = vst [vmem:[%s6247_s3 + $0x290] sm:$0xff] %v1879_v3  ;;  %v1880_v6 = vadd.f32 %v1796_v2, %v1710_v5 }
 0x33f   : > { %1965 = vst.msk [vmem:[%s6247_s3 + $0x298] sm:$0xff] %vm1882_vm4, %v1880_v6 }
 0x340 PF: > { %p3190_p7 = scmp.ne.s32.totalorder %s3366_s12, 2 }
 0x341   : > { %s3379_s6 = smov (!%p3190_p7), 32  }
 0x342   : > { %1969 = sbr.rel (%p3190_p7) target bundleno = 1319 (0x527), region = 44 }
 0x347   : > { %v2012_v7 = vld [vmem:[%s6246_s2 + $0x200] sm:$0xff]  ;;  %v1970_v8 = vld [vmem:[%s6246_s2 + $0x8] sm:$0xff]  ;;  %2438 = vmatprep.subr.mxu0 %v3542_v48  ;;  %3295 = vmatprep.subr.mxu1 %v3542_v48  ;;  %v1971_v9 = vld [vmem:[%s6246_s2 + $0x10] sm:$0xff]  ;;  %vm2306_vm5 = vcmask 261120   ;;  %vm2349_vm6 = vcmask 916480   ;;  %vm2920_vm7 = vcmask 556032  }
 0x348   : > { %2222 = vrot.lane.b32.xlu1 %v2012_v7, %s3379_s6  ;;  %2138 = vrot.lane.b32.xlu0 %v1970_v8, %s3379_s6  ;;  %v2013_v56 = vld [vmem:[%s6246_s2 + $0x208] sm:$0xff]  ;;  %v1987_v12 = vld [vmem:[%s6246_s2 + $0xd0] sm:$0xff] }
 0x349   : > { %2439 = vmatpush1.msra.mxu0 %v3540_v47  ;;  %3309 = vmatpush1.msra.mxu1 %v3540_v47  ;;  %v1973_v48 = vld [vmem:[%s6246_s2 + $0x28] sm:$0xff]  ;;  %v1972_v47 = vld [vmem:[%s6246_s2 + $0x20] sm:$0xff]  ;;  %v2030_v20 = vld [vmem:[%s6246_s2 + $0x2d8] sm:$0xff] }
 0x34a   : > { %2440 = vmatprep.subr.mxu0 %v3538_v46  ;;  %3296 = vmatprep.subr.mxu1 %v3538_v46  ;;  %v2027_v46 = vld [vmem:[%s6246_s2 + $0x2b0] sm:$0xff]  ;;  %v2026_v10 = vld [vmem:[%s6246_s2 + $0x2a8] sm:$0xff]  ;;  %v2028_v15 = vld [vmem:[%s6246_s2 + $0x2c0] sm:$0xff] }
 0x34b   : > { %2441 = vmatpush1.msra.mxu0 %v3536_v45  ;;  %3310 = vmatpush1.msra.mxu1 %v3536_v45  ;;  %v2015_v45 = vld [vmem:[%s6246_s2 + $0x220] sm:$0xff]  ;;  %v1986_v13 = vld [vmem:[%s6246_s2 + $0xc8] sm:$0xff]  ;;  %v1990_v22 = vld [vmem:[%s6246_s2 + $0xf8] sm:$0xff] }
 0x34c   : > { %2224 = vrot.lane.b32.xlu1 %v2013_v56, %s3379_s6  ;;  %2140 = vrot.lane.b32.xlu0 %v1971_v9, %s3379_s6  ;;  %v2029_v14 = vld [vmem:[%s6246_s2 + $0x2c8] sm:$0xff]  ;;  %v1988_v16 = vld [vmem:[%s6246_s2 + $0xe0] sm:$0xff] }
 0x34d   : > { %2442 = vmatprep.subr.mxu0 %v3534_v44  ;;  %3297 = vmatprep.subr.mxu1 %v3534_v44  ;;  %v2014_v44 = vld [vmem:[%s6246_s2 + $0x218] sm:$0xff]  ;;  %v1989_v19 = vld [vmem:[%s6246_s2 + $0xe8] sm:$0xff]  ;;  %v2031_v18 = vld [vmem:[%s6246_s2 + $0x2e0] sm:$0xff] }
 0x34e   : > { %2443 = vmatpush1.msra.mxu0 %v3532_v43  ;;  %3311 = vmatpush1.msra.mxu1 %v3532_v43  ;;  %v1984_v43 = vld [vmem:[%s6246_s2 + $0xb0] sm:$0xff]  ;;  %v1991_v21 = vld [vmem:[%s6246_s2 + $0x100] sm:$0xff]  ;;  %v2033_v23 = vld [vmem:[%s6246_s2 + $0x2f8] sm:$0xff] }
 0x34f   : > { %2444 = vmatprep.subr.mxu0 %v3530_v41  ;;  %3298 = vmatprep.subr.mxu1 %v3530_v41  ;;  %v1975_v41 = vld [vmem:[%s6246_s2 + $0x40] sm:$0xff]  ;;  %v2032_v24 = vld [vmem:[%s6246_s2 + $0x2f0] sm:$0xff]  ;;  %v1993_v25 = vld [vmem:[%s6246_s2 + $0x118] sm:$0xff] }
 0x350   : > { %2144 = vrot.lane.b32.xlu1 %v1973_v48, %s3379_s6  ;;  %2142 = vrot.lane.b32.xlu0 %v1972_v47, %s3379_s6  ;;  %v1992_v49 = vld [vmem:[%s6246_s2 + $0x110] sm:$0xff]  ;;  %v2034_v53 = vld [vmem:[%s6246_s2 + $0x308] sm:$0xff] }
 0x351   : > { %2445 = vmatpush1.msra.mxu0 %v3528_v40  ;;  %3312 = vmatpush1.msra.mxu1 %v3528_v40  ;;  %v1974_v40 = vld [vmem:[%s6246_s2 + $0x38] sm:$0xff]  ;;  %v2035_v50 = vld [vmem:[%s6246_s2 + $0x310] sm:$0xff]  ;;  %v1994_v55 = vld [vmem:[%s6246_s2 + $0x128] sm:$0xff] }
 0x352   : > { %2446 = vmatprep.subr.mxu0 %v3526_v39  ;;  %3299 = vmatprep.subr.mxu1 %v3526_v39  ;;  %v1985_v39 = vld [vmem:[%s6246_s2 + $0xb8] sm:$0xff]  ;;  %v1995_v54 = vld [vmem:[%s6246_s2 + $0x130] sm:$0xff]  ;;  %v2037_v57 = vld [vmem:[%s6246_s2 + $0x328] sm:$0xff] }
 0x353   : > { %2447 = vmatpush1.msra.mxu0 %v3524_v38  ;;  %3313 = vmatpush1.msra.mxu1 %v3524_v38  ;;  %v2017_v38 = vld [vmem:[%s6246_s2 + $0x238] sm:$0xff]  ;;  %v2036_v58 = vld [vmem:[%s6246_s2 + $0x320] sm:$0xff]  ;;  %v1997_v59 = vld [vmem:[%s6246_s2 + $0x148] sm:$0xff] }
 0x354   : > { %2228 = vrot.lane.b32.xlu1 %v2015_v45, %s3379_s6  ;;  %2226 = vrot.lane.b32.xlu0 %v2014_v44, %s3379_s6  ;;  %v1996_v51 = vld [vmem:[%s6246_s2 + $0x140] sm:$0xff]  ;;  %v2038_v62 = vld [vmem:[%s6246_s2 + $0x338] sm:$0xff] }
 0x355   : > { %2448 = vmatprep.subr.mxu0 %v3522_v37  ;;  %3300 = vmatprep.subr.mxu1 %v3522_v37  ;;  %v2016_v37 = vld [vmem:[%s6246_s2 + $0x230] sm:$0xff]  ;;  %v2039_v60 = vld [vmem:[%s6246_s2 + $0x340] sm:$0xff]  ;;  %v1998_v0 = vld [vmem:[%s6246_s2 + $0x158] sm:$0xff] }
 0x356   : > { %2449 = vmatpush1.msra.mxu0 %v3520_v36  ;;  %3314 = vmatpush1.msra.mxu1 %v3520_v36  ;;  %v2024_v36 = vld [vmem:[%s6246_s2 + $0x290] sm:$0xff]  ;;  %v1999_v63 = vld [vmem:[%s6246_s2 + $0x160] sm:$0xff]  ;;  %v2041_v1 = vld [vmem:[%s6246_s2 + $0x358] sm:$0xff] }
 0x357   : > { %2450 = vmatprep.subr.mxu0 %v3518_v35  ;;  %3301 = vmatprep.subr.mxu1 %v3518_v35  ;;  %v1977_v35 = vld [vmem:[%s6246_s2 + $0x58] sm:$0xff]  ;;  %v2040_v2 = vld [vmem:[%s6246_s2 + $0x350] sm:$0xff] }
 0x358   : > { %2148 = vrot.lane.b32.xlu1 %v1975_v41, %s3379_s6  ;;  %2146 = vrot.lane.b32.xlu0 %v1974_v40, %s3379_s6  ;;  %v2001_v6 = vld [vmem:[%s6246_s2 + $0x178] sm:$0xff]  ;;  %v2000_v56 = vld [vmem:[%s6246_s2 + $0x170] sm:$0xff] }
 0x359   : > { %2451 = vmatpush1.msra.mxu0 %v3516_v34  ;;  %3315 = vmatpush1.msra.mxu1 %v3516_v34  ;;  %v1976_v34 = vld [vmem:[%s6246_s2 + $0x50] sm:$0xff]  ;;  %v2042_v41 = vld [vmem:[%s6246_s2 + $0x368] sm:$0xff] }
 0x35a   : > { %2452 = vmatprep.subr.mxu0 %v3514_v33  ;;  %3302 = vmatprep.subr.mxu1 %v3514_v33  ;;  %v2025_v33 = vld [vmem:[%s6246_s2 + $0x298] sm:$0xff]  ;;  %v2043_v47 = vld [vmem:[%s6246_s2 + $0x370] sm:$0xff] }
 0x35b   : > { %2453 = vmatpush1.msra.mxu0 %v3512_v32  ;;  %3316 = vmatpush1.msra.mxu1 %v3512_v32  ;;  %v2019_v32 = vld [vmem:[%s6246_s2 + $0x250] sm:$0xff] }
 0x35c   : > { %2232 = vrot.lane.b32.xlu1 %v2017_v38, %s3379_s6  ;;  %2230 = vrot.lane.b32.xlu0 %v2016_v37, %s3379_s6  ;;  %v2003_v38 = vld [vmem:[%s6246_s2 + $0x190] sm:$0xff] }
 0x35d   : > { %2454 = vmatprep.subr.mxu0 %v3510_v31  ;;  %3303 = vmatprep.subr.mxu1 %v3510_v31  ;;  %v2018_v31 = vld [vmem:[%s6246_s2 + $0x248] sm:$0xff] }
 0x35e   : > { %2455 = vmatpush1.msra.mxu0 %v3508_v30  ;;  %3317 = vmatpush1.msra.mxu1 %v3508_v30  ;;  %v1982_v30 = vld [vmem:[%s6246_s2 + $0x98] sm:$0xff] }
 0x35f   : > { %2456 = vmatprep.subr.mxu0 %v3506_v29  ;;  %3304 = vmatprep.subr.mxu1 %v3506_v29  ;;  %v1979_v29 = vld [vmem:[%s6246_s2 + $0x70] sm:$0xff] }
 0x360   : > { %2152 = vrot.lane.b32.xlu1 %v1977_v35, %s3379_s6  ;;  %2150 = vrot.lane.b32.xlu0 %v1976_v34, %s3379_s6  ;;  %v2002_v34 = vld [vmem:[%s6246_s2 + $0x188] sm:$0xff] }
 0x361   : > { %2457 = vmatpush1.msra.mxu0 %v3504_v28  ;;  %3318 = vmatpush1.msra.mxu1 %v3504_v28  ;;  %v1978_v28 = vld [vmem:[%s6246_s2 + $0x68] sm:$0xff] }
 0x362   : > { %2458 = vmatprep.subr.mxu0 %v3502_v26  ;;  %3305 = vmatprep.subr.mxu1 %v3502_v26  ;;  %v1983_v26 = vld [vmem:[%s6246_s2 + $0xa0] sm:$0xff] }
 0x363   : > { %2459 = vmatpush1.msra.mxu0 %v3500_v27  ;;  %3319 = vmatpush1.msra.mxu1 %v3500_v27  ;;  %v2021_v27 = vld [vmem:[%s6246_s2 + $0x268] sm:$0xff] }
 0x364   : > { %2236 = vrot.lane.b32.xlu1 %v2019_v32, %s3379_s6  ;;  %2234 = vrot.lane.b32.xlu0 %v2018_v31, %s3379_s6  ;;  %v2045_v31 = vld [vmem:[%s6246_s2 + $0x388] sm:$0xff] }
 0x365   : > { %2460 = vmatprep.subr.mxu0 %v3496_v17  ;;  %3306 = vmatprep.subr.mxu1 %v3496_v17  ;;  %v2020_v17 = vld [vmem:[%s6246_s2 + $0x260] sm:$0xff] }
 0x366   : > { %2461 = vmatpush1.msra.mxu0 %v3491_v11  ;;  %3320 = vmatpush1.msra.mxu1 %v3491_v11  ;;  %v3380_v11 = vmov 0.0  }
 0x367   : > { %2462 = vmatprep.subr.mxu0 %v3486_v4  ;;  %3307 = vmatprep.subr.mxu1 %v3486_v4  ;;  %v1981_v4 = vld [vmem:[%s6246_s2 + $0x88] sm:$0xff] }
 0x368   : > { %2156 = vrot.lane.b32.xlu1 %v1979_v29, %s3379_s6  ;;  %2154 = vrot.lane.b32.xlu0 %v1978_v28, %s3379_s6 }
 0x369   : > { %2463 = vmatpush1.msra.mxu0 %v3481_v61  ;;  %3321 = vmatpush1.msra.mxu1 %v3481_v61  ;;  %v1980_v61 = vld [vmem:[%s6246_s2 + $0x80] sm:$0xff] }
 0x36a   : > { %2464 = vmatprep.subr.mxu0 %v3474_v52  ;;  %3308 = vmatprep.subr.mxu1 %v3474_v52  ;;  %v2022_v52 = vld [vmem:[%s6246_s2 + $0x278] sm:$0xff] }
 0x36b   : > { %2465 = vmatpush1.msra.mxu0 %v3466_v42  ;;  %3322 = vmatpush1.msra.mxu1 %v3466_v42  ;;  %v2023_v42 = vld [vmem:[%s6246_s2 + $0x280] sm:$0xff] }
 0x36c   : > { %2240 = vrot.lane.b32.xlu1 %v2021_v27, %s3379_s6  ;;  %2238 = vrot.lane.b32.xlu0 %v2020_v17, %s3379_s6  ;;  %v2044_v27 = vld [vmem:[%s6246_s2 + $0x380] sm:$0xff] }
 0x36d   : > { %2498 = vmatprep.mubr.f32.mxu0 %v3380_v11  ;;  %2624 = vmatprep.mubr.f32.mxu1 %v3380_v11 }
 0x370   : > { %2160 = vrot.lane.b32.xlu1 %v1981_v4, %s3379_s6  ;;  %2158 = vrot.lane.b32.xlu0 %v1980_v61, %s3379_s6  ;;  %v2005_v4 = vld [vmem:[%s6246_s2 + $0x1a8] sm:$0xff] }
 0x374   : > { %2244 = vrot.lane.b32.xlu1 %v2023_v42, %s3379_s6  ;;  %2242 = vrot.lane.b32.xlu0 %v2022_v52, %s3379_s6  ;;  %v2004_v52 = vld [vmem:[%s6246_s2 + $0x1a0] sm:$0xff] }
 0x378   : > { %2164 = vrot.lane.b32.xlu1 %v1983_v26, %s3379_s6  ;;  %2162 = vrot.lane.b32.xlu0 %v1982_v30, %s3379_s6  ;;  %v2047_v30 = vld [vmem:[%s6246_s2 + $0x3a0] sm:$0xff] }
 0x37c   : > { %2248 = vrot.lane.b32.xlu1 %v2025_v33, %s3379_s6  ;;  %2246 = vrot.lane.b32.xlu0 %v2024_v36, %s3379_s6 }
 0x380   : > { %2168 = vrot.lane.b32.xlu1 %v1985_v39, %s3379_s6  ;;  %2166 = vrot.lane.b32.xlu0 %v1984_v43, %s3379_s6  ;;  %v2046_v39 = vld [vmem:[%s6246_s2 + $0x398] sm:$0xff] }
 0x384   : > { %2252 = vrot.lane.b32.xlu1 %v2027_v46, %s3379_s6  ;;  %2250 = vrot.lane.b32.xlu0 %v2026_v10, %s3379_s6  ;;  %v2007_v46 = vld [vmem:[%s6246_s2 + $0x1c0] sm:$0xff] }
 0x388   : > { %2172 = vrot.lane.b32.xlu1 %v1987_v12, %s3379_s6  ;;  %2170 = vrot.lane.b32.xlu0 %v1986_v13, %s3379_s6  ;;  %v2006_v13 = vld [vmem:[%s6246_s2 + $0x1b8] sm:$0xff] }
 0x38c   : > { %2256 = vrot.lane.b32.xlu1 %v2029_v14, %s3379_s6  ;;  %2254 = vrot.lane.b32.xlu0 %v2028_v15, %s3379_s6  ;;  %v2049_v15 = vld [vmem:[%s6246_s2 + $0x3b8] sm:$0xff] }
 0x390   : > { %2176 = vrot.lane.b32.xlu1 %v1989_v19, %s3379_s6  ;;  %2174 = vrot.lane.b32.xlu0 %v1988_v16, %s3379_s6 }
 0x394   : > { %2260 = vrot.lane.b32.xlu1 %v2031_v18, %s3379_s6  ;;  %2258 = vrot.lane.b32.xlu0 %v2030_v20, %s3379_s6  ;;  %v2048_v18 = vld [vmem:[%s6246_s2 + $0x3b0] sm:$0xff] }
 0x398   : > { %2180 = vrot.lane.b32.xlu1 %v1991_v21, %s3379_s6  ;;  %2178 = vrot.lane.b32.xlu0 %v1990_v22, %s3379_s6  ;;  %v2009_v21 = vld [vmem:[%s6246_s2 + $0x1d8] sm:$0xff] }
 0x39c   : > { %2264 = vrot.lane.b32.xlu1 %v2033_v23, %s3379_s6  ;;  %2262 = vrot.lane.b32.xlu0 %v2032_v24, %s3379_s6  ;;  %v2008_v24 = vld [vmem:[%s6246_s2 + $0x1d0] sm:$0xff] }
 0x3a0   : > { %2184 = vrot.lane.b32.xlu1 %v1993_v25, %s3379_s6  ;;  %2182 = vrot.lane.b32.xlu0 %v1992_v49, %s3379_s6  ;;  %v2051_v49 = vld [vmem:[%s6246_s2 + $0x3d0] sm:$0xff] }
 0x3a4   : > { %2268 = vrot.lane.b32.xlu1 %v2035_v50, %s3379_s6  ;;  %2266 = vrot.lane.b32.xlu0 %v2034_v53, %s3379_s6 }
 0x3a8   : > { %2188 = vrot.lane.b32.xlu1 %v1995_v54, %s3379_s6  ;;  %2186 = vrot.lane.b32.xlu0 %v1994_v55, %s3379_s6  ;;  %v2050_v54 = vld [vmem:[%s6246_s2 + $0x3c8] sm:$0xff] }
 0x3ac   : > { %2272 = vrot.lane.b32.xlu1 %v2037_v57, %s3379_s6  ;;  %2270 = vrot.lane.b32.xlu0 %v2036_v58, %s3379_s6  ;;  %v2011_v57 = vld [vmem:[%s6246_s2 + $0x1f0] sm:$0xff] }
 0x3b0   : > { %2192 = vrot.lane.b32.xlu1 %v1997_v59, %s3379_s6  ;;  %2190 = vrot.lane.b32.xlu0 %v1996_v51, %s3379_s6  ;;  %v2010_v51 = vld [vmem:[%s6246_s2 + $0x1e8] sm:$0xff] }
 0x3b4   : > { %2276 = vrot.lane.b32.xlu1 %v2039_v60, %s3379_s6  ;;  %2274 = vrot.lane.b32.xlu0 %v2038_v62, %s3379_s6  ;;  %v2053_v62 = vld [vmem:[%s6246_s2 + $0x3e8] sm:$0xff] }
 0x3b8   : > { %2196 = vrot.lane.b32.xlu1 %v1999_v63, %s3379_s6  ;;  %2194 = vrot.lane.b32.xlu0 %v1998_v0, %s3379_s6 }
 0x3ba   : > { %v2223_v3 = vpop.permute.xlu1 %2222  ;;  %v2139_v5 = vpop.permute.xlu0 %2138 }
 0x3bc   : > { %2280 = vrot.lane.b32.xlu1 %v2041_v1, %s3379_s6  ;;  %2278 = vrot.lane.b32.xlu0 %v2040_v2, %s3379_s6  ;;  %v2052_v1 = vld [vmem:[%s6246_s2 + $0x3e0] sm:$0xff] }
 0x3be   : > { %v2225_v7 = vpop.permute.xlu1 %2224  ;;  %v2141_v8 = vpop.permute.xlu0 %2140 }
 0x3bf   : > { %v2328_v9 = vsel %vm2306_vm5, %v2223_v3, %v2225_v7  ;;  %v2307_v48 = vsel %vm2306_vm5, %v2139_v5, %v2141_v8 }
 0x3c0   : > { %3212 = vmatmul.mubr.msk.f32.vlgmr.msra.gmra.mxu1 %vm2349_vm6, %v2328_v9  ;;  %2200 = vrot.lane.b32.xlu1 %v2001_v6, %s3379_s6 }
 0x3c1   : > { %2198 = vrot.lane.b32.xlu0 %v2000_v56, %s3379_s6  ;;  %3191 = vmatmul.mubr.msk.f32.vlgmr.msra.gmra.mxu0 %vm2349_vm6, %v2307_v48 }
 0x3c2   : > { %v2145_v45 = vpop.permute.xlu1 %2144  ;;  %v2143_v44 = vpop.permute.xlu0 %2142  ;;  %2504 = vmatprep.mubr.f32.mxu0 %v3380_v11  ;;  %2630 = vmatprep.mubr.f32.mxu1 %v3380_v11 }
 0x3c3   : > { %v2308_v40 = vsel %vm2306_vm5, %v2143_v44, %v2145_v45 }
 0x3c4   : > { %2284 = vrot.lane.b32.xlu1 %v2043_v47, %s3379_s6 }
 0x3c5   : > { %2282 = vrot.lane.b32.xlu0 %v2042_v41, %s3379_s6  ;;  %3192 = vmatmul.mubr.msk.f32.gmra.mxu0 %vm2349_vm6, %v2308_v40 }
 0x3c6   : > { %v2229_v37 = vpop.permute.xlu1 %2228  ;;  %v2227_v35 = vpop.permute.xlu0 %2226  ;;  %2510 = vmatprep.mubr.f32.mxu0 %v3380_v11 }
 0x3c7   : > { %v2329_v32 = vsel %vm2306_vm5, %v2227_v35, %v2229_v37 }
 0x3c8   : > { %2204 = vrot.lane.b32.xlu1 %v2003_v38, %s3379_s6  ;;  %3213 = vmatmul.mubr.msk.f32.gmra.mxu1 %vm2349_vm6, %v2329_v32 }
 0x3c9   : > { %2202 = vrot.lane.b32.xlu0 %v2002_v34, %s3379_s6  ;;  %2636 = vmatprep.mubr.f32.mxu1 %v3380_v11 }
 0x3ca   : > { %v2149_v29 = vpop.permute.xlu1 %2148  ;;  %v2147_v28 = vpop.permute.xlu0 %2146 }
 0x3cb   : > { %v2309_v17 = vsel %vm2306_vm5, %v2147_v28, %v2149_v29 }
 0x3cc   : > { %2288 = vrot.lane.b32.xlu1 %v2045_v31, %s3379_s6  ;;  %3193 = vmatmul.mubr.msk.f32.gmra.mxu0 %vm2349_vm6, %v2309_v17 }
 0x3cd   : > { %2286 = vrot.lane.b32.xlu0 %v2044_v27, %s3379_s6  ;;  %2516 = vmatprep.mubr.f32.mxu0 %v3380_v11 }
 0x3ce   : > { %v2233_v61 = vpop.permute.xlu1 %2232  ;;  %v2231_v42 = vpop.permute.xlu0 %2230 }
 0x3cf   : > { %v2330_v26 = vsel %vm2306_vm5, %v2231_v42, %v2233_v61 }
 0x3d0   : > { %2208 = vrot.lane.b32.xlu1 %v2005_v4, %s3379_s6  ;;  %3214 = vmatmul.mubr.msk.f32.gmra.mxu1 %vm2349_vm6, %v2330_v26 }
 0x3d1   : > { %2206 = vrot.lane.b32.xlu0 %v2004_v52, %s3379_s6  ;;  %2642 = vmatprep.mubr.f32.mxu1 %v3380_v11 }
 0x3d2   : > { %v2153_v33 = vpop.permute.xlu1 %2152  ;;  %v2151_v36 = vpop.permute.xlu0 %2150 }
 0x3d3   : > { %v2310_v43 = vsel %vm2306_vm5, %v2151_v36, %v2153_v33 }
 0x3d4   : > { %2292 = vrot.lane.b32.xlu1 %v2047_v30, %s3379_s6  ;;  %3194 = vmatmul.mubr.msk.f32.gmra.mxu0 %vm2349_vm6, %v2310_v43 }
 0x3d5   : > { %2290 = vrot.lane.b32.xlu0 %v2046_v39, %s3379_s6  ;;  %2522 = vmatprep.mubr.f32.mxu0 %v3380_v11 }
 0x3d6   : > { %v2237_v10 = vpop.permute.xlu1 %2236  ;;  %v2235_v12 = vpop.permute.xlu0 %2234 }
 0x3d7   : > { %v2331_v14 = vsel %vm2306_vm5, %v2235_v12, %v2237_v10 }
 0x3d8   : > { %2212 = vrot.lane.b32.xlu1 %v2007_v46, %s3379_s6  ;;  %3215 = vmatmul.mubr.msk.f32.gmra.mxu1 %vm2349_vm6, %v2331_v14 }
 0x3d9   : > { %2210 = vrot.lane.b32.xlu0 %v2006_v13, %s3379_s6  ;;  %2648 = vmatprep.mubr.f32.mxu1 %v3380_v11 }
 0x3da   : > { %v2157_v19 = vpop.permute.xlu1 %2156  ;;  %v2155_v16 = vpop.permute.xlu0 %2154 }
 0x3db   : > { %v2311_v20 = vsel %vm2306_vm5, %v2155_v16, %v2157_v19 }
 0x3dc   : > { %2296 = vrot.lane.b32.xlu1 %v2049_v15, %s3379_s6  ;;  %3195 = vmatmul.mubr.msk.f32.gmra.mxu0 %vm2349_vm6, %v2311_v20 }
 0x3dd   : > { %2294 = vrot.lane.b32.xlu0 %v2048_v18, %s3379_s6  ;;  %2528 = vmatprep.mubr.f32.mxu0 %v3380_v11 }
 0x3de   : > { %v2241_v22 = vpop.permute.xlu1 %2240  ;;  %v2239_v23 = vpop.permute.xlu0 %2238 }
 0x3df   : > { %v2332_v25 = vsel %vm2306_vm5, %v2239_v23, %v2241_v22 }
 0x3e0   : > { %2216 = vrot.lane.b32.xlu1 %v2009_v21, %s3379_s6  ;;  %3216 = vmatmul.mubr.msk.f32.gmra.mxu1 %vm2349_vm6, %v2332_v25 }
 0x3e1   : > { %2214 = vrot.lane.b32.xlu0 %v2008_v24, %s3379_s6  ;;  %2654 = vmatprep.mubr.f32.mxu1 %v3380_v11 }
 0x3e2   : > { %v2161_v50 = vpop.permute.xlu1 %2160  ;;  %v2159_v53 = vpop.permute.xlu0 %2158 }
 0x3e3   : > { %v2312_v55 = vsel %vm2306_vm5, %v2159_v53, %v2161_v50 }
 0x3e4   : > { %2300 = vrot.lane.b32.xlu1 %v2051_v49, %s3379_s6  ;;  %3196 = vmatmul.mubr.msk.f32.gmra.mxu0 %vm2349_vm6, %v2312_v55 }
 0x3e5   : > { %2298 = vrot.lane.b32.xlu0 %v2050_v54, %s3379_s6  ;;  %2534 = vmatprep.mubr.f32.mxu0 %v3380_v11 }
 0x3e6   : > { %v2245_v58 = vpop.permute.xlu1 %2244  ;;  %v2243_v59 = vpop.permute.xlu0 %2242 }
 0x3e7   : > { %v2333_v60 = vsel %vm2306_vm5, %v2243_v59, %v2245_v58 }
 0x3e8   : > { %2220 = vrot.lane.b32.xlu1 %v2011_v57, %s3379_s6  ;;  %3217 = vmatmul.mubr.msk.f32.gmra.mxu1 %vm2349_vm6, %v2333_v60 }
 0x3e9   : > { %2218 = vrot.lane.b32.xlu0 %v2010_v51, %s3379_s6  ;;  %2660 = vmatprep.mubr.f32.mxu1 %v3380_v11 }
 0x3ea   : > { %v2165_v63 = vpop.permute.xlu1 %2164  ;;  %v2163_v0 = vpop.permute.xlu0 %2162 }
 0x3eb   : > { %v2313_v2 = vsel %vm2306_vm5, %v2163_v0, %v2165_v63 }
 0x3ec   : > { %2304 = vrot.lane.b32.xlu1 %v2053_v62, %s3379_s6  ;;  %3197 = vmatmul.mubr.msk.f32.gmra.mxu0 %vm2349_vm6, %v2313_v2 }
 0x3ed   : > { %2302 = vrot.lane.b32.xlu0 %v2052_v1, %s3379_s6  ;;  %2540 = vmatprep.mubr.f32.mxu0 %v3380_v11 }
 0x3ee   : > { %v2249_v3 = vpop.permute.xlu1 %2248  ;;  %v2247_v5 = vpop.permute.xlu0 %2246 }
 0x3ef   : > { %v2334_v6 = vsel %vm2306_vm5, %v2247_v5, %v2249_v3 }
 0x3f0   : > { %3218 = vmatmul.mubr.msk.f32.gmra.mxu1 %vm2349_vm6, %v2334_v6 }
 0x3f1   : > { %2666 = vmatprep.mubr.f32.mxu1 %v3380_v11 }
 0x3f2   : > { %v2169_v7 = vpop.permute.xlu1 %2168  ;;  %v2167_v8 = vpop.permute.xlu0 %2166 }
 0x3f3   : > { %v2314_v56 = vsel %vm2306_vm5, %v2167_v8, %v2169_v7 }
 0x3f4   : > { %3198 = vmatmul.mubr.msk.f32.gmra.mxu0 %vm2349_vm6, %v2314_v56 }
 0x3f5   : > { %2546 = vmatprep.mubr.f32.mxu0 %v3380_v11 }
 0x3f6   : > { %v2253_v9 = vpop.permute.xlu1 %2252  ;;  %v2251_v48 = vpop.permute.xlu0 %2250 }
 0x3f7   : > { %v2335_v47 = vsel %vm2306_vm5, %v2251_v48, %v2253_v9 }
 0x3f8   : > { %3219 = vmatmul.mubr.msk.f32.gmra.mxu1 %vm2349_vm6, %v2335_v47 }
 0x3f9   : > { %2672 = vmatprep.mubr.f32.mxu1 %v3380_v11 }
 0x3fa   : > { %v2173_v45 = vpop.permute.xlu1 %2172  ;;  %v2171_v44 = vpop.permute.xlu0 %2170 }
 0x3fb   : > { %v2315_v41 = vsel %vm2306_vm5, %v2171_v44, %v2173_v45 }
 0x3fc   : > { %3199 = vmatmul.mubr.msk.f32.gmra.mxu0 %vm2349_vm6, %v2315_v41 }
 0x3fd   : > { %2552 = vmatprep.mubr.f32.mxu0 %v3380_v11 }
 0x3fe   : > { %v2257_v40 = vpop.permute.xlu1 %2256  ;;  %v2255_v38 = vpop.permute.xlu0 %2254 }
 0x3ff   : > { %v2336_v37 = vsel %vm2306_vm5, %v2255_v38, %v2257_v40 }
 0x400   : > { %3220 = vmatmul.mubr.msk.f32.gmra.mxu1 %vm2349_vm6, %v2336_v37 }
 0x401   : > { %2678 = vmatprep.mubr.f32.mxu1 %v3380_v11 }
 0x402   : > { %v2177_v35 = vpop.permute.xlu1 %2176  ;;  %v2175_v34 = vpop.permute.xlu0 %2174 }
 0x403   : > { %v2316_v32 = vsel %vm2306_vm5, %v2175_v34, %v2177_v35 }
 0x404   : > { %3200 = vmatmul.mubr.msk.f32.gmra.mxu0 %vm2349_vm6, %v2316_v32 }
 0x405   : > { %2558 = vmatprep.mubr.f32.mxu0 %v3380_v11 }
 0x406   : > { %v2261_v31 = vpop.permute.xlu1 %2260  ;;  %v2259_v29 = vpop.permute.xlu0 %2258 }
 0x407   : > { %v2337_v28 = vsel %vm2306_vm5, %v2259_v29, %v2261_v31 }
 0x408   : > { %3221 = vmatmul.mubr.msk.f32.gmra.mxu1 %vm2349_vm6, %v2337_v28 }
 0x409   : > { %2684 = vmatprep.mubr.f32.mxu1 %v3380_v11 }
 0x40a   : > { %v2181_v27 = vpop.permute.xlu1 %2180  ;;  %v2179_v17 = vpop.permute.xlu0 %2178 }
 0x40b   : > { %v2317_v4 = vsel %vm2306_vm5, %v2179_v17, %v2181_v27 }
 0x40c   : > { %3201 = vmatmul.mubr.msk.f32.gmra.mxu0 %vm2349_vm6, %v2317_v4 }
 0x40d   : > { %2564 = vmatprep.mubr.f32.mxu0 %v3380_v11 }
 0x40e   : > { %v2265_v61 = vpop.permute.xlu1 %2264  ;;  %v2263_v42 = vpop.permute.xlu0 %2262 }
 0x40f   : > { %v2338_v52 = vsel %vm2306_vm5, %v2263_v42, %v2265_v61  ;;  %v2793_v61 = vld [vmem:[%s6247_s3 + $0x150] sm:$0xff]  ;;  %v2751_v42 = vld [vmem:[%s6247_s3] sm:$0xff] }
 0x410   : > { %3222 = vmatmul.mubr.msk.f32.gmra.mxu1 %vm2349_vm6, %v2338_v52  ;;  %v2794_v52 = vld [vmem:[%s6247_s3 + $0x158] sm:$0xff] }
 0x411   : > { %2690 = vmatprep.mubr.f32.mxu1 %v3380_v11 }
 0x412   : > { %v2185_v26 = vpop.permute.xlu1 %2184  ;;  %v2183_v30 = vpop.permute.xlu0 %2182 }
 0x413   : > { %v2318_v33 = vsel %vm2306_vm5, %v2183_v30, %v2185_v26 }
 0x414   : > { %3202 = vmatmul.mubr.msk.f32.gmra.mxu0 %vm2349_vm6, %v2318_v33  ;;  %v2752_v33 = vld [vmem:[%s6247_s3 + $0x8] sm:$0xff] }
 0x415   : > { %2570 = vmatprep.mubr.f32.mxu0 %v3380_v11 }
 0x416   : > { %v2269_v36 = vpop.permute.xlu1 %2268  ;;  %v2267_v39 = vpop.permute.xlu0 %2266 }
 0x417   : > { %v2339_v43 = vsel %vm2306_vm5, %v2267_v39, %v2269_v36 }
 0x418   : > { %3223 = vmatmul.mubr.msk.f32.gmra.mxu1 %vm2349_vm6, %v2339_v43 }
 0x419   : > { %2696 = vmatprep.mubr.f32.mxu1 %v3380_v11 }
 0x41a   : > { %v2189_v46 = vpop.permute.xlu1 %2188  ;;  %v2187_v10 = vpop.permute.xlu0 %2186 }
 0x41b   : > { %v2319_v12 = vsel %vm2306_vm5, %v2187_v10, %v2189_v46  ;;  %v2753_v10 = vld [vmem:[%s6247_s3 + $0x10] sm:$0xff] }
 0x41c   : > { %3203 = vmatmul.mubr.msk.f32.gmra.mxu0 %vm2349_vm6, %v2319_v12 }
 0x41d   : > { %2576 = vmatprep.mubr.f32.mxu0 %v3380_v11 }
 0x41e   : > { %v2273_v13 = vpop.permute.xlu1 %2272  ;;  %v2271_v14 = vpop.permute.xlu0 %2270 }
 0x41f   : > { %v2340_v15 = vsel %vm2306_vm5, %v2271_v14, %v2273_v13  ;;  %v2754_v14 = vld [vmem:[%s6247_s3 + $0x18] sm:$0xff] }
 0x420   : > { %3224 = vmatmul.mubr.msk.f32.gmra.mxu1 %vm2349_vm6, %v2340_v15 }
 0x421   : > { %2702 = vmatprep.mubr.f32.mxu1 %v3380_v11 }
 0x422   : > { %v2193_v19 = vpop.permute.xlu1 %2192  ;;  %v2191_v16 = vpop.permute.xlu0 %2190 }
 0x423   : > { %v2320_v18 = vsel %vm2306_vm5, %v2191_v16, %v2193_v19  ;;  %v2795_v19 = vld [vmem:[%s6247_s3 + $0x160] sm:$0xff] }
 0x424   : > { %3204 = vmatmul.mubr.msk.f32.gmra.mxu0 %vm2349_vm6, %v2320_v18 }
 0x425   : > { %2582 = vmatprep.mubr.f32.mxu0 %v3380_v11 }
 0x426   : > { %v2277_v20 = vpop.permute.xlu1 %2276  ;;  %v2275_v21 = vpop.permute.xlu0 %2274 }
 0x427   : > { %v2341_v22 = vsel %vm2306_vm5, %v2275_v21, %v2277_v20  ;;  %v2796_v21 = vld [vmem:[%s6247_s3 + $0x168] sm:$0xff] }
 0x428   : > { %3225 = vmatmul.mubr.msk.f32.gmra.mxu1 %vm2349_vm6, %v2341_v22 }
 0x429   : > { %2708 = vmatprep.mubr.f32.mxu1 %v3380_v11 }
 0x42a   : > { %v2197_v23 = vpop.permute.xlu1 %2196  ;;  %v2195_v24 = vpop.permute.xlu0 %2194 }
 0x42b   : > { %v2321_v25 = vsel %vm2306_vm5, %v2195_v24, %v2197_v23  ;;  %v2755_v24 = vld [vmem:[%s6247_s3 + $0x20] sm:$0xff] }
 0x42c   : > { %3205 = vmatmul.mubr.msk.f32.gmra.mxu0 %vm2349_vm6, %v2321_v25 }
 0x42d   : > { %2588 = vmatprep.mubr.f32.mxu0 %v3380_v11 }
 0x42e   : > { %v2281_v49 = vpop.permute.xlu1 %2280  ;;  %v2279_v50 = vpop.permute.xlu0 %2278 }
 0x42f   : > { %v2342_v53 = vsel %vm2306_vm5, %v2279_v50, %v2281_v49  ;;  %v2756_v50 = vld [vmem:[%s6247_s3 + $0x28] sm:$0xff] }
 0x430   : > { %3226 = vmatmul.mubr.msk.f32.gmra.mxu1 %vm2349_vm6, %v2342_v53 }
 0x431   : > { %2714 = vmatprep.mubr.f32.mxu1 %v3380_v11 }
 0x432   : > { %v2201_v54 = vpop.permute.xlu1 %2200 }
 0x433   : > { %v2199_v55 = vpop.permute.xlu0 %2198 }
 0x434   : > { %v2322_v57 = vsel %vm2306_vm5, %v2199_v55, %v2201_v54  ;;  %v2797_v55 = vld [vmem:[%s6247_s3 + $0x170] sm:$0xff] }
 0x435   : > { %3206 = vmatmul.mubr.msk.f32.gmra.mxu0 %vm2349_vm6, %v2322_v57 }
 0x436   : > { %v2285_v58 = vpop.permute.xlu1 %2284  ;;  %2594 = vmatprep.mubr.f32.mxu0 %v3380_v11 }
 0x437   : > { %v2283_v59 = vpop.permute.xlu0 %2282 }
 0x438   : > { %v2343_v51 = vsel %vm2306_vm5, %v2283_v59, %v2285_v58  ;;  %v2798_v59 = vld [vmem:[%s6247_s3 + $0x178] sm:$0xff] }
 0x439   : > { %3227 = vmatmul.mubr.msk.f32.gmra.mxu1 %vm2349_vm6, %v2343_v51 }
 0x43a   : > { %v2205_v60 = vpop.permute.xlu1 %2204  ;;  %2720 = vmatprep.mubr.f32.mxu1 %v3380_v11 }
 0x43b   : > { %v2203_v62 = vpop.permute.xlu0 %2202 }
 0x43c   : > { %v2323_v63 = vsel %vm2306_vm5, %v2203_v62, %v2205_v60  ;;  %v2757_v62 = vld [vmem:[%s6247_s3 + $0x30] sm:$0xff] }
 0x43d   : > { %3207 = vmatmul.mubr.msk.f32.gmra.mxu0 %vm2349_vm6, %v2323_v63 }
 0x43e   : > { %v2289_v0 = vpop.permute.xlu1 %2288  ;;  %2600 = vmatprep.mubr.f32.mxu0 %v3380_v11 }
 0x43f   : > { %v2287_v1 = vpop.permute.xlu0 %2286 }
 0x440   : > { %v2344_v2 = vsel %vm2306_vm5, %v2287_v1, %v2289_v0  ;;  %v2758_v1 = vld [vmem:[%s6247_s3 + $0x38] sm:$0xff] }
 0x441   : > { %3228 = vmatmul.mubr.msk.f32.gmra.mxu1 %vm2349_vm6, %v2344_v2 }
 0x442   : > { %v2209_v3 = vpop.permute.xlu1 %2208  ;;  %2726 = vmatprep.mubr.f32.mxu1 %v3380_v11 }
 0x443   : > { %v2207_v5 = vpop.permute.xlu0 %2206 }
 0x444   : > { %v2324_v6 = vsel %vm2306_vm5, %v2207_v5, %v2209_v3  ;;  %v2799_v5 = vld [vmem:[%s6247_s3 + $0x180] sm:$0xff] }
 0x445   : > { %3208 = vmatmul.mubr.msk.f32.gmra.mxu0 %vm2349_vm6, %v2324_v6 }
 0x446   : > { %v2293_v7 = vpop.permute.xlu1 %2292  ;;  %2606 = vmatprep.mubr.f32.mxu0 %v3380_v11 }
 0x447   : > { %v2291_v8 = vpop.permute.xlu0 %2290 }
 0x448   : > { %v2345_v56 = vsel %vm2306_vm5, %v2291_v8, %v2293_v7  ;;  %v2800_v8 = vld [vmem:[%s6247_s3 + $0x188] sm:$0xff] }
 0x449   : > { %3229 = vmatmul.mubr.msk.f32.gmra.mxu1 %vm2349_vm6, %v2345_v56 }
 0x44a   : > { %v2213_v9 = vpop.permute.xlu1 %2212  ;;  %2732 = vmatprep.mubr.f32.mxu1 %v3380_v11 }
 0x44b   : > { %v2211_v48 = vpop.permute.xlu0 %2210 }
 0x44c   : > { %v2325_v47 = vsel %vm2306_vm5, %v2211_v48, %v2213_v9  ;;  %v2759_v48 = vld [vmem:[%s6247_s3 + $0x40] sm:$0xff] }
 0x44d   : > { %3209 = vmatmul.mubr.msk.f32.gmra.mxu0 %vm2349_vm6, %v2325_v47 }
 0x44e   : > { %v2297_v45 = vpop.permute.xlu1 %2296  ;;  %2612 = vmatprep.mubr.f32.mxu0 %v3380_v11 }
 0x44f   : > { %v2295_v44 = vpop.permute.xlu0 %2294 }
 0x450   : > { %v2346_v41 = vsel %vm2306_vm5, %v2295_v44, %v2297_v45  ;;  %v2760_v44 = vld [vmem:[%s6247_s3 + $0x48] sm:$0xff] }
 0x451   : > { %3230 = vmatmul.mubr.msk.f32.gmra.mxu1 %vm2349_vm6, %v2346_v41 }
 0x452   : > { %v2217_v40 = vpop.permute.xlu1 %2216  ;;  %2738 = vmatprep.mubr.f32.mxu1 %v3380_v11 }
 0x453   : > { %v2215_v38 = vpop.permute.xlu0 %2214 }
 0x454   : > { %v2326_v37 = vsel %vm2306_vm5, %v2215_v38, %v2217_v40  ;;  %v2801_v38 = vld [vmem:[%s6247_s3 + $0x190] sm:$0xff] }
 0x455   : > { %3210 = vmatmul.mubr.msk.f32.gmra.mxu0 %vm2349_vm6, %v2326_v37 }
 0x456   : > { %v2301_v35 = vpop.permute.xlu1 %2300  ;;  %2618 = vmatprep.mubr.f32.mxu0 %v3380_v11 }
 0x457   : > { %v2299_v34 = vpop.permute.xlu0 %2298 }
 0x458   : > { %v2347_v32 = vsel %vm2306_vm5, %v2299_v34, %v2301_v35  ;;  %v2802_v34 = vld [vmem:[%s6247_s3 + $0x198] sm:$0xff] }
 0x459   : > { %3231 = vmatmul.mubr.msk.f32.gmra.mxu1 %vm2349_vm6, %v2347_v32 }
 0x45a   : > { %v2221_v31 = vpop.permute.xlu1 %2220  ;;  %2744 = vmatprep.mubr.f32.mxu1 %v3380_v11 }
 0x45b   : > { %v2219_v29 = vpop.permute.xlu0 %2218 }
 0x45c   : > { %v2327_v28 = vsel %vm2306_vm5, %v2219_v29, %v2221_v31  ;;  %v2761_v29 = vld [vmem:[%s6247_s3 + $0x50] sm:$0xff] }
 0x45d   : > { %3211 = vmatmul.mubr.msk.f32.gmra.mxu0 %vm2349_vm6, %v2327_v28 }
 0x45e   : > { %v2305_v27 = vpop.permute.xlu1 %2304 }
 0x45f   : > { %v2303_v17 = vpop.permute.xlu0 %2302 }
 0x460   : > { %v2348_v4 = vsel %vm2306_vm5, %v2303_v17, %v2305_v27  ;;  %v2762_v17 = vld [vmem:[%s6247_s3 + $0x58] sm:$0xff] }
 0x461   : > { %3232 = vmatmul.mubr.msk.f32.gmra.mxu1 %vm2349_vm6, %v2348_v4 }
 0x480   : > { %v2626_v11 = vpop.f32.mrf.mxu1 }
 0x481   : > { %v2500_v26 = vpop.f32.mrf.mxu0  ;;  %v2877_v30 = vadd.f32 %v2793_v61, %v2626_v11 }
 0x482   : > { %v2835_v36 = vadd.f32 %v2751_v42, %v2500_v26  ;;  %v2628_v39 = vpop.f32.mrf.mxu1  ;;  %v2803_v42 = vld [vmem:[%s6247_s3 + $0x1a0] sm:$0xff]  ;;  %v2804_v26 = vld [vmem:[%s6247_s3 + $0x1a8] sm:$0xff] }
 0x483   : > { %2962 = vst [vmem:[%s6247_s3 + $0x150] sm:$0xff] %v2877_v30  ;;  %v2502_v43 = vpop.f32.mrf.mxu0  ;;  %v2878_v46 = vadd.f32 %v2794_v52, %v2628_v39 }
 0x484   : > { %2919 = vst [vmem:[%s6247_s3] sm:$0xff] %v2835_v36  ;;  %v2836_v12 = vadd.f32 %v2752_v33, %v2502_v43  ;;  %v2763_v36 = vld [vmem:[%s6247_s3 + $0x60] sm:$0xff] }
 0x485   : > { %2963 = vst.msk [vmem:[%s6247_s3 + $0x158] sm:$0xff] %vm2920_vm7, %v2878_v46  ;;  %v2506_v13 = vpop.f32.mrf.mxu0  ;;  %v2764_v46 = vld [vmem:[%s6247_s3 + $0x68] sm:$0xff] }
 0x486   : > { %2921 = vst.msk [vmem:[%s6247_s3 + $0x8] sm:$0xff] %vm2920_vm7, %v2836_v12  ;;  %v2837_v15 = vadd.f32 %v2753_v10, %v2506_v13  ;;  %v2805_v13 = vld [vmem:[%s6247_s3 + $0x1b0] sm:$0xff] }
 0x487   : > { %v2508_v16 = vpop.f32.mrf.mxu0 }
 0x488   : > { %2922 = vst [vmem:[%s6247_s3 + $0x10] sm:$0xff] %v2837_v15  ;;  %v2838_v18 = vadd.f32 %v2754_v14, %v2508_v16  ;;  %v2632_v20 = vpop.f32.mrf.mxu1 }
 0x489   : > { %v2879_v22 = vadd.f32 %v2795_v19, %v2632_v20  ;;  %v2806_v19 = vld [vmem:[%s6247_s3 + $0x1b8] sm:$0xff]  ;;  %v2765_v20 = vld [vmem:[%s6247_s3 + $0x70] sm:$0xff] }
 0x48a   : > { %2923 = vst.msk [vmem:[%s6247_s3 + $0x18] sm:$0xff] %vm2920_vm7, %v2838_v18  ;;  %v2634_v23 = vpop.f32.mrf.mxu1 }
 0x48b   : > { %2964 = vst [vmem:[%s6247_s3 + $0x160] sm:$0xff] %v2879_v22  ;;  %v2880_v25 = vadd.f32 %v2796_v21, %v2634_v23  ;;  %v2766_v23 = vld [vmem:[%s6247_s3 + $0x78] sm:$0xff] }
 0x48c   : > { %v2512_v49 = vpop.f32.mrf.mxu0 }
 0x48d   : > { %2965 = vst.msk [vmem:[%s6247_s3 + $0x168] sm:$0xff] %vm2920_vm7, %v2880_v25  ;;  %v2839_v53 = vadd.f32 %v2755_v24, %v2512_v49  ;;  %v2807_v49 = vld [vmem:[%s6247_s3 + $0x1c0] sm:$0xff] }
 0x48e   : > { %v2514_v54 = vpop.f32.mrf.mxu0 }
 0x48f   : > { %2924 = vst [vmem:[%s6247_s3 + $0x20] sm:$0xff] %v2839_v53  ;;  %v2840_v57 = vadd.f32 %v2756_v50, %v2514_v54  ;;  %v2808_v54 = vld [vmem:[%s6247_s3 + $0x1c8] sm:$0xff] }
 0x490   : > { %v2638_v58 = vpop.f32.mrf.mxu1 }
 0x491   : > { %2925 = vst.msk [vmem:[%s6247_s3 + $0x28] sm:$0xff] %vm2920_vm7, %v2840_v57  ;;  %v2881_v51 = vadd.f32 %v2797_v55, %v2638_v58  ;;  %v2767_v58 = vld [vmem:[%s6247_s3 + $0x80] sm:$0xff] }
 0x492   : > { %v2640_v60 = vpop.f32.mrf.mxu1 }
 0x493   : > { %2966 = vst [vmem:[%s6247_s3 + $0x170] sm:$0xff] %v2881_v51  ;;  %v2882_v63 = vadd.f32 %v2798_v59, %v2640_v60  ;;  %v2768_v60 = vld [vmem:[%s6247_s3 + $0x88] sm:$0xff] }
 0x494   : > { %v2518_v0 = vpop.f32.mrf.mxu0 }
 0x495   : > { %2967 = vst.msk [vmem:[%s6247_s3 + $0x178] sm:$0xff] %vm2920_vm7, %v2882_v63  ;;  %v2841_v2 = vadd.f32 %v2757_v62, %v2518_v0  ;;  %v2809_v0 = vld [vmem:[%s6247_s3 + $0x1d0] sm:$0xff] }
 0x496   : > { %v2520_v3 = vpop.f32.mrf.mxu0 }
 0x497   : > { %2926 = vst [vmem:[%s6247_s3 + $0x30] sm:$0xff] %v2841_v2  ;;  %v2842_v6 = vadd.f32 %v2758_v1, %v2520_v3  ;;  %v2810_v3 = vld [vmem:[%s6247_s3 + $0x1d8] sm:$0xff] }
 0x498   : > { %v2644_v7 = vpop.f32.mrf.mxu1 }
 0x499   : > { %2927 = vst.msk [vmem:[%s6247_s3 + $0x38] sm:$0xff] %vm2920_vm7, %v2842_v6  ;;  %v2883_v56 = vadd.f32 %v2799_v5, %v2644_v7  ;;  %v2769_v7 = vld [vmem:[%s6247_s3 + $0x90] sm:$0xff] }
 0x49a   : > { %v2646_v9 = vpop.f32.mrf.mxu1 }
 0x49b   : > { %2968 = vst [vmem:[%s6247_s3 + $0x180] sm:$0xff] %v2883_v56  ;;  %v2884_v47 = vadd.f32 %v2800_v8, %v2646_v9  ;;  %v2770_v9 = vld [vmem:[%s6247_s3 + $0x98] sm:$0xff] }
 0x49c   : > { %v2524_v45 = vpop.f32.mrf.mxu0 }
 0x49d   : > { %2969 = vst.msk [vmem:[%s6247_s3 + $0x188] sm:$0xff] %vm2920_vm7, %v2884_v47  ;;  %v2843_v41 = vadd.f32 %v2759_v48, %v2524_v45  ;;  %v2811_v45 = vld [vmem:[%s6247_s3 + $0x1e0] sm:$0xff] }
 0x49e   : > { %v2526_v40 = vpop.f32.mrf.mxu0 }
 0x49f   : > { %2928 = vst [vmem:[%s6247_s3 + $0x40] sm:$0xff] %v2843_v41  ;;  %v2844_v37 = vadd.f32 %v2760_v44, %v2526_v40  ;;  %v2812_v40 = vld [vmem:[%s6247_s3 + $0x1e8] sm:$0xff] }
 0x4a0   : > { %v2650_v35 = vpop.f32.mrf.mxu1 }
 0x4a1   : > { %2929 = vst.msk [vmem:[%s6247_s3 + $0x48] sm:$0xff] %vm2920_vm7, %v2844_v37  ;;  %v2885_v32 = vadd.f32 %v2801_v38, %v2650_v35  ;;  %v2771_v35 = vld [vmem:[%s6247_s3 + $0xa0] sm:$0xff] }
 0x4a2   : > { %v2652_v31 = vpop.f32.mrf.mxu1 }
 0x4a3   : > { %2970 = vst [vmem:[%s6247_s3 + $0x190] sm:$0xff] %v2885_v32  ;;  %v2886_v28 = vadd.f32 %v2802_v34, %v2652_v31  ;;  %v2772_v31 = vld [vmem:[%s6247_s3 + $0xa8] sm:$0xff] }
 0x4a4   : > { %v2530_v27 = vpop.f32.mrf.mxu0 }
 0x4a5   : > { %2971 = vst.msk [vmem:[%s6247_s3 + $0x198] sm:$0xff] %vm2920_vm7, %v2886_v28  ;;  %v2845_v4 = vadd.f32 %v2761_v29, %v2530_v27  ;;  %v2813_v27 = vld [vmem:[%s6247_s3 + $0x1f0] sm:$0xff] }
 0x4a6   : > { %v2532_v61 = vpop.f32.mrf.mxu0 }
 0x4a7   : > { %2930 = vst [vmem:[%s6247_s3 + $0x50] sm:$0xff] %v2845_v4  ;;  %v2846_v11 = vadd.f32 %v2762_v17, %v2532_v61  ;;  %v2814_v61 = vld [vmem:[%s6247_s3 + $0x1f8] sm:$0xff] }
 0x4a8   : > { %v2656_v52 = vpop.f32.mrf.mxu1 }
 0x4a9   : > { %2931 = vst.msk [vmem:[%s6247_s3 + $0x58] sm:$0xff] %vm2920_vm7, %v2846_v11  ;;  %v2887_v30 = vadd.f32 %v2803_v42, %v2656_v52  ;;  %v2773_v52 = vld [vmem:[%s6247_s3 + $0xb0] sm:$0xff] }
 0x4aa   : > { %v2658_v33 = vpop.f32.mrf.mxu1 }
 0x4ab   : > { %2972 = vst [vmem:[%s6247_s3 + $0x1a0] sm:$0xff] %v2887_v30  ;;  %v2888_v39 = vadd.f32 %v2804_v26, %v2658_v33  ;;  %v2774_v33 = vld [vmem:[%s6247_s3 + $0xb8] sm:$0xff] }
 0x4ac   : > { %v2536_v43 = vpop.f32.mrf.mxu0 }
 0x4ad   : > { %2973 = vst.msk [vmem:[%s6247_s3 + $0x1a8] sm:$0xff] %vm2920_vm7, %v2888_v39  ;;  %v2847_v10 = vadd.f32 %v2763_v36, %v2536_v43  ;;  %v2815_v43 = vld [vmem:[%s6247_s3 + $0x200] sm:$0xff] }
 0x4ae   : > { %v2538_v12 = vpop.f32.mrf.mxu0 }
 0x4af   : > { %2932 = vst [vmem:[%s6247_s3 + $0x60] sm:$0xff] %v2847_v10  ;;  %v2848_v14 = vadd.f32 %v2764_v46, %v2538_v12  ;;  %v2816_v12 = vld [vmem:[%s6247_s3 + $0x208] sm:$0xff] }
 0x4b0   : > { %v2662_v15 = vpop.f32.mrf.mxu1 }
 0x4b1   : > { %2933 = vst.msk [vmem:[%s6247_s3 + $0x68] sm:$0xff] %vm2920_vm7, %v2848_v14  ;;  %v2889_v16 = vadd.f32 %v2805_v13, %v2662_v15  ;;  %v2775_v15 = vld [vmem:[%s6247_s3 + $0xc0] sm:$0xff] }
 0x4b2   : > { %v2664_v18 = vpop.f32.mrf.mxu1 }
 0x4b3   : > { %2974 = vst [vmem:[%s6247_s3 + $0x1b0] sm:$0xff] %v2889_v16  ;;  %v2890_v21 = vadd.f32 %v2806_v19, %v2664_v18  ;;  %v2776_v18 = vld [vmem:[%s6247_s3 + $0xc8] sm:$0xff] }
 0x4b4   : > { %v2542_v22 = vpop.f32.mrf.mxu0 }
 0x4b5   : > { %2975 = vst.msk [vmem:[%s6247_s3 + $0x1b8] sm:$0xff] %vm2920_vm7, %v2890_v21  ;;  %v2849_v24 = vadd.f32 %v2765_v20, %v2542_v22  ;;  %v2817_v22 = vld [vmem:[%s6247_s3 + $0x210] sm:$0xff] }
 0x4b6   : > { %v2544_v25 = vpop.f32.mrf.mxu0 }
 0x4b7   : > { %2934 = vst [vmem:[%s6247_s3 + $0x70] sm:$0xff] %v2849_v24  ;;  %v2850_v50 = vadd.f32 %v2766_v23, %v2544_v25  ;;  %v2818_v25 = vld [vmem:[%s6247_s3 + $0x218] sm:$0xff] }
 0x4b8   : > { %v2668_v53 = vpop.f32.mrf.mxu1 }
 0x4b9   : > { %2935 = vst.msk [vmem:[%s6247_s3 + $0x78] sm:$0xff] %vm2920_vm7, %v2850_v50  ;;  %v2891_v55 = vadd.f32 %v2807_v49, %v2668_v53  ;;  %v2777_v53 = vld [vmem:[%s6247_s3 + $0xd0] sm:$0xff] }
 0x4ba   : > { %v2670_v57 = vpop.f32.mrf.mxu1 }
 0x4bb   : > { %2976 = vst [vmem:[%s6247_s3 + $0x1c0] sm:$0xff] %v2891_v55  ;;  %v2892_v59 = vadd.f32 %v2808_v54, %v2670_v57  ;;  %v2778_v57 = vld [vmem:[%s6247_s3 + $0xd8] sm:$0xff] }
 0x4bc   : > { %v2548_v51 = vpop.f32.mrf.mxu0 }
 0x4bd   : > { %2977 = vst.msk [vmem:[%s6247_s3 + $0x1c8] sm:$0xff] %vm2920_vm7, %v2892_v59  ;;  %v2851_v62 = vadd.f32 %v2767_v58, %v2548_v51  ;;  %v2819_v51 = vld [vmem:[%s6247_s3 + $0x220] sm:$0xff] }
 0x4be   : > { %v2550_v63 = vpop.f32.mrf.mxu0 }
 0x4bf   : > { %2936 = vst [vmem:[%s6247_s3 + $0x80] sm:$0xff] %v2851_v62  ;;  %v2852_v1 = vadd.f32 %v2768_v60, %v2550_v63  ;;  %v2820_v63 = vld [vmem:[%s6247_s3 + $0x228] sm:$0xff] }
 0x4c0   : > { %v2674_v2 = vpop.f32.mrf.mxu1 }
 0x4c1   : > { %2937 = vst.msk [vmem:[%s6247_s3 + $0x88] sm:$0xff] %vm2920_vm7, %v2852_v1  ;;  %v2893_v5 = vadd.f32 %v2809_v0, %v2674_v2  ;;  %v2779_v2 = vld [vmem:[%s6247_s3 + $0xe0] sm:$0xff] }
 0x4c2   : > { %v2676_v6 = vpop.f32.mrf.mxu1 }
 0x4c3   : > { %2978 = vst [vmem:[%s6247_s3 + $0x1d0] sm:$0xff] %v2893_v5  ;;  %v2894_v8 = vadd.f32 %v2810_v3, %v2676_v6  ;;  %v2780_v6 = vld [vmem:[%s6247_s3 + $0xe8] sm:$0xff] }
 0x4c4   : > { %v2554_v56 = vpop.f32.mrf.mxu0 }
 0x4c5   : > { %2979 = vst.msk [vmem:[%s6247_s3 + $0x1d8] sm:$0xff] %vm2920_vm7, %v2894_v8  ;;  %v2853_v48 = vadd.f32 %v2769_v7, %v2554_v56  ;;  %v2821_v56 = vld [vmem:[%s6247_s3 + $0x230] sm:$0xff] }
 0x4c6   : > { %v2556_v47 = vpop.f32.mrf.mxu0 }
 0x4c7   : > { %2938 = vst [vmem:[%s6247_s3 + $0x90] sm:$0xff] %v2853_v48  ;;  %v2854_v44 = vadd.f32 %v2770_v9, %v2556_v47  ;;  %v2822_v47 = vld [vmem:[%s6247_s3 + $0x238] sm:$0xff] }
 0x4c8   : > { %v2680_v41 = vpop.f32.mrf.mxu1 }
 0x4c9   : > { %2939 = vst.msk [vmem:[%s6247_s3 + $0x98] sm:$0xff] %vm2920_vm7, %v2854_v44  ;;  %v2895_v38 = vadd.f32 %v2811_v45, %v2680_v41 }
 0x4ca   : > { %v2682_v37 = vpop.f32.mrf.mxu1 }
 0x4cb   : > { %2980 = vst [vmem:[%s6247_s3 + $0x1e0] sm:$0xff] %v2895_v38  ;;  %v2896_v34 = vadd.f32 %v2812_v40, %v2682_v37  ;;  %v2781_v40 = vld [vmem:[%s6247_s3 + $0xf0] sm:$0xff]  ;;  %v2782_v37 = vld [vmem:[%s6247_s3 + $0xf8] sm:$0xff] }
 0x4cc   : > { %v2560_v32 = vpop.f32.mrf.mxu0 }
 0x4cd   : > { %2981 = vst.msk [vmem:[%s6247_s3 + $0x1e8] sm:$0xff] %vm2920_vm7, %v2896_v34  ;;  %v2855_v29 = vadd.f32 %v2771_v35, %v2560_v32  ;;  %v2823_v32 = vld [vmem:[%s6247_s3 + $0x240] sm:$0xff] }
 0x4ce   : > { %v2562_v28 = vpop.f32.mrf.mxu0 }
 0x4cf   : > { %2940 = vst [vmem:[%s6247_s3 + $0xa0] sm:$0xff] %v2855_v29  ;;  %v2856_v17 = vadd.f32 %v2772_v31, %v2562_v28  ;;  %v2824_v28 = vld [vmem:[%s6247_s3 + $0x248] sm:$0xff] }
 0x4d0   : > { %v2686_v4 = vpop.f32.mrf.mxu1 }
 0x4d1   : > { %2941 = vst.msk [vmem:[%s6247_s3 + $0xa8] sm:$0xff] %vm2920_vm7, %v2856_v17  ;;  %v2897_v42 = vadd.f32 %v2813_v27, %v2686_v4  ;;  %v2783_v4 = vld [vmem:[%s6247_s3 + $0x100] sm:$0xff] }
 0x4d2   : > { %v2688_v11 = vpop.f32.mrf.mxu1 }
 0x4d3   : > { %2982 = vst [vmem:[%s6247_s3 + $0x1f0] sm:$0xff] %v2897_v42  ;;  %v2898_v26 = vadd.f32 %v2814_v61, %v2688_v11  ;;  %v2784_v11 = vld [vmem:[%s6247_s3 + $0x108] sm:$0xff] }
 0x4d4   : > { %v2566_v30 = vpop.f32.mrf.mxu0 }
 0x4d5   : > { %2983 = vst.msk [vmem:[%s6247_s3 + $0x1f8] sm:$0xff] %vm2920_vm7, %v2898_v26  ;;  %v2857_v36 = vadd.f32 %v2773_v52, %v2566_v30  ;;  %v2825_v30 = vld [vmem:[%s6247_s3 + $0x250] sm:$0xff] }
 0x4d6   : > { %v2568_v39 = vpop.f32.mrf.mxu0 }
 0x4d7   : > { %2942 = vst [vmem:[%s6247_s3 + $0xb0] sm:$0xff] %v2857_v36  ;;  %v2858_v46 = vadd.f32 %v2774_v33, %v2568_v39  ;;  %v2826_v39 = vld [vmem:[%s6247_s3 + $0x258] sm:$0xff] }
 0x4d8   : > { %v2692_v10 = vpop.f32.mrf.mxu1 }
 0x4d9   : > { %2943 = vst.msk [vmem:[%s6247_s3 + $0xb8] sm:$0xff] %vm2920_vm7, %v2858_v46  ;;  %v2899_v13 = vadd.f32 %v2815_v43, %v2692_v10  ;;  %v2785_v10 = vld [vmem:[%s6247_s3 + $0x110] sm:$0xff] }
 0x4da   : > { %v2694_v14 = vpop.f32.mrf.mxu1 }
 0x4db   : > { %2984 = vst [vmem:[%s6247_s3 + $0x200] sm:$0xff] %v2899_v13  ;;  %v2900_v19 = vadd.f32 %v2816_v12, %v2694_v14  ;;  %v2786_v14 = vld [vmem:[%s6247_s3 + $0x118] sm:$0xff] }
 0x4dc   : > { %v2572_v16 = vpop.f32.mrf.mxu0 }
 0x4dd   : > { %2985 = vst.msk [vmem:[%s6247_s3 + $0x208] sm:$0xff] %vm2920_vm7, %v2900_v19  ;;  %v2859_v20 = vadd.f32 %v2775_v15, %v2572_v16  ;;  %v2827_v16 = vld [vmem:[%s6247_s3 + $0x260] sm:$0xff] }
 0x4de   : > { %v2574_v21 = vpop.f32.mrf.mxu0 }
 0x4df   : > { %2944 = vst [vmem:[%s6247_s3 + $0xc0] sm:$0xff] %v2859_v20  ;;  %v2860_v23 = vadd.f32 %v2776_v18, %v2574_v21  ;;  %v2828_v21 = vld [vmem:[%s6247_s3 + $0x268] sm:$0xff] }
 0x4e0   : > { %v2698_v24 = vpop.f32.mrf.mxu1 }
 0x4e1   : > { %2945 = vst.msk [vmem:[%s6247_s3 + $0xc8] sm:$0xff] %vm2920_vm7, %v2860_v23  ;;  %v2901_v49 = vadd.f32 %v2817_v22, %v2698_v24  ;;  %v2787_v24 = vld [vmem:[%s6247_s3 + $0x120] sm:$0xff] }
 0x4e2   : > { %v2700_v50 = vpop.f32.mrf.mxu1 }
 0x4e3   : > { %2986 = vst [vmem:[%s6247_s3 + $0x210] sm:$0xff] %v2901_v49  ;;  %v2902_v54 = vadd.f32 %v2818_v25, %v2700_v50  ;;  %v2788_v50 = vld [vmem:[%s6247_s3 + $0x128] sm:$0xff] }
 0x4e4   : > { %v2578_v55 = vpop.f32.mrf.mxu0 }
 0x4e5   : > { %2987 = vst.msk [vmem:[%s6247_s3 + $0x218] sm:$0xff] %vm2920_vm7, %v2902_v54  ;;  %v2861_v58 = vadd.f32 %v2777_v53, %v2578_v55  ;;  %v2829_v55 = vld [vmem:[%s6247_s3 + $0x270] sm:$0xff] }
 0x4e6   : > { %v2580_v59 = vpop.f32.mrf.mxu0 }
 0x4e7   : > { %2946 = vst [vmem:[%s6247_s3 + $0xd0] sm:$0xff] %v2861_v58  ;;  %v2862_v60 = vadd.f32 %v2778_v57, %v2580_v59  ;;  %v2830_v59 = vld [vmem:[%s6247_s3 + $0x278] sm:$0xff] }
 0x4e8   : > { %v2704_v62 = vpop.f32.mrf.mxu1 }
 0x4e9   : > { %2947 = vst.msk [vmem:[%s6247_s3 + $0xd8] sm:$0xff] %vm2920_vm7, %v2862_v60  ;;  %v2903_v0 = vadd.f32 %v2819_v51, %v2704_v62  ;;  %v2789_v62 = vld [vmem:[%s6247_s3 + $0x130] sm:$0xff] }
 0x4ea   : > { %v2706_v1 = vpop.f32.mrf.mxu1 }
 0x4eb   : > { %2988 = vst [vmem:[%s6247_s3 + $0x220] sm:$0xff] %v2903_v0  ;;  %v2904_v3 = vadd.f32 %v2820_v63, %v2706_v1  ;;  %v2790_v1 = vld [vmem:[%s6247_s3 + $0x138] sm:$0xff] }
 0x4ec   : > { %v2584_v5 = vpop.f32.mrf.mxu0 }
 0x4ed   : > { %2989 = vst.msk [vmem:[%s6247_s3 + $0x228] sm:$0xff] %vm2920_vm7, %v2904_v3  ;;  %v2863_v7 = vadd.f32 %v2779_v2, %v2584_v5  ;;  %v2831_v5 = vld [vmem:[%s6247_s3 + $0x280] sm:$0xff] }
 0x4ee   : > { %v2586_v8 = vpop.f32.mrf.mxu0 }
 0x4ef   : > { %2948 = vst [vmem:[%s6247_s3 + $0xe0] sm:$0xff] %v2863_v7  ;;  %v2864_v9 = vadd.f32 %v2780_v6, %v2586_v8  ;;  %v2832_v8 = vld [vmem:[%s6247_s3 + $0x288] sm:$0xff] }
 0x4f0   : > { %v2710_v48 = vpop.f32.mrf.mxu1 }
 0x4f1   : > { %2949 = vst.msk [vmem:[%s6247_s3 + $0xe8] sm:$0xff] %vm2920_vm7, %v2864_v9  ;;  %v2905_v45 = vadd.f32 %v2821_v56, %v2710_v48  ;;  %v2791_v48 = vld [vmem:[%s6247_s3 + $0x140] sm:$0xff] }
 0x4f2   : > { %v2712_v44 = vpop.f32.mrf.mxu1 }
 0x4f3   : > { %2990 = vst [vmem:[%s6247_s3 + $0x230] sm:$0xff] %v2905_v45  ;;  %v2906_v41 = vadd.f32 %v2822_v47, %v2712_v44  ;;  %v2792_v44 = vld [vmem:[%s6247_s3 + $0x148] sm:$0xff] }
 0x4f5   : > { %2991 = vst.msk [vmem:[%s6247_s3 + $0x238] sm:$0xff] %vm2920_vm7, %v2906_v41  ;;  %v2590_v38 = vpop.f32.mrf.mxu0 }
 0x4f6   : > { %v2865_v35 = vadd.f32 %v2781_v40, %v2590_v38  ;;  %v2833_v38 = vld [vmem:[%s6247_s3 + $0x290] sm:$0xff] }
 0x4f7   : > { %v2592_v34 = vpop.f32.mrf.mxu0 }
 0x4f8   : > { %2950 = vst [vmem:[%s6247_s3 + $0xf0] sm:$0xff] %v2865_v35  ;;  %v2866_v31 = vadd.f32 %v2782_v37, %v2592_v34  ;;  %v2834_v34 = vld [vmem:[%s6247_s3 + $0x298] sm:$0xff] }
 0x4f9   : > { %v2716_v29 = vpop.f32.mrf.mxu1 }
 0x4fa   : > { %2951 = vst.msk [vmem:[%s6247_s3 + $0xf8] sm:$0xff] %vm2920_vm7, %v2866_v31  ;;  %v2907_v27 = vadd.f32 %v2823_v32, %v2716_v29 }
 0x4fb   : > { %v2718_v17 = vpop.f32.mrf.mxu1 }
 0x4fc   : > { %2992 = vst [vmem:[%s6247_s3 + $0x240] sm:$0xff] %v2907_v27  ;;  %v2908_v61 = vadd.f32 %v2824_v28, %v2718_v17 }
 0x4fd   : > { %v2596_v42 = vpop.f32.mrf.mxu0 }
 0x4fe   : > { %2993 = vst.msk [vmem:[%s6247_s3 + $0x248] sm:$0xff] %vm2920_vm7, %v2908_v61  ;;  %v2867_v52 = vadd.f32 %v2783_v4, %v2596_v42 }
 0x4ff   : > { %v2598_v26 = vpop.f32.mrf.mxu0 }
 0x500   : > { %2952 = vst [vmem:[%s6247_s3 + $0x100] sm:$0xff] %v2867_v52  ;;  %v2868_v33 = vadd.f32 %v2784_v11, %v2598_v26 }
 0x501   : > { %v2722_v36 = vpop.f32.mrf.mxu1 }
 0x502   : > { %2953 = vst.msk [vmem:[%s6247_s3 + $0x108] sm:$0xff] %vm2920_vm7, %v2868_v33  ;;  %v2909_v43 = vadd.f32 %v2825_v30, %v2722_v36 }
 0x503   : > { %v2724_v46 = vpop.f32.mrf.mxu1 }
 0x504   : > { %2994 = vst [vmem:[%s6247_s3 + $0x250] sm:$0xff] %v2909_v43  ;;  %v2910_v12 = vadd.f32 %v2826_v39, %v2724_v46 }
 0x505   : > { %v2602_v13 = vpop.f32.mrf.mxu0 }
 0x506   : > { %2995 = vst.msk [vmem:[%s6247_s3 + $0x258] sm:$0xff] %vm2920_vm7, %v2910_v12  ;;  %v2869_v15 = vadd.f32 %v2785_v10, %v2602_v13 }
 0x507   : > { %v2604_v19 = vpop.f32.mrf.mxu0 }
 0x508   : > { %2954 = vst [vmem:[%s6247_s3 + $0x110] sm:$0xff] %v2869_v15  ;;  %v2870_v18 = vadd.f32 %v2786_v14, %v2604_v19 }
 0x509   : > { %v2728_v20 = vpop.f32.mrf.mxu1 }
 0x50a   : > { %2955 = vst.msk [vmem:[%s6247_s3 + $0x118] sm:$0xff] %vm2920_vm7, %v2870_v18  ;;  %v2911_v22 = vadd.f32 %v2827_v16, %v2728_v20 }
 0x50b   : > { %v2730_v23 = vpop.f32.mrf.mxu1 }
 0x50c   : > { %2996 = vst [vmem:[%s6247_s3 + $0x260] sm:$0xff] %v2911_v22  ;;  %v2912_v25 = vadd.f32 %v2828_v21, %v2730_v23 }
 0x50d   : > { %v2608_v49 = vpop.f32.mrf.mxu0 }
 0x50e   : > { %2997 = vst.msk [vmem:[%s6247_s3 + $0x268] sm:$0xff] %vm2920_vm7, %v2912_v25  ;;  %v2871_v53 = vadd.f32 %v2787_v24, %v2608_v49 }
 0x50f   : > { %v2610_v54 = vpop.f32.mrf.mxu0 }
 0x510   : > { %2956 = vst [vmem:[%s6247_s3 + $0x120] sm:$0xff] %v2871_v53  ;;  %v2872_v57 = vadd.f32 %v2788_v50, %v2610_v54 }
 0x511   : > { %v2734_v58 = vpop.f32.mrf.mxu1 }
 0x512   : > { %2957 = vst.msk [vmem:[%s6247_s3 + $0x128] sm:$0xff] %vm2920_vm7, %v2872_v57  ;;  %v2913_v51 = vadd.f32 %v2829_v55, %v2734_v58 }
 0x513   : > { %v2736_v60 = vpop.f32.mrf.mxu1 }
 0x514   : > { %2998 = vst [vmem:[%s6247_s3 + $0x270] sm:$0xff] %v2913_v51  ;;  %v2914_v63 = vadd.f32 %v2830_v59, %v2736_v60 }
 0x515   : > { %v2614_v0 = vpop.f32.mrf.mxu0 }
 0x516   : > { %2999 = vst.msk [vmem:[%s6247_s3 + $0x278] sm:$0xff] %vm2920_vm7, %v2914_v63  ;;  %v2873_v2 = vadd.f32 %v2789_v62, %v2614_v0 }
 0x517   : > { %v2616_v3 = vpop.f32.mrf.mxu0 }
 0x518   : > { %2958 = vst [vmem:[%s6247_s3 + $0x130] sm:$0xff] %v2873_v2  ;;  %v2874_v6 = vadd.f32 %v2790_v1, %v2616_v3 }
 0x519   : > { %v2740_v7 = vpop.f32.mrf.mxu1 }
 0x51a   : > { %2959 = vst.msk [vmem:[%s6247_s3 + $0x138] sm:$0xff] %vm2920_vm7, %v2874_v6  ;;  %v2915_v56 = vadd.f32 %v2831_v5, %v2740_v7 }
 0x51b   : > { %v2742_v9 = vpop.f32.mrf.mxu1 }
 0x51c   : > { %3000 = vst [vmem:[%s6247_s3 + $0x280] sm:$0xff] %v2915_v56  ;;  %v2916_v47 = vadd.f32 %v2832_v8, %v2742_v9 }
 0x51d   : > { %v2620_v45 = vpop.f32.mrf.mxu0 }
 0x51e   : > { %3001 = vst.msk [vmem:[%s6247_s3 + $0x288] sm:$0xff] %vm2920_vm7, %v2916_v47  ;;  %v2875_v41 = vadd.f32 %v2791_v48, %v2620_v45 }
 0x51f   : > { %v2622_v40 = vpop.f32.mrf.mxu0 }
 0x520   : > { %2960 = vst [vmem:[%s6247_s3 + $0x140] sm:$0xff] %v2875_v41  ;;  %v2876_v37 = vadd.f32 %v2792_v44, %v2622_v40 }
 0x521   : > { %v2746_v35 = vpop.f32.mrf.mxu1 }
 0x522   : > { %2961 = vst.msk [vmem:[%s6247_s3 + $0x148] sm:$0xff] %vm2920_vm7, %v2876_v37  ;;  %v2917_v32 = vadd.f32 %v2833_v38, %v2746_v35 }
 0x523   : > { %v2748_v31 = vpop.f32.mrf.mxu1 }
 0x524   : > { %3002 = vst [vmem:[%s6247_s3 + $0x290] sm:$0xff] %v2917_v32  ;;  %v2918_v29 = vadd.f32 %v2834_v34, %v2748_v31 }
 0x526   : > { %3003 = vst.msk [vmem:[%s6247_s3 + $0x298] sm:$0xff] %vm2920_vm7, %v2918_v29 }
 0x527 PF: > { %s13_s14 = sadd.s32 1, %s3374_s14   ;;  %s6248_s12 = smov %s3370_s13 }
 0x528   : > { %p10_p8 = scmp.ge.s32.totalorder %s13_s14, 5   ;;  %s6249_s13 = smov %s6251_s15 }
 0x52a   :  { %12 = sbr.rel (!%p10_p8) target bundleno = 2 (0x2), region = 80 }

// kernel: tpu_custom_call.1
= control target key start
LH: loop header
LB: loop body
LE: loop exit
PB: predicated region body
PF: predicated region fallthrough
CT: control target
= control target key end

     0   :  { %v1373_v3 = vmov 0.0   ;;  %vm480_vm0 = vcmask 654336   ;;  %vm1242_vm1 = vcmask 556032   ;;  %s2720_s0 = inlined_call_operand.vmem [shape: f32[336,196], index: 0, kind: input, shape index: {}]   ;;  %s2721_s1 = inlined_call_operand.vmem [shape: f32[336,196], index: 1, kind: input, shape index: {}]   ;;  %s2722_s2 = inlined_call_operand.vmem [shape: f32[336,336], index: 2, kind: input, shape index: {}]   ;;  %s2723_s3 = inlined_call_operand.vmem [shape: f32[336,196], index: 3, kind: output, shape index: {}]  }
   0x1   :  { %v45_v0 = vld [vmem:[%s2720_s0 + $0xf8] sm:$0xff]  ;;  %v44_v2 = vld [vmem:[%s2720_s0 + $0xf0] sm:$0xff]  ;;  %988 = vmatprep.mubr.f32.mxu1 %v1373_v3  ;;  %v43_v6 = vld [vmem:[%s2720_s0 + $0xe8] sm:$0xff] }
   0x2   :  { %v129_v1 = vld [vmem:[%s2721_s1 + $0xf8] sm:$0xff]  ;;  %v128_v5 = vld [vmem:[%s2721_s1 + $0xf0] sm:$0xff]  ;;  %v127_v7 = vld [vmem:[%s2721_s1 + $0xe8] sm:$0xff] }
   0x3   :  { %v213_v4 = vadd.f32 %v129_v1, %v45_v0  ;;  %v212_v8 = vadd.f32 %v128_v5, %v44_v2  ;;  %v211_v9 = vadd.f32 %v127_v7, %v43_v6  ;;  %v42_v10 = vld [vmem:[%s2720_s0 + $0xe0] sm:$0xff]  ;;  %v41_v12 = vld [vmem:[%s2720_s0 + $0xd8] sm:$0xff]  ;;  %v40_v16 = vld [vmem:[%s2720_s0 + $0xd0] sm:$0xff] }
   0x4   :  { %v126_v11 = vld [vmem:[%s2721_s1 + $0xe0] sm:$0xff]  ;;  %v125_v15 = vld [vmem:[%s2721_s1 + $0xd8] sm:$0xff]  ;;  %v124_v17 = vld [vmem:[%s2721_s1 + $0xd0] sm:$0xff] }
   0x5   :  { %v297_v13 = vmax.f32 %v213_v4, 0.0  ;;  %v210_v14 = vadd.f32 %v126_v11, %v42_v10  ;;  %v296_v18 = vmax.f32 %v212_v8, 0.0  ;;  %v295_v19 = vmax.f32 %v211_v9, 0.0  ;;  %v39_v22 = vld [vmem:[%s2720_s0 + $0xc8] sm:$0xff]  ;;  %v38_v24 = vld [vmem:[%s2720_s0 + $0xc0] sm:$0xff]  ;;  %v37_v28 = vld [vmem:[%s2720_s0 + $0xb8] sm:$0xff] }
   0x6   :  { %v209_v20 = vadd.f32 %v125_v15, %v41_v12  ;;  %v208_v21 = vadd.f32 %v124_v17, %v40_v16  ;;  %v123_v23 = vld [vmem:[%s2721_s1 + $0xc8] sm:$0xff]  ;;  %v122_v27 = vld [vmem:[%s2721_s1 + $0xc0] sm:$0xff]  ;;  %v121_v29 = vld [vmem:[%s2721_s1 + $0xb8] sm:$0xff] }
   0x7   :  { %607 = vmatprep.subr.mxu0 %v297_v13  ;;  %v294_v25 = vmax.f32 %v210_v14, 0.0  ;;  %v207_v26 = vadd.f32 %v123_v23, %v39_v22  ;;  %v206_v32 = vadd.f32 %v122_v27, %v38_v24  ;;  %v205_v33 = vadd.f32 %v121_v29, %v37_v28  ;;  %v36_v34 = vld [vmem:[%s2720_s0 + $0xb0] sm:$0xff]  ;;  %v35_v36 = vld [vmem:[%s2720_s0 + $0xa8] sm:$0xff]  ;;  %v34_v40 = vld [vmem:[%s2720_s0 + $0xa0] sm:$0xff] }
   0x8   :  { %608 = vmatpush1.msra.mxu0 %v296_v18  ;;  %v293_v30 = vmax.f32 %v209_v20, 0.0  ;;  %v292_v31 = vmax.f32 %v208_v21, 0.0  ;;  %v120_v35 = vld [vmem:[%s2721_s1 + $0xb0] sm:$0xff]  ;;  %v119_v39 = vld [vmem:[%s2721_s1 + $0xa8] sm:$0xff]  ;;  %v118_v41 = vld [vmem:[%s2721_s1 + $0xa0] sm:$0xff] }
   0x9   :  { %609 = vmatprep.subr.mxu0 %v295_v19  ;;  %v291_v37 = vmax.f32 %v207_v26, 0.0  ;;  %v204_v38 = vadd.f32 %v120_v35, %v36_v34  ;;  %v290_v42 = vmax.f32 %v206_v32, 0.0  ;;  %v203_v43 = vadd.f32 %v119_v39, %v35_v36  ;;  %v33_v45 = vld [vmem:[%s2720_s0 + $0x98] sm:$0xff]  ;;  %v32_v47 = vld [vmem:[%s2720_s0 + $0x90] sm:$0xff]  ;;  %v31_v51 = vld [vmem:[%s2720_s0 + $0x88] sm:$0xff] }
   0xa   :  { %610 = vmatpush1.msra.mxu0 %v294_v25  ;;  %v202_v44 = vadd.f32 %v118_v41, %v34_v40  ;;  %v117_v46 = vld [vmem:[%s2721_s1 + $0x98] sm:$0xff]  ;;  %v289_v48 = vmax.f32 %v205_v33, 0.0  ;;  %v116_v50 = vld [vmem:[%s2721_s1 + $0x90] sm:$0xff]  ;;  %v115_v52 = vld [vmem:[%s2721_s1 + $0x88] sm:$0xff] }
   0xb   :  { %611 = vmatprep.subr.mxu0 %v293_v30  ;;  %v201_v49 = vadd.f32 %v117_v46, %v33_v45  ;;  %v288_v53 = vmax.f32 %v204_v38, 0.0  ;;  %v200_v54 = vadd.f32 %v116_v50, %v32_v47  ;;  %v30_v55 = vld [vmem:[%s2720_s0 + $0x80] sm:$0xff]  ;;  %v29_v57 = vld [vmem:[%s2720_s0 + $0x78] sm:$0xff]  ;;  %v287_v58 = vmax.f32 %v203_v43, 0.0  ;;  %v28_v61 = vld [vmem:[%s2720_s0 + $0x70] sm:$0xff] }
   0xc   :  { %612 = vmatpush1.msra.mxu0 %v292_v31  ;;  %v114_v56 = vld [vmem:[%s2721_s1 + $0x80] sm:$0xff]  ;;  %v199_v59 = vadd.f32 %v115_v52, %v31_v51  ;;  %v113_v60 = vld [vmem:[%s2721_s1 + $0x78] sm:$0xff]  ;;  %v112_v62 = vld [vmem:[%s2721_s1 + $0x70] sm:$0xff]  ;;  %v286_v63 = vmax.f32 %v202_v44, 0.0 }
   0xd   :  { %613 = vmatprep.subr.mxu0 %v291_v37  ;;  %v198_v0 = vadd.f32 %v114_v56, %v30_v55  ;;  %v27_v1 = vld [vmem:[%s2720_s0 + $0x68] sm:$0xff]  ;;  %v285_v4 = vmax.f32 %v201_v49, 0.0  ;;  %v197_v5 = vadd.f32 %v113_v60, %v29_v57  ;;  %v26_v6 = vld [vmem:[%s2720_s0 + $0x60] sm:$0xff]  ;;  %v284_v8 = vmax.f32 %v200_v54, 0.0  ;;  %v25_v10 = vld [vmem:[%s2720_s0 + $0x58] sm:$0xff] }
   0xe   :  { %614 = vmatpush1.msra.mxu0 %v290_v42  ;;  %v111_v2 = vld [vmem:[%s2721_s1 + $0x68] sm:$0xff]  ;;  %v110_v7 = vld [vmem:[%s2721_s1 + $0x60] sm:$0xff]  ;;  %v196_v9 = vadd.f32 %v112_v62, %v28_v61  ;;  %v109_v11 = vld [vmem:[%s2721_s1 + $0x58] sm:$0xff]  ;;  %v283_v12 = vmax.f32 %v199_v59, 0.0 }
   0xf   :  { %615 = vmatprep.subr.mxu0 %v289_v48  ;;  %v195_v13 = vadd.f32 %v111_v2, %v27_v1  ;;  %v24_v14 = vld [vmem:[%s2720_s0 + $0x50] sm:$0xff]  ;;  %v282_v16 = vmax.f32 %v198_v0, 0.0  ;;  %v194_v17 = vadd.f32 %v110_v7, %v26_v6  ;;  %v23_v18 = vld [vmem:[%s2720_s0 + $0x48] sm:$0xff]  ;;  %v281_v20 = vmax.f32 %v197_v5, 0.0  ;;  %v22_v22 = vld [vmem:[%s2720_s0 + $0x40] sm:$0xff] }
  0x10   :  { %616 = vmatpush1.msra.mxu0 %v288_v53  ;;  %v108_v15 = vld [vmem:[%s2721_s1 + $0x50] sm:$0xff]  ;;  %v107_v19 = vld [vmem:[%s2721_s1 + $0x48] sm:$0xff]  ;;  %v193_v21 = vadd.f32 %v109_v11, %v25_v10  ;;  %v106_v23 = vld [vmem:[%s2721_s1 + $0x40] sm:$0xff]  ;;  %v280_v24 = vmax.f32 %v196_v9, 0.0 }
  0x11   :  { %617 = vmatprep.subr.mxu0 %v287_v58  ;;  %v192_v25 = vadd.f32 %v108_v15, %v24_v14  ;;  %v21_v26 = vld [vmem:[%s2720_s0 + $0x38] sm:$0xff]  ;;  %v279_v28 = vmax.f32 %v195_v13, 0.0  ;;  %v191_v29 = vadd.f32 %v107_v19, %v23_v18  ;;  %v20_v30 = vld [vmem:[%s2720_s0 + $0x30] sm:$0xff]  ;;  %v278_v32 = vmax.f32 %v194_v17, 0.0  ;;  %v19_v34 = vld [vmem:[%s2720_s0 + $0x28] sm:$0xff] }
  0x12   :  { %618 = vmatpush1.msra.mxu0 %v286_v63  ;;  %v105_v27 = vld [vmem:[%s2721_s1 + $0x38] sm:$0xff]  ;;  %v104_v31 = vld [vmem:[%s2721_s1 + $0x30] sm:$0xff]  ;;  %v190_v33 = vadd.f32 %v106_v23, %v22_v22  ;;  %v103_v35 = vld [vmem:[%s2721_s1 + $0x28] sm:$0xff]  ;;  %v277_v36 = vmax.f32 %v193_v21, 0.0 }
  0x13   :  { %619 = vmatprep.subr.mxu0 %v285_v4  ;;  %v189_v37 = vadd.f32 %v105_v27, %v21_v26  ;;  %v18_v38 = vld [vmem:[%s2720_s0 + $0x20] sm:$0xff]  ;;  %v276_v40 = vmax.f32 %v192_v25, 0.0  ;;  %v188_v41 = vadd.f32 %v104_v31, %v20_v30  ;;  %v17_v42 = vld [vmem:[%s2720_s0 + $0x18] sm:$0xff]  ;;  %v275_v44 = vmax.f32 %v191_v29, 0.0  ;;  %v16_v46 = vld [vmem:[%s2720_s0 + $0x10] sm:$0xff] }
  0x14   :  { %620 = vmatpush1.msra.mxu0 %v284_v8  ;;  %v102_v39 = vld [vmem:[%s2721_s1 + $0x20] sm:$0xff]  ;;  %v101_v43 = vld [vmem:[%s2721_s1 + $0x18] sm:$0xff]  ;;  %v187_v45 = vadd.f32 %v103_v35, %v19_v34  ;;  %v100_v47 = vld [vmem:[%s2721_s1 + $0x10] sm:$0xff]  ;;  %v274_v48 = vmax.f32 %v190_v33, 0.0 }
  0x15   :  { %621 = vmatprep.subr.mxu0 %v283_v12  ;;  %v186_v49 = vadd.f32 %v102_v39, %v18_v38  ;;  %v15_v50 = vld [vmem:[%s2720_s0 + $0x8] sm:$0xff]  ;;  %v14_v52 = vld [vmem:[%s2720_s0] sm:$0xff]  ;;  %v273_v53 = vmax.f32 %v189_v37, 0.0  ;;  %v185_v54 = vadd.f32 %v101_v43, %v17_v42  ;;  %v77_v56 = vld [vmem:[%s2720_s0 + $0x1f8] sm:$0xff]  ;;  %v272_v58 = vmax.f32 %v188_v41, 0.0 }
  0x16   :  { %622 = vmatpush1.msra.mxu0 %v282_v16  ;;  %v99_v51 = vld [vmem:[%s2721_s1 + $0x8] sm:$0xff]  ;;  %v98_v55 = vld [vmem:[%s2721_s1] sm:$0xff]  ;;  %v161_v57 = vld [vmem:[%s2721_s1 + $0x1f8] sm:$0xff]  ;;  %v184_v59 = vadd.f32 %v100_v47, %v16_v46  ;;  %v271_v63 = vmax.f32 %v187_v45, 0.0 }
  0x17   :  { %623 = vmatprep.subr.mxu0 %v281_v20  ;;  %v76_v60 = vld [vmem:[%s2720_s0 + $0x1f0] sm:$0xff]  ;;  %v75_v62 = vld [vmem:[%s2720_s0 + $0x1e8] sm:$0xff]  ;;  %v183_v0 = vadd.f32 %v99_v51, %v15_v50  ;;  %v74_v2 = vld [vmem:[%s2720_s0 + $0x1e0] sm:$0xff]  ;;  %v270_v5 = vmax.f32 %v186_v49, 0.0  ;;  %v182_v6 = vadd.f32 %v98_v55, %v14_v52  ;;  %v269_v10 = vmax.f32 %v185_v54, 0.0 }
  0x18   :  { %624 = vmatpush1.msra.mxu0 %v280_v24  ;;  %v160_v61 = vld [vmem:[%s2721_s1 + $0x1f0] sm:$0xff]  ;;  %v159_v1 = vld [vmem:[%s2721_s1 + $0x1e8] sm:$0xff]  ;;  %v158_v4 = vld [vmem:[%s2721_s1 + $0x1e0] sm:$0xff]  ;;  %v1620_v11 = vadd.f32 %v161_v57, %v77_v56  ;;  %v268_v15 = vmax.f32 %v184_v59, 0.0 }
  0x19   :  { %625 = vmatprep.subr.mxu0 %v279_v28  ;;  %v73_v7 = vld [vmem:[%s2720_s0 + $0x1d8] sm:$0xff]  ;;  %v72_v12 = vld [vmem:[%s2720_s0 + $0x1d0] sm:$0xff]  ;;  %v1631_v16 = vadd.f32 %v160_v61, %v76_v60  ;;  %v71_v17 = vld [vmem:[%s2720_s0 + $0x1c8] sm:$0xff]  ;;  %v267_v22 = vmax.f32 %v183_v0, 0.0  ;;  %v1645_v23 = vadd.f32 %v159_v1, %v75_v62  ;;  %v266_v29 = vmax.f32 %v182_v6, 0.0 }
  0x1a   :  { %626 = vmatpush1.msra.mxu0 %v278_v32  ;;  %v157_v8 = vld [vmem:[%s2721_s1 + $0x1d8] sm:$0xff]  ;;  %v156_v13 = vld [vmem:[%s2721_s1 + $0x1d0] sm:$0xff]  ;;  %v155_v18 = vld [vmem:[%s2721_s1 + $0x1c8] sm:$0xff]  ;;  %v1659_v30 = vadd.f32 %v158_v4, %v74_v2 }
  0x1b   :  { %627 = vmatprep.subr.mxu0 %v277_v36  ;;  %v97_v9 = vld [vmem:[%s2720_s0 + $0x298] sm:$0xff]  ;;  %v96_v20 = vld [vmem:[%s2720_s0 + $0x290] sm:$0xff]  ;;  %v70_v24 = vld [vmem:[%s2720_s0 + $0x1c0] sm:$0xff]  ;;  %v329_v36 = vmax.f32 %v1620_v11, 0.0  ;;  %v1671_v37 = vadd.f32 %v157_v8, %v73_v7  ;;  %v328_v42 = vmax.f32 %v1631_v16, 0.0  ;;  %v1683_v43 = vadd.f32 %v156_v13, %v72_v12 }
  0x1c   :  { %628 = vmatpush1.msra.mxu0 %v276_v40  ;;  %v181_v14 = vld [vmem:[%s2721_s1 + $0x298] sm:$0xff]  ;;  %v180_v21 = vld [vmem:[%s2721_s1 + $0x290] sm:$0xff]  ;;  %v154_v25 = vld [vmem:[%s2721_s1 + $0x1c0] sm:$0xff]  ;;  %v327_v50 = vmax.f32 %v1645_v23, 0.0  ;;  %v1698_v51 = vadd.f32 %v155_v18, %v71_v17  ;;  %v326_v57 = vmax.f32 %v1659_v30, 0.0 }
  0x1d   :  { %629 = vmatprep.subr.mxu0 %v275_v44  ;;  %v265_v19 = vadd.f32 %v181_v14, %v97_v9  ;;  %v264_v26 = vadd.f32 %v180_v21, %v96_v20  ;;  %v95_v27 = vld [vmem:[%s2720_s0 + $0x288] sm:$0xff]  ;;  %v69_v31 = vld [vmem:[%s2720_s0 + $0x1b8] sm:$0xff]  ;;  %v94_v35 = vld [vmem:[%s2720_s0 + $0x280] sm:$0xff]  ;;  %v325_v0 = vmax.f32 %v1671_v37, 0.0  ;;  %v324_v7 = vmax.f32 %v1683_v43, 0.0 }
  0x1e   :  { %630 = vmatpush1.msra.mxu0 %v274_v48  ;;  %v179_v28 = vld [vmem:[%s2721_s1 + $0x288] sm:$0xff]  ;;  %v153_v32 = vld [vmem:[%s2721_s1 + $0x1b8] sm:$0xff]  ;;  %v68_v38 = vld [vmem:[%s2720_s0 + $0x1b0] sm:$0xff] }
  0x1f   :  { %631 = vmatprep.subr.mxu0 %v273_v53  ;;  %v349_v33 = vmax.f32 %v265_v19, 0.0  ;;  %v263_v34 = vadd.f32 %v179_v28, %v95_v27  ;;  %v152_v39 = vld [vmem:[%s2721_s1 + $0x1b0] sm:$0xff]  ;;  %v348_v40 = vmax.f32 %v264_v26, 0.0  ;;  %v178_v41 = vld [vmem:[%s2721_s1 + $0x280] sm:$0xff]  ;;  %v67_v44 = vld [vmem:[%s2720_s0 + $0x1a8] sm:$0xff]  ;;  %v1725_v1 = vadd.f32 %v153_v32, %v69_v31 }
  0x20   :  { %632 = vmatpush1.msra.mxu0 %v272_v58  ;;  %v151_v45 = vld [vmem:[%s2721_s1 + $0x1a8] sm:$0xff]  ;;  %v262_v47 = vadd.f32 %v178_v41, %v94_v35  ;;  %v93_v48 = vld [vmem:[%s2720_s0 + $0x278] sm:$0xff]  ;;  %v66_v52 = vld [vmem:[%s2720_s0 + $0x1a0] sm:$0xff]  ;;  %v1713_v58 = vadd.f32 %v154_v25, %v70_v24  ;;  %v1737_v8 = vadd.f32 %v152_v39, %v68_v38 }
  0x21   :  { %633 = vmatprep.subr.mxu0 %v271_v63  ;;  %936 = vmatprep.subr.mxu1 %v349_v33  ;;  %v347_v46 = vmax.f32 %v263_v34, 0.0  ;;  %v177_v49 = vld [vmem:[%s2721_s1 + $0x278] sm:$0xff]  ;;  %v150_v53 = vld [vmem:[%s2721_s1 + $0x1a0] sm:$0xff]  ;;  %v92_v55 = vld [vmem:[%s2720_s0 + $0x270] sm:$0xff]  ;;  %v1752_v16 = vadd.f32 %v151_v45, %v67_v44 }
  0x22   :  { %634 = vmatpush1.msra.mxu0 %v270_v5  ;;  %937 = vmatpush1.msra.mxu1 %v348_v40  ;;  %v261_v54 = vadd.f32 %v177_v49, %v93_v48  ;;  %v176_v56 = vld [vmem:[%s2721_s1 + $0x270] sm:$0xff]  ;;  %v65_v59 = vld [vmem:[%s2720_s0 + $0x198] sm:$0xff]  ;;  %v346_v61 = vmax.f32 %v262_v47, 0.0  ;;  %v91_v63 = vld [vmem:[%s2720_s0 + $0x268] sm:$0xff]  ;;  %v1767_v23 = vadd.f32 %v150_v53, %v66_v52  ;;  %v320_v35 = vmax.f32 %v1737_v8, 0.0 }
  0x23   :  { %635 = vmatprep.subr.mxu0 %v269_v10  ;;  %v149_v60 = vld [vmem:[%s2721_s1 + $0x198] sm:$0xff]  ;;  %938 = vmatprep.subr.mxu1 %v347_v46  ;;  %v260_v62 = vadd.f32 %v176_v56, %v92_v55  ;;  %v64_v2 = vld [vmem:[%s2720_s0 + $0x190] sm:$0xff]  ;;  %v175_v6 = vld [vmem:[%s2721_s1 + $0x268] sm:$0xff]  ;;  %v319_v43 = vmax.f32 %v1752_v16, 0.0 }
  0x24   :  { %636 = vmatpush1.msra.mxu0 %v268_v15  ;;  %v148_v4 = vld [vmem:[%s2721_s1 + $0x190] sm:$0xff]  ;;  %v345_v5 = vmax.f32 %v261_v54, 0.0  ;;  %939 = vmatpush1.msra.mxu1 %v346_v61  ;;  %v63_v9 = vld [vmem:[%s2720_s0 + $0x188] sm:$0xff]  ;;  %v259_v12 = vadd.f32 %v175_v6, %v91_v63  ;;  %v90_v13 = vld [vmem:[%s2720_s0 + $0x260] sm:$0xff]  ;;  %v323_v15 = vmax.f32 %v1698_v51, 0.0  ;;  %v1779_v30 = vadd.f32 %v149_v60, %v65_v59 }
  0x25   :  { %637 = vmatprep.subr.mxu0 %v267_v22  ;;  %v147_v10 = vld [vmem:[%s2721_s1 + $0x188] sm:$0xff]  ;;  %v344_v11 = vmax.f32 %v260_v62, 0.0  ;;  %v174_v14 = vld [vmem:[%s2721_s1 + $0x260] sm:$0xff]  ;;  %v89_v20 = vld [vmem:[%s2720_s0 + $0x258] sm:$0xff]  ;;  %v322_v22 = vmax.f32 %v1713_v58, 0.0 }
  0x26   :  { %638 = vmatpush1.msra.mxu0 %v266_v29  ;;  %940 = vmatprep.subr.mxu1 %v345_v5  ;;  %v62_v17 = vld [vmem:[%s2720_s0 + $0x180] sm:$0xff]  ;;  %v258_v19 = vadd.f32 %v174_v14, %v90_v13  ;;  %v173_v21 = vld [vmem:[%s2721_s1 + $0x258] sm:$0xff]  ;;  %v343_v26 = vmax.f32 %v259_v12, 0.0  ;;  %v88_v28 = vld [vmem:[%s2720_s0 + $0x250] sm:$0xff]  ;;  %v321_v29 = vmax.f32 %v1725_v1, 0.0  ;;  %v1806_v44 = vadd.f32 %v147_v10, %v63_v9 }
  0x27   :  { %639 = vmatprep.subr.mxu0 %v329_v36  ;;  %v146_v18 = vld [vmem:[%s2721_s1 + $0x180] sm:$0xff]  ;;  %941 = vmatpush1.msra.mxu1 %v344_v11  ;;  %v61_v24 = vld [vmem:[%s2720_s0 + $0x178] sm:$0xff]  ;;  %v257_v27 = vadd.f32 %v173_v21, %v89_v20  ;;  %v60_v31 = vld [vmem:[%s2720_s0 + $0x170] sm:$0xff]  ;;  %v1791_v36 = vadd.f32 %v148_v4, %v64_v2 }
  0x28   :  { %640 = vmatpush2.msra.mxu0 %v328_v42  ;;  %v145_v25 = vld [vmem:[%s2721_s1 + $0x178] sm:$0xff]  ;;  %v144_v32 = vld [vmem:[%s2721_s1 + $0x170] sm:$0xff]  ;;  %v342_v33 = vmax.f32 %v258_v19, 0.0  ;;  %942 = vmatprep.subr.mxu1 %v343_v26  ;;  %v59_v37 = vld [vmem:[%s2720_s0 + $0x168] sm:$0xff]  ;;  %v1821_v51 = vadd.f32 %v146_v18, %v62_v17  ;;  %v315_v8 = vmax.f32 %v1806_v44, 0.0 }
  0x29   :  { %641 = vmatprep.subr.mxu0 %v327_v50  ;;  %v172_v34 = vld [vmem:[%s2721_s1 + $0x250] sm:$0xff]  ;;  %v143_v38 = vld [vmem:[%s2721_s1 + $0x168] sm:$0xff]  ;;  %v341_v39 = vmax.f32 %v257_v27, 0.0  ;;  %v58_v45 = vld [vmem:[%s2720_s0 + $0x160] sm:$0xff]  ;;  %v318_v50 = vmax.f32 %v1767_v23, 0.0  ;;  %v1833_v58 = vadd.f32 %v145_v25, %v61_v24  ;;  %v316_v63 = vmax.f32 %v1791_v36, 0.0 }
  0x2a   :  { %642 = vmatpush2.msra.mxu0 %v326_v57  ;;  %v256_v40 = vadd.f32 %v172_v34, %v88_v28  ;;  %v87_v41 = vld [vmem:[%s2720_s0 + $0x248] sm:$0xff]  ;;  %943 = vmatpush1.msra.mxu1 %v342_v33  ;;  %v142_v46 = vld [vmem:[%s2721_s1 + $0x160] sm:$0xff]  ;;  %v57_v53 = vld [vmem:[%s2720_s0 + $0x158] sm:$0xff]  ;;  %v317_v57 = vmax.f32 %v1779_v30, 0.0  ;;  %v1860_v9 = vadd.f32 %v143_v38, %v59_v37  ;;  %v314_v14 = vmax.f32 %v1821_v51, 0.0 }
  0x2b   :  { %643 = vmatprep.subr.mxu0 %v325_v0  ;;  %v171_v42 = vld [vmem:[%s2721_s1 + $0x248] sm:$0xff]  ;;  %v86_v48 = vld [vmem:[%s2720_s0 + $0x240] sm:$0xff]  ;;  %944 = vmatprep.subr.mxu1 %v341_v39  ;;  %v141_v54 = vld [vmem:[%s2721_s1 + $0x158] sm:$0xff]  ;;  %v1845_v0 = vadd.f32 %v144_v32, %v60_v31  ;;  %v313_v21 = vmax.f32 %v1833_v58, 0.0 }
  0x2c   :  { %644 = vmatpush2.msra.mxu0 %v324_v7  ;;  %v255_v47 = vadd.f32 %v171_v42, %v87_v41  ;;  %v170_v49 = vld [vmem:[%s2721_s1 + $0x240] sm:$0xff]  ;;  %v340_v52 = vmax.f32 %v256_v40, 0.0  ;;  %v85_v56 = vld [vmem:[%s2720_s0 + $0x238] sm:$0xff]  ;;  %v56_v60 = vld [vmem:[%s2720_s0 + $0x150] sm:$0xff]  ;;  %v311_v34 = vmax.f32 %v1860_v9, 0.0 }
  0x2d   :  { %645 = vmatprep.subr.mxu0 %v323_v15  ;;  %v254_v55 = vadd.f32 %v170_v49, %v86_v48  ;;  %v140_v61 = vld [vmem:[%s2721_s1 + $0x150] sm:$0xff]  ;;  %v169_v62 = vld [vmem:[%s2721_s1 + $0x238] sm:$0xff]  ;;  %v55_v2 = vld [vmem:[%s2720_s0 + $0x148] sm:$0xff]  ;;  %v1872_v15 = vadd.f32 %v142_v46, %v58_v45  ;;  %v312_v27 = vmax.f32 %v1845_v0, 0.0 }
  0x2e   :  { %646 = vmatpush2.msra.mxu0 %v322_v22  ;;  %v339_v59 = vmax.f32 %v255_v47, 0.0  ;;  %945 = vmatpush1.msra.mxu1 %v340_v52  ;;  %v139_v4 = vld [vmem:[%s2721_s1 + $0x148] sm:$0xff]  ;;  %v253_v5 = vadd.f32 %v169_v62, %v85_v56  ;;  %v84_v6 = vld [vmem:[%s2720_s0 + $0x230] sm:$0xff]  ;;  %v54_v10 = vld [vmem:[%s2720_s0 + $0x140] sm:$0xff]  ;;  %v1884_v22 = vadd.f32 %v141_v54, %v57_v53  ;;  %v1896_v28 = vadd.f32 %v140_v61, %v56_v60 }
  0x2f   :  { %647 = vmatprep.subr.mxu0 %v321_v29  ;;  %v338_v1 = vmax.f32 %v254_v55, 0.0  ;;  %v168_v7 = vld [vmem:[%s2721_s1 + $0x230] sm:$0xff]  ;;  %v83_v12 = vld [vmem:[%s2720_s0 + $0x228] sm:$0xff]  ;;  %v138_v17 = vld [vmem:[%s2721_s1 + $0x140] sm:$0xff]  ;;  %v310_v40 = vmax.f32 %v1872_v15, 0.0 }
  0x30   :  { %648 = vmatpush2.msra.mxu0 %v320_v35  ;;  %946 = vmatprep.subr.mxu1 %v339_v59  ;;  %v252_v11 = vadd.f32 %v168_v7, %v84_v6  ;;  %v167_v13 = vld [vmem:[%s2721_s1 + $0x228] sm:$0xff]  ;;  %v337_v16 = vmax.f32 %v253_v5, 0.0  ;;  %v53_v18 = vld [vmem:[%s2720_s0 + $0x138] sm:$0xff]  ;;  %v82_v20 = vld [vmem:[%s2720_s0 + $0x220] sm:$0xff]  ;;  %v223_v35 = vadd.f32 %v139_v4, %v55_v2  ;;  %v222_v41 = vadd.f32 %v138_v17, %v54_v10 }
  0x31   :  { %649 = vmatprep.subr.mxu0 %v319_v43  ;;  %947 = vmatpush1.msra.mxu1 %v338_v1  ;;  %v251_v19 = vadd.f32 %v167_v13, %v83_v12  ;;  %v137_v24 = vld [vmem:[%s2721_s1 + $0x138] sm:$0xff]  ;;  %v52_v25 = vld [vmem:[%s2720_s0 + $0x130] sm:$0xff]  ;;  %v166_v26 = vld [vmem:[%s2721_s1 + $0x220] sm:$0xff]  ;;  %v309_v47 = vmax.f32 %v1884_v22, 0.0  ;;  %v308_v53 = vmax.f32 %v1896_v28, 0.0 }
  0x32   :  { %650 = vmatpush2.msra.mxu0 %v318_v50  ;;  %v336_v23 = vmax.f32 %v252_v11, 0.0  ;;  %948 = vmatprep.subr.mxu1 %v337_v16  ;;  %v136_v30 = vld [vmem:[%s2721_s1 + $0x130] sm:$0xff]  ;;  %v250_v31 = vadd.f32 %v166_v26, %v82_v20  ;;  %v81_v32 = vld [vmem:[%s2720_s0 + $0x218] sm:$0xff]  ;;  %v51_v36 = vld [vmem:[%s2720_s0 + $0x128] sm:$0xff]  ;;  %v221_v48 = vadd.f32 %v137_v24, %v53_v18  ;;  %v307_v60 = vmax.f32 %v223_v35, 0.0 }
  0x33   :  { %651 = vmatprep.subr.mxu0 %v317_v57  ;;  %v335_v29 = vmax.f32 %v251_v19, 0.0  ;;  %v165_v33 = vld [vmem:[%s2721_s1 + $0x218] sm:$0xff]  ;;  %v80_v38 = vld [vmem:[%s2720_s0 + $0x210] sm:$0xff]  ;;  %v135_v43 = vld [vmem:[%s2721_s1 + $0x128] sm:$0xff]  ;;  %v220_v54 = vadd.f32 %v136_v30, %v52_v25  ;;  %v306_v1 = vmax.f32 %v222_v41, 0.0 }
  0x34   :  { %652 = vmatpush2.msra.mxu0 %v316_v63  ;;  %949 = vmatpush1.msra.mxu1 %v336_v23  ;;  %v249_v37 = vadd.f32 %v165_v33, %v81_v32  ;;  %v164_v39 = vld [vmem:[%s2721_s1 + $0x210] sm:$0xff]  ;;  %v334_v42 = vmax.f32 %v250_v31, 0.0  ;;  %v50_v44 = vld [vmem:[%s2720_s0 + $0x120] sm:$0xff]  ;;  %v79_v46 = vld [vmem:[%s2720_s0 + $0x208] sm:$0xff]  ;;  %v219_v61 = vadd.f32 %v135_v43, %v51_v36 }
  0x35   :  { %653 = vmatprep.subr.mxu0 %v315_v8  ;;  %950 = vmatprep.subr.mxu1 %v335_v29  ;;  %v248_v45 = vadd.f32 %v164_v39, %v80_v38  ;;  %v134_v50 = vld [vmem:[%s2721_s1 + $0x120] sm:$0xff]  ;;  %v49_v51 = vld [vmem:[%s2720_s0 + $0x118] sm:$0xff]  ;;  %v163_v52 = vld [vmem:[%s2721_s1 + $0x208] sm:$0xff]  ;;  %v305_v8 = vmax.f32 %v221_v48, 0.0 }
  0x36   :  { %654 = vmatpush2.msra.mxu0 %v314_v14  ;;  %v333_v49 = vmax.f32 %v249_v37, 0.0  ;;  %951 = vmatpush1.msra.mxu1 %v334_v42  ;;  %v133_v56 = vld [vmem:[%s2721_s1 + $0x118] sm:$0xff]  ;;  %v247_v57 = vadd.f32 %v163_v52, %v79_v46  ;;  %v78_v58 = vld [vmem:[%s2720_s0 + $0x200] sm:$0xff]  ;;  %v48_v62 = vld [vmem:[%s2720_s0 + $0x110] sm:$0xff]  ;;  %v218_v2 = vadd.f32 %v134_v50, %v50_v44  ;;  %v304_v14 = vmax.f32 %v220_v54, 0.0 }
  0x37   :  { %655 = vmatprep.subr.mxu0 %v313_v21  ;;  %v332_v55 = vmax.f32 %v248_v45, 0.0  ;;  %v162_v59 = vld [vmem:[%s2721_s1 + $0x200] sm:$0xff]  ;;  %v132_v63 = vld [vmem:[%s2721_s1 + $0x110] sm:$0xff]  ;;  %v47_v5 = vld [vmem:[%s2720_s0 + $0x108] sm:$0xff]  ;;  %v217_v9 = vadd.f32 %v133_v56, %v49_v51  ;;  %v303_v16 = vmax.f32 %v219_v61, 0.0 }
  0x38   :  { %656 = vmatpush2.msra.mxu0 %v312_v27  ;;  %952 = vmatprep.subr.mxu1 %v333_v49  ;;  %v246_v0 = vadd.f32 %v162_v59, %v78_v58  ;;  %v331_v4 = vmax.f32 %v247_v57, 0.0  ;;  %v131_v6 = vld [vmem:[%s2721_s1 + $0x108] sm:$0xff]  ;;  %v356_v11 = vld [vmem:[%s2722_s2 + $0x10] sm:$0xff]  ;;  %v46_v12 = vld [vmem:[%s2720_s0 + $0x100] sm:$0xff]  ;;  %v216_v15 = vadd.f32 %v132_v63, %v48_v62  ;;  %v302_v18 = vmax.f32 %v218_v2, 0.0 }
  0x39   :  { %657 = vmatprep.subr.mxu0 %v311_v34  ;;  %953 = vmatpush1.msra.mxu1 %v332_v55  ;;  %v355_v7 = vld [vmem:[%s2722_s2 + $0x8] sm:$0xff]  ;;  %v130_v13 = vld [vmem:[%s2721_s1 + $0x100] sm:$0xff]  ;;  %v215_v17 = vadd.f32 %v131_v6, %v47_v5  ;;  %v301_v20 = vmax.f32 %v217_v9, 0.0  ;;  %v365_v28 = vld [vmem:[%s2722_s2 + $0x58] sm:$0xff] }
  0x3a   :  { %658 = vmatpush2.msra.mxu0 %v310_v40  ;;  %v330_v10 = vmax.f32 %v246_v0, 0.0  ;;  %671 = vmatprep.mubr.f32.mxu0 %v355_v7  ;;  %v214_v19 = vadd.f32 %v130_v13, %v46_v12  ;;  %v359_v21 = vld [vmem:[%s2722_s2 + $0x28] sm:$0xff]  ;;  %v300_v22 = vmax.f32 %v216_v15, 0.0  ;;  %v362_v25 = vld [vmem:[%s2722_s2 + $0x40] sm:$0xff]  ;;  %v357_v29 = vld [vmem:[%s2722_s2 + $0x18] sm:$0xff] }
  0x3b   :  { %659 = vmatprep.subr.mxu0 %v309_v47  ;;  %954 = vmatprep.subr.mxu1 %v331_v4  ;;  %v299_v23 = vmax.f32 %v215_v17, 0.0  ;;  %v354_v26 = vld [vmem:[%s2722_s2] sm:$0xff]  ;;  %v361_v30 = vld [vmem:[%s2722_s2 + $0x38] sm:$0xff]  ;;  %v368_v31 = vld [vmem:[%s2722_s2 + $0x70] sm:$0xff] }
  0x3c   :  { %660 = vmatpush2.msra.mxu0 %v308_v53  ;;  %955 = vmatpush1.msra.mxu1 %v330_v10  ;;  %v298_v24 = vmax.f32 %v214_v19, 0.0  ;;  %v358_v27 = vld [vmem:[%s2722_s2 + $0x20] sm:$0xff]  ;;  %v360_v32 = vld [vmem:[%s2722_s2 + $0x30] sm:$0xff]  ;;  %v371_v34 = vld [vmem:[%s2722_s2 + $0x88] sm:$0xff] }
  0x3d   :  { %661 = vmatprep.subr.mxu0 %v307_v60  ;;  %1330 = vmatmul.mubr.msk.f32.vlgmr.msra.gmra.mxu1 %vm480_vm0, %v356_v11  ;;  %v364_v33 = vld [vmem:[%s2722_s2 + $0x50] sm:$0xff]  ;;  %v363_v35 = vld [vmem:[%s2722_s2 + $0x48] sm:$0xff]  ;;  %v374_v37 = vld [vmem:[%s2722_s2 + $0xa0] sm:$0xff] }
  0x3e   :  { %662 = vmatpush2.msra.mxu0 %v306_v1  ;;  %994 = vmatprep.mubr.f32.mxu1 %v1373_v3  ;;  %v367_v36 = vld [vmem:[%s2722_s2 + $0x68] sm:$0xff]  ;;  %v366_v38 = vld [vmem:[%s2722_s2 + $0x60] sm:$0xff]  ;;  %v377_v40 = vld [vmem:[%s2722_s2 + $0xb8] sm:$0xff] }
  0x3f   :  { %663 = vmatprep.subr.mxu0 %v305_v8  ;;  %v370_v39 = vld [vmem:[%s2722_s2 + $0x80] sm:$0xff]  ;;  %v369_v41 = vld [vmem:[%s2722_s2 + $0x78] sm:$0xff]  ;;  %v380_v43 = vld [vmem:[%s2722_s2 + $0xd0] sm:$0xff] }
  0x40   :  { %664 = vmatpush2.msra.mxu0 %v304_v14  ;;  %v373_v42 = vld [vmem:[%s2722_s2 + $0x98] sm:$0xff]  ;;  %v372_v44 = vld [vmem:[%s2722_s2 + $0x90] sm:$0xff]  ;;  %v383_v46 = vld [vmem:[%s2722_s2 + $0xe8] sm:$0xff] }
  0x41   :  { %665 = vmatprep.subr.mxu0 %v303_v16  ;;  %1331 = vmatmul.mubr.msk.f32.gmra.mxu1 %vm480_vm0, %v359_v21  ;;  %v376_v45 = vld [vmem:[%s2722_s2 + $0xb0] sm:$0xff]  ;;  %v375_v47 = vld [vmem:[%s2722_s2 + $0xa8] sm:$0xff]  ;;  %v386_v49 = vld [vmem:[%s2722_s2 + $0x100] sm:$0xff] }
  0x42   :  { %666 = vmatpush2.msra.mxu0 %v302_v18  ;;  %1000 = vmatprep.mubr.f32.mxu1 %v1373_v3  ;;  %v379_v48 = vld [vmem:[%s2722_s2 + $0xc8] sm:$0xff]  ;;  %v378_v50 = vld [vmem:[%s2722_s2 + $0xc0] sm:$0xff]  ;;  %v389_v52 = vld [vmem:[%s2722_s2 + $0x118] sm:$0xff] }
  0x43   :  { %667 = vmatprep.subr.mxu0 %v301_v20  ;;  %v382_v51 = vld [vmem:[%s2722_s2 + $0xe0] sm:$0xff]  ;;  %v381_v53 = vld [vmem:[%s2722_s2 + $0xd8] sm:$0xff]  ;;  %v392_v55 = vld [vmem:[%s2722_s2 + $0x130] sm:$0xff] }
  0x44   :  { %668 = vmatpush2.msra.mxu0 %v300_v22  ;;  %v385_v54 = vld [vmem:[%s2722_s2 + $0xf8] sm:$0xff]  ;;  %v384_v56 = vld [vmem:[%s2722_s2 + $0xf0] sm:$0xff]  ;;  %v395_v58 = vld [vmem:[%s2722_s2 + $0x148] sm:$0xff] }
  0x45   :  { %669 = vmatprep.subr.mxu0 %v299_v23  ;;  %1332 = vmatmul.mubr.msk.f32.gmra.mxu1 %vm480_vm0, %v362_v25  ;;  %v388_v57 = vld [vmem:[%s2722_s2 + $0x110] sm:$0xff]  ;;  %v387_v59 = vld [vmem:[%s2722_s2 + $0x108] sm:$0xff]  ;;  %v398_v61 = vld [vmem:[%s2722_s2 + $0x160] sm:$0xff] }
  0x46   :  { %670 = vmatpush2.msra.mxu0 %v298_v24  ;;  %1006 = vmatprep.mubr.f32.mxu1 %v1373_v3  ;;  %v391_v60 = vld [vmem:[%s2722_s2 + $0x128] sm:$0xff]  ;;  %v390_v62 = vld [vmem:[%s2722_s2 + $0x120] sm:$0xff]  ;;  %v401_v0 = vld [vmem:[%s2722_s2 + $0x178] sm:$0xff] }
  0x47   :  { %672 = vmatmul.mubr.f32.vlgmr.msra.gmra.mxu0 %v354_v26  ;;  %v394_v63 = vld [vmem:[%s2722_s2 + $0x140] sm:$0xff]  ;;  %v393_v1 = vld [vmem:[%s2722_s2 + $0x138] sm:$0xff]  ;;  %v404_v4 = vld [vmem:[%s2722_s2 + $0x190] sm:$0xff] }
  0x48   :  { %677 = vmatprep.mubr.f32.mxu0 %v358_v27  ;;  %v397_v2 = vld [vmem:[%s2722_s2 + $0x158] sm:$0xff]  ;;  %v396_v5 = vld [vmem:[%s2722_s2 + $0x150] sm:$0xff]  ;;  %v407_v7 = vld [vmem:[%s2722_s2 + $0x1a8] sm:$0xff] }
  0x49   :  { %1333 = vmatmul.mubr.msk.f32.gmra.mxu1 %vm480_vm0, %v365_v28  ;;  %v400_v6 = vld [vmem:[%s2722_s2 + $0x170] sm:$0xff]  ;;  %v399_v8 = vld [vmem:[%s2722_s2 + $0x168] sm:$0xff]  ;;  %v410_v10 = vld [vmem:[%s2722_s2 + $0x1c0] sm:$0xff] }
  0x4a   :  { %1012 = vmatprep.mubr.f32.mxu1 %v1373_v3  ;;  %v403_v9 = vld [vmem:[%s2722_s2 + $0x188] sm:$0xff]  ;;  %v402_v11 = vld [vmem:[%s2722_s2 + $0x180] sm:$0xff]  ;;  %v413_v13 = vld [vmem:[%s2722_s2 + $0x1d8] sm:$0xff] }
  0x4b   :  { %678 = vmatmul.mubr.f32.gmra.mxu0 %v357_v29  ;;  %v406_v12 = vld [vmem:[%s2722_s2 + $0x1a0] sm:$0xff]  ;;  %v405_v14 = vld [vmem:[%s2722_s2 + $0x198] sm:$0xff]  ;;  %v416_v16 = vld [vmem:[%s2722_s2 + $0x1f0] sm:$0xff] }
  0x4c   :  { %683 = vmatprep.mubr.f32.mxu0 %v361_v30  ;;  %v409_v15 = vld [vmem:[%s2722_s2 + $0x1b8] sm:$0xff]  ;;  %v408_v17 = vld [vmem:[%s2722_s2 + $0x1b0] sm:$0xff]  ;;  %v419_v19 = vld [vmem:[%s2722_s2 + $0x208] sm:$0xff] }
  0x4d   :  { %1334 = vmatmul.mubr.msk.f32.gmra.mxu1 %vm480_vm0, %v368_v31  ;;  %v412_v18 = vld [vmem:[%s2722_s2 + $0x1d0] sm:$0xff]  ;;  %v411_v20 = vld [vmem:[%s2722_s2 + $0x1c8] sm:$0xff]  ;;  %v422_v22 = vld [vmem:[%s2722_s2 + $0x220] sm:$0xff] }
  0x4e   :  { %1018 = vmatprep.mubr.f32.mxu1 %v1373_v3  ;;  %v415_v21 = vld [vmem:[%s2722_s2 + $0x1e8] sm:$0xff]  ;;  %v414_v23 = vld [vmem:[%s2722_s2 + $0x1e0] sm:$0xff]  ;;  %v425_v25 = vld [vmem:[%s2722_s2 + $0x238] sm:$0xff] }
  0x4f   :  { %684 = vmatmul.mubr.f32.gmra.mxu0 %v360_v32  ;;  %v418_v24 = vld [vmem:[%s2722_s2 + $0x200] sm:$0xff]  ;;  %v417_v26 = vld [vmem:[%s2722_s2 + $0x1f8] sm:$0xff]  ;;  %v428_v28 = vld [vmem:[%s2722_s2 + $0x250] sm:$0xff] }
  0x50   :  { %689 = vmatprep.mubr.f32.mxu0 %v364_v33  ;;  %v421_v27 = vld [vmem:[%s2722_s2 + $0x218] sm:$0xff]  ;;  %v420_v29 = vld [vmem:[%s2722_s2 + $0x210] sm:$0xff]  ;;  %v431_v31 = vld [vmem:[%s2722_s2 + $0x268] sm:$0xff] }
  0x51   :  { %1335 = vmatmul.mubr.msk.f32.gmra.mxu1 %vm480_vm0, %v371_v34  ;;  %v424_v30 = vld [vmem:[%s2722_s2 + $0x230] sm:$0xff]  ;;  %v423_v32 = vld [vmem:[%s2722_s2 + $0x228] sm:$0xff]  ;;  %v434_v34 = vld [vmem:[%s2722_s2 + $0x280] sm:$0xff] }
  0x52   :  { %1024 = vmatprep.mubr.f32.mxu1 %v1373_v3  ;;  %v427_v33 = vld [vmem:[%s2722_s2 + $0x248] sm:$0xff] }
  0x53   :  { %690 = vmatmul.mubr.f32.gmra.mxu0 %v363_v35  ;;  %v426_v35 = vld [vmem:[%s2722_s2 + $0x240] sm:$0xff] }
  0x54   :  { %695 = vmatprep.mubr.f32.mxu0 %v367_v36  ;;  %v430_v36 = vld [vmem:[%s2722_s2 + $0x260] sm:$0xff] }
  0x55   :  { %1336 = vmatmul.mubr.msk.f32.gmra.mxu1 %vm480_vm0, %v374_v37  ;;  %v437_v37 = vld [vmem:[%s2722_s2 + $0x298] sm:$0xff] }
  0x56   :  { %1030 = vmatprep.mubr.f32.mxu1 %v1373_v3 }
  0x57   :  { %696 = vmatmul.mubr.f32.gmra.mxu0 %v366_v38  ;;  %v429_v38 = vld [vmem:[%s2722_s2 + $0x258] sm:$0xff] }
  0x58   :  { %701 = vmatprep.mubr.f32.mxu0 %v370_v39  ;;  %v433_v39 = vld [vmem:[%s2722_s2 + $0x278] sm:$0xff] }
  0x59   :  { %1337 = vmatmul.mubr.msk.f32.gmra.mxu1 %vm480_vm0, %v377_v40  ;;  %v440_v40 = vld [vmem:[%s2722_s2 + $0x2b0] sm:$0xff] }
  0x5a   :  { %1036 = vmatprep.mubr.f32.mxu1 %v1373_v3 }
  0x5b   :  { %702 = vmatmul.mubr.f32.gmra.mxu0 %v369_v41  ;;  %v432_v41 = vld [vmem:[%s2722_s2 + $0x270] sm:$0xff] }
  0x5c   :  { %707 = vmatprep.mubr.f32.mxu0 %v373_v42  ;;  %v436_v42 = vld [vmem:[%s2722_s2 + $0x290] sm:$0xff] }
  0x5d   :  { %1338 = vmatmul.mubr.msk.f32.gmra.mxu1 %vm480_vm0, %v380_v43  ;;  %v443_v43 = vld [vmem:[%s2722_s2 + $0x2c8] sm:$0xff] }
  0x5e   :  { %1042 = vmatprep.mubr.f32.mxu1 %v1373_v3 }
  0x5f   :  { %708 = vmatmul.mubr.f32.gmra.mxu0 %v372_v44  ;;  %v435_v44 = vld [vmem:[%s2722_s2 + $0x288] sm:$0xff] }
  0x60   :  { %713 = vmatprep.mubr.f32.mxu0 %v376_v45  ;;  %v439_v45 = vld [vmem:[%s2722_s2 + $0x2a8] sm:$0xff] }
  0x61   :  { %1339 = vmatmul.mubr.msk.f32.gmra.mxu1 %vm480_vm0, %v383_v46  ;;  %v446_v46 = vld [vmem:[%s2722_s2 + $0x2e0] sm:$0xff] }
  0x62   :  { %1048 = vmatprep.mubr.f32.mxu1 %v1373_v3 }
  0x63   :  { %714 = vmatmul.mubr.f32.gmra.mxu0 %v375_v47  ;;  %v438_v47 = vld [vmem:[%s2722_s2 + $0x2a0] sm:$0xff] }
  0x64   :  { %719 = vmatprep.mubr.f32.mxu0 %v379_v48  ;;  %v442_v48 = vld [vmem:[%s2722_s2 + $0x2c0] sm:$0xff] }
  0x65   :  { %1340 = vmatmul.mubr.msk.f32.gmra.mxu1 %vm480_vm0, %v386_v49  ;;  %v449_v49 = vld [vmem:[%s2722_s2 + $0x2f8] sm:$0xff] }
  0x66   :  { %1054 = vmatprep.mubr.f32.mxu1 %v1373_v3 }
  0x67   :  { %720 = vmatmul.mubr.f32.gmra.mxu0 %v378_v50  ;;  %v441_v50 = vld [vmem:[%s2722_s2 + $0x2b8] sm:$0xff] }
  0x68   :  { %725 = vmatprep.mubr.f32.mxu0 %v382_v51  ;;  %v445_v51 = vld [vmem:[%s2722_s2 + $0x2d8] sm:$0xff] }
  0x69   :  { %1341 = vmatmul.mubr.msk.f32.gmra.mxu1 %vm480_vm0, %v389_v52  ;;  %v452_v52 = vld [vmem:[%s2722_s2 + $0x310] sm:$0xff] }
  0x6a   :  { %1060 = vmatprep.mubr.f32.mxu1 %v1373_v3 }
  0x6b   :  { %726 = vmatmul.mubr.f32.gmra.mxu0 %v381_v53  ;;  %v444_v53 = vld [vmem:[%s2722_s2 + $0x2d0] sm:$0xff] }
  0x6c   :  { %731 = vmatprep.mubr.f32.mxu0 %v385_v54  ;;  %v448_v54 = vld [vmem:[%s2722_s2 + $0x2f0] sm:$0xff] }
  0x6d   :  { %1342 = vmatmul.mubr.msk.f32.gmra.mxu1 %vm480_vm0, %v392_v55  ;;  %v455_v55 = vld [vmem:[%s2722_s2 + $0x328] sm:$0xff] }
  0x6e   :  { %1066 = vmatprep.mubr.f32.mxu1 %v1373_v3 }
  0x6f   :  { %732 = vmatmul.mubr.f32.gmra.mxu0 %v384_v56  ;;  %v447_v56 = vld [vmem:[%s2722_s2 + $0x2e8] sm:$0xff] }
  0x70   :  { %737 = vmatprep.mubr.f32.mxu0 %v388_v57  ;;  %v451_v57 = vld [vmem:[%s2722_s2 + $0x308] sm:$0xff] }
  0x71   :  { %1343 = vmatmul.mubr.msk.f32.gmra.mxu1 %vm480_vm0, %v395_v58  ;;  %v458_v58 = vld [vmem:[%s2722_s2 + $0x340] sm:$0xff] }
  0x72   :  { %1072 = vmatprep.mubr.f32.mxu1 %v1373_v3 }
  0x73   :  { %738 = vmatmul.mubr.f32.gmra.mxu0 %v387_v59  ;;  %v450_v59 = vld [vmem:[%s2722_s2 + $0x300] sm:$0xff] }
  0x74   :  { %743 = vmatprep.mubr.f32.mxu0 %v391_v60  ;;  %v454_v60 = vld [vmem:[%s2722_s2 + $0x320] sm:$0xff] }
  0x75   :  { %1344 = vmatmul.mubr.msk.f32.gmra.mxu1 %vm480_vm0, %v398_v61  ;;  %v461_v61 = vld [vmem:[%s2722_s2 + $0x358] sm:$0xff] }
  0x76   :  { %1078 = vmatprep.mubr.f32.mxu1 %v1373_v3 }
  0x77   :  { %744 = vmatmul.mubr.f32.gmra.mxu0 %v390_v62  ;;  %v453_v62 = vld [vmem:[%s2722_s2 + $0x318] sm:$0xff] }
  0x78   :  { %749 = vmatprep.mubr.f32.mxu0 %v394_v63  ;;  %v457_v63 = vld [vmem:[%s2722_s2 + $0x338] sm:$0xff] }
  0x79   :  { %1345 = vmatmul.mubr.msk.f32.gmra.mxu1 %vm480_vm0, %v401_v0  ;;  %v464_v0 = vld [vmem:[%s2722_s2 + $0x370] sm:$0xff] }
  0x7a   :  { %1084 = vmatprep.mubr.f32.mxu1 %v1373_v3 }
  0x7b   :  { %750 = vmatmul.mubr.f32.gmra.mxu0 %v393_v1  ;;  %v456_v1 = vld [vmem:[%s2722_s2 + $0x330] sm:$0xff] }
  0x7c   :  { %755 = vmatprep.mubr.f32.mxu0 %v397_v2  ;;  %v460_v2 = vld [vmem:[%s2722_s2 + $0x350] sm:$0xff] }
  0x7d   :  { %1346 = vmatmul.mubr.msk.f32.gmra.mxu1 %vm480_vm0, %v404_v4  ;;  %v467_v4 = vld [vmem:[%s2722_s2 + $0x388] sm:$0xff] }
  0x7e   :  { %1090 = vmatprep.mubr.f32.mxu1 %v1373_v3 }
  0x7f   :  { %756 = vmatmul.mubr.f32.gmra.mxu0 %v396_v5  ;;  %v459_v5 = vld [vmem:[%s2722_s2 + $0x348] sm:$0xff] }
  0x80   :  { %761 = vmatprep.mubr.f32.mxu0 %v400_v6  ;;  %v463_v6 = vld [vmem:[%s2722_s2 + $0x368] sm:$0xff] }
  0x81   :  { %1347 = vmatmul.mubr.msk.f32.gmra.mxu1 %vm480_vm0, %v407_v7  ;;  %v470_v7 = vld [vmem:[%s2722_s2 + $0x3a0] sm:$0xff] }
  0x82   :  { %1096 = vmatprep.mubr.f32.mxu1 %v1373_v3 }
  0x83   :  { %762 = vmatmul.mubr.f32.gmra.mxu0 %v399_v8  ;;  %v462_v8 = vld [vmem:[%s2722_s2 + $0x360] sm:$0xff] }
  0x84   :  { %767 = vmatprep.mubr.f32.mxu0 %v403_v9  ;;  %v466_v9 = vld [vmem:[%s2722_s2 + $0x380] sm:$0xff] }
  0x85   :  { %1348 = vmatmul.mubr.msk.f32.gmra.mxu1 %vm480_vm0, %v410_v10  ;;  %v473_v10 = vld [vmem:[%s2722_s2 + $0x3b8] sm:$0xff] }
  0x86   :  { %1102 = vmatprep.mubr.f32.mxu1 %v1373_v3 }
  0x87   :  { %768 = vmatmul.mubr.f32.gmra.mxu0 %v402_v11  ;;  %v465_v11 = vld [vmem:[%s2722_s2 + $0x378] sm:$0xff] }
  0x88   :  { %773 = vmatprep.mubr.f32.mxu0 %v406_v12  ;;  %v469_v12 = vld [vmem:[%s2722_s2 + $0x398] sm:$0xff] }
  0x89   :  { %1349 = vmatmul.mubr.msk.f32.gmra.mxu1 %vm480_vm0, %v413_v13  ;;  %v476_v13 = vld [vmem:[%s2722_s2 + $0x3d0] sm:$0xff] }
  0x8a   :  { %1108 = vmatprep.mubr.f32.mxu1 %v1373_v3 }
  0x8b   :  { %774 = vmatmul.mubr.f32.gmra.mxu0 %v405_v14  ;;  %v468_v14 = vld [vmem:[%s2722_s2 + $0x390] sm:$0xff] }
  0x8c   :  { %779 = vmatprep.mubr.f32.mxu0 %v409_v15  ;;  %v472_v15 = vld [vmem:[%s2722_s2 + $0x3b0] sm:$0xff] }
  0x8d   :  { %1350 = vmatmul.mubr.msk.f32.gmra.mxu1 %vm480_vm0, %v416_v16  ;;  %v479_v16 = vld [vmem:[%s2722_s2 + $0x3e8] sm:$0xff] }
  0x8e   :  { %1114 = vmatprep.mubr.f32.mxu1 %v1373_v3 }
  0x8f   :  { %780 = vmatmul.mubr.f32.gmra.mxu0 %v408_v17  ;;  %v471_v17 = vld [vmem:[%s2722_s2 + $0x3a8] sm:$0xff] }
  0x90   :  { %785 = vmatprep.mubr.f32.mxu0 %v412_v18  ;;  %v475_v18 = vld [vmem:[%s2722_s2 + $0x3c8] sm:$0xff] }
  0x91   :  { %1351 = vmatmul.mubr.msk.f32.gmra.mxu1 %vm480_vm0, %v419_v19  ;;  %v478_v19 = vld [vmem:[%s2722_s2 + $0x3e0] sm:$0xff] }
  0x92   :  { %1120 = vmatprep.mubr.f32.mxu1 %v1373_v3 }
  0x93   :  { %786 = vmatmul.mubr.f32.gmra.mxu0 %v411_v20  ;;  %v477_v20 = vld [vmem:[%s2722_s2 + $0x3d8] sm:$0xff] }
  0x94   :  { %791 = vmatprep.mubr.f32.mxu0 %v415_v21 }
  0x95   :  { %1352 = vmatmul.mubr.msk.f32.gmra.mxu1 %vm480_vm0, %v422_v22 }
  0x96   :  { %1126 = vmatprep.mubr.f32.mxu1 %v1373_v3 }
  0x97   :  { %792 = vmatmul.mubr.f32.gmra.mxu0 %v414_v23 }
  0x98   :  { %797 = vmatprep.mubr.f32.mxu0 %v418_v24 }
  0x99   :  { %1353 = vmatmul.mubr.msk.f32.gmra.mxu1 %vm480_vm0, %v425_v25 }
  0x9a   :  { %1132 = vmatprep.mubr.f32.mxu1 %v1373_v3 }
  0x9b   :  { %798 = vmatmul.mubr.f32.gmra.mxu0 %v417_v26 }
  0x9c   :  { %803 = vmatprep.mubr.f32.mxu0 %v421_v27 }
  0x9d   :  { %1354 = vmatmul.mubr.msk.f32.gmra.mxu1 %vm480_vm0, %v428_v28 }
  0x9e   :  { %1138 = vmatprep.mubr.f32.mxu1 %v1373_v3 }
  0x9f   :  { %804 = vmatmul.mubr.f32.gmra.mxu0 %v420_v29 }
  0xa0   :  { %809 = vmatprep.mubr.f32.mxu0 %v424_v30 }
  0xa1   :  { %1355 = vmatmul.mubr.msk.f32.gmra.mxu1 %vm480_vm0, %v431_v31 }
  0xa2   :  { %1144 = vmatprep.mubr.f32.mxu1 %v1373_v3 }
  0xa3   :  { %810 = vmatmul.mubr.f32.gmra.mxu0 %v423_v32 }
  0xa4   :  { %815 = vmatprep.mubr.f32.mxu0 %v427_v33 }
  0xa5   :  { %1356 = vmatmul.mubr.msk.f32.gmra.mxu1 %vm480_vm0, %v434_v34 }
  0xa6   :  { %1150 = vmatprep.mubr.f32.mxu1 %v1373_v3 }
  0xa7   :  { %816 = vmatmul.mubr.f32.gmra.mxu0 %v426_v35 }
  0xa8   :  { %821 = vmatprep.mubr.f32.mxu0 %v430_v36 }
  0xa9   :  { %1357 = vmatmul.mubr.msk.f32.gmra.mxu1 %vm480_vm0, %v437_v37 }
  0xaa   :  { %1156 = vmatprep.mubr.f32.mxu1 %v1373_v3 }
  0xab   :  { %822 = vmatmul.mubr.f32.gmra.mxu0 %v429_v38 }
  0xac   :  { %827 = vmatprep.mubr.f32.mxu0 %v433_v39 }
  0xad   :  { %1358 = vmatmul.mubr.msk.f32.gmra.mxu1 %vm480_vm0, %v440_v40 }
  0xae   :  { %1162 = vmatprep.mubr.f32.mxu1 %v1373_v3 }
  0xaf   :  { %828 = vmatmul.mubr.f32.gmra.mxu0 %v432_v41 }
  0xb0   :  { %833 = vmatprep.mubr.f32.mxu0 %v436_v42 }
  0xb1   :  { %1359 = vmatmul.mubr.msk.f32.gmra.mxu1 %vm480_vm0, %v443_v43 }
  0xb2   :  { %1168 = vmatprep.mubr.f32.mxu1 %v1373_v3 }
  0xb3   :  { %834 = vmatmul.mubr.f32.gmra.mxu0 %v435_v44 }
  0xb4   :  { %839 = vmatprep.mubr.f32.mxu0 %v439_v45 }
  0xb5   :  { %1360 = vmatmul.mubr.msk.f32.gmra.mxu1 %vm480_vm0, %v446_v46 }
  0xb6   :  { %1174 = vmatprep.mubr.f32.mxu1 %v1373_v3 }
  0xb7   :  { %840 = vmatmul.mubr.f32.gmra.mxu0 %v438_v47 }
  0xb8   :  { %845 = vmatprep.mubr.f32.mxu0 %v442_v48 }
  0xb9   :  { %1361 = vmatmul.mubr.msk.f32.gmra.mxu1 %vm480_vm0, %v449_v49 }
  0xba   :  { %1180 = vmatprep.mubr.f32.mxu1 %v1373_v3 }
  0xbb   :  { %846 = vmatmul.mubr.f32.gmra.mxu0 %v441_v50 }
  0xbc   :  { %851 = vmatprep.mubr.f32.mxu0 %v445_v51 }
  0xbd   :  { %1362 = vmatmul.mubr.msk.f32.gmra.mxu1 %vm480_vm0, %v452_v52 }
  0xbe   :  { %1186 = vmatprep.mubr.f32.mxu1 %v1373_v3 }
  0xbf   :  { %852 = vmatmul.mubr.f32.gmra.mxu0 %v444_v53 }
  0xc0   :  { %857 = vmatprep.mubr.f32.mxu0 %v448_v54 }
  0xc1   :  { %1363 = vmatmul.mubr.msk.f32.gmra.mxu1 %vm480_vm0, %v455_v55 }
  0xc2   :  { %1192 = vmatprep.mubr.f32.mxu1 %v1373_v3 }
  0xc3   :  { %858 = vmatmul.mubr.f32.gmra.mxu0 %v447_v56 }
  0xc4   :  { %863 = vmatprep.mubr.f32.mxu0 %v451_v57 }
  0xc5   :  { %1364 = vmatmul.mubr.msk.f32.gmra.mxu1 %vm480_vm0, %v458_v58 }
  0xc6   :  { %1198 = vmatprep.mubr.f32.mxu1 %v1373_v3 }
  0xc7   :  { %864 = vmatmul.mubr.f32.gmra.mxu0 %v450_v59 }
  0xc8   :  { %869 = vmatprep.mubr.f32.mxu0 %v454_v60 }
  0xc9   :  { %1365 = vmatmul.mubr.msk.f32.gmra.mxu1 %vm480_vm0, %v461_v61 }
  0xca   :  { %1204 = vmatprep.mubr.f32.mxu1 %v1373_v3 }
  0xcb   :  { %870 = vmatmul.mubr.f32.gmra.mxu0 %v453_v62 }
  0xcc   :  { %875 = vmatprep.mubr.f32.mxu0 %v457_v63 }
  0xcd   :  { %1366 = vmatmul.mubr.msk.f32.gmra.mxu1 %vm480_vm0, %v464_v0 }
  0xce   :  { %1210 = vmatprep.mubr.f32.mxu1 %v1373_v3 }
  0xcf   :  { %876 = vmatmul.mubr.f32.gmra.mxu0 %v456_v1 }
  0xd0   :  { %881 = vmatprep.mubr.f32.mxu0 %v460_v2 }
  0xd1   :  { %1367 = vmatmul.mubr.msk.f32.gmra.mxu1 %vm480_vm0, %v467_v4 }
  0xd2   :  { %1216 = vmatprep.mubr.f32.mxu1 %v1373_v3 }
  0xd3   :  { %882 = vmatmul.mubr.f32.gmra.mxu0 %v459_v5 }
  0xd4   :  { %887 = vmatprep.mubr.f32.mxu0 %v463_v6 }
  0xd5   :  { %1368 = vmatmul.mubr.msk.f32.gmra.mxu1 %vm480_vm0, %v470_v7 }
  0xd6   :  { %1222 = vmatprep.mubr.f32.mxu1 %v1373_v3 }
  0xd7   :  { %888 = vmatmul.mubr.f32.gmra.mxu0 %v462_v8 }
  0xd8   :  { %893 = vmatprep.mubr.f32.mxu0 %v466_v9 }
  0xd9   :  { %1369 = vmatmul.mubr.msk.f32.gmra.mxu1 %vm480_vm0, %v473_v10 }
  0xda   :  { %1228 = vmatprep.mubr.f32.mxu1 %v1373_v3 }
  0xdb   :  { %894 = vmatmul.mubr.f32.gmra.mxu0 %v465_v11 }
  0xdc   :  { %899 = vmatprep.mubr.f32.mxu0 %v469_v12 }
  0xdd   :  { %1370 = vmatmul.mubr.msk.f32.gmra.mxu1 %vm480_vm0, %v476_v13 }
  0xde   :  { %1234 = vmatprep.mubr.f32.mxu1 %v1373_v3  ;;  %v474_v3 = vld [vmem:[%s2722_s2 + $0x3c0] sm:$0xff] }
  0xdf   :  { %900 = vmatmul.mubr.f32.gmra.mxu0 %v468_v14 }
  0xe0   :  { %905 = vmatprep.mubr.f32.mxu0 %v472_v15 }
  0xe1   :  { %1371 = vmatmul.mubr.msk.f32.gmra.mxu1 %vm480_vm0, %v479_v16 }
  0xe3   :  { %906 = vmatmul.mubr.f32.gmra.mxu0 %v471_v17 }
  0xe4   :  { %911 = vmatprep.mubr.f32.mxu0 %v475_v18 }
  0xe7   :  { %912 = vmatmul.mubr.f32.gmra.mxu0 %v474_v3 }
  0xe8   :  { %917 = vmatprep.mubr.f32.mxu0 %v478_v19 }
  0xeb   :  { %918 = vmatmul.mubr.f32.gmra.mxu0 %v477_v20 }
  0xfd   :  { %v990_v21 = vpop.f32.mrf.mxu1 }
  0xff   :  { %v992_v22 = vpop.f32.mrf.mxu1 }
 0x101   :  { %v996_v23 = vpop.f32.mrf.mxu1 }
 0x103   :  { %v998_v24 = vpop.f32.mrf.mxu1 }
 0x105   :  { %v1002_v25 = vpop.f32.mrf.mxu1 }
 0x107   :  { %v673_v26 = vpop.f32.mrf.mxu0  ;;  %v1004_v28 = vpop.f32.mrf.mxu1 }
 0x108   :  { %v991_v27 = vadd.f32 %v990_v21, %v673_v26 }
 0x109   :  { %v675_v29 = vpop.f32.mrf.mxu0  ;;  %v1008_v31 = vpop.f32.mrf.mxu1 }
 0x10a   :  { %1241 = vst [vmem:[%s2723_s3] sm:$0xff] %v991_v27  ;;  %v993_v30 = vadd.f32 %v992_v22, %v675_v29 }
 0x10b   :  { %v679_v32 = vpop.f32.mrf.mxu0  ;;  %v1010_v34 = vpop.f32.mrf.mxu1 }
 0x10c   :  { %1243 = vst.msk [vmem:[%s2723_s3 + $0x8] sm:$0xff] %vm1242_vm1, %v993_v30  ;;  %v997_v33 = vadd.f32 %v996_v23, %v679_v32 }
 0x10d   :  { %v681_v35 = vpop.f32.mrf.mxu0  ;;  %v1014_v37 = vpop.f32.mrf.mxu1 }
 0x10e   :  { %1244 = vst [vmem:[%s2723_s3 + $0x10] sm:$0xff] %v997_v33  ;;  %v999_v36 = vadd.f32 %v998_v24, %v681_v35 }
 0x10f   :  { %v685_v38 = vpop.f32.mrf.mxu0  ;;  %v1016_v40 = vpop.f32.mrf.mxu1 }
 0x110   :  { %1245 = vst.msk [vmem:[%s2723_s3 + $0x18] sm:$0xff] %vm1242_vm1, %v999_v36  ;;  %v1003_v39 = vadd.f32 %v1002_v25, %v685_v38 }
 0x111   :  { %v687_v41 = vpop.f32.mrf.mxu0  ;;  %v1020_v43 = vpop.f32.mrf.mxu1 }
 0x112   :  { %1246 = vst [vmem:[%s2723_s3 + $0x20] sm:$0xff] %v1003_v39  ;;  %v1005_v42 = vadd.f32 %v1004_v28, %v687_v41 }
 0x113   :  { %v691_v44 = vpop.f32.mrf.mxu0  ;;  %v1022_v46 = vpop.f32.mrf.mxu1 }
 0x114   :  { %1247 = vst.msk [vmem:[%s2723_s3 + $0x28] sm:$0xff] %vm1242_vm1, %v1005_v42  ;;  %v1009_v45 = vadd.f32 %v1008_v31, %v691_v44 }
 0x115   :  { %v693_v47 = vpop.f32.mrf.mxu0  ;;  %v1026_v49 = vpop.f32.mrf.mxu1 }
 0x116   :  { %1248 = vst [vmem:[%s2723_s3 + $0x30] sm:$0xff] %v1009_v45  ;;  %v1011_v48 = vadd.f32 %v1010_v34, %v693_v47 }
 0x117   :  { %v697_v50 = vpop.f32.mrf.mxu0  ;;  %v1028_v52 = vpop.f32.mrf.mxu1 }
 0x118   :  { %1249 = vst.msk [vmem:[%s2723_s3 + $0x38] sm:$0xff] %vm1242_vm1, %v1011_v48  ;;  %v1015_v51 = vadd.f32 %v1014_v37, %v697_v50 }
 0x119   :  { %v699_v53 = vpop.f32.mrf.mxu0  ;;  %v1032_v55 = vpop.f32.mrf.mxu1 }
 0x11a   :  { %1250 = vst [vmem:[%s2723_s3 + $0x40] sm:$0xff] %v1015_v51  ;;  %v1017_v54 = vadd.f32 %v1016_v40, %v699_v53 }
 0x11b   :  { %v703_v56 = vpop.f32.mrf.mxu0  ;;  %v1034_v58 = vpop.f32.mrf.mxu1 }
 0x11c   :  { %1251 = vst.msk [vmem:[%s2723_s3 + $0x48] sm:$0xff] %vm1242_vm1, %v1017_v54  ;;  %v1021_v57 = vadd.f32 %v1020_v43, %v703_v56 }
 0x11d   :  { %v705_v59 = vpop.f32.mrf.mxu0  ;;  %v1038_v61 = vpop.f32.mrf.mxu1 }
 0x11e   :  { %1252 = vst [vmem:[%s2723_s3 + $0x50] sm:$0xff] %v1021_v57  ;;  %v1023_v60 = vadd.f32 %v1022_v46, %v705_v59 }
 0x11f   :  { %v709_v62 = vpop.f32.mrf.mxu0  ;;  %v1040_v0 = vpop.f32.mrf.mxu1 }
 0x120   :  { %1253 = vst.msk [vmem:[%s2723_s3 + $0x58] sm:$0xff] %vm1242_vm1, %v1023_v60  ;;  %v1027_v63 = vadd.f32 %v1026_v49, %v709_v62 }
 0x121   :  { %v711_v1 = vpop.f32.mrf.mxu0  ;;  %v1044_v4 = vpop.f32.mrf.mxu1 }
 0x122   :  { %1254 = vst [vmem:[%s2723_s3 + $0x60] sm:$0xff] %v1027_v63  ;;  %v1029_v2 = vadd.f32 %v1028_v52, %v711_v1 }
 0x123   :  { %v715_v5 = vpop.f32.mrf.mxu0  ;;  %v1046_v7 = vpop.f32.mrf.mxu1 }
 0x124   :  { %1255 = vst.msk [vmem:[%s2723_s3 + $0x68] sm:$0xff] %vm1242_vm1, %v1029_v2  ;;  %v1033_v6 = vadd.f32 %v1032_v55, %v715_v5 }
 0x125   :  { %v717_v8 = vpop.f32.mrf.mxu0  ;;  %v1050_v10 = vpop.f32.mrf.mxu1 }
 0x126   :  { %1256 = vst [vmem:[%s2723_s3 + $0x70] sm:$0xff] %v1033_v6  ;;  %v1035_v9 = vadd.f32 %v1034_v58, %v717_v8 }
 0x127   :  { %v721_v11 = vpop.f32.mrf.mxu0  ;;  %v1052_v13 = vpop.f32.mrf.mxu1 }
 0x128   :  { %1257 = vst.msk [vmem:[%s2723_s3 + $0x78] sm:$0xff] %vm1242_vm1, %v1035_v9  ;;  %v1039_v12 = vadd.f32 %v1038_v61, %v721_v11 }
 0x129   :  { %v723_v14 = vpop.f32.mrf.mxu0  ;;  %v1056_v16 = vpop.f32.mrf.mxu1 }
 0x12a   :  { %1258 = vst [vmem:[%s2723_s3 + $0x80] sm:$0xff] %v1039_v12  ;;  %v1041_v15 = vadd.f32 %v1040_v0, %v723_v14 }
 0x12b   :  { %v727_v17 = vpop.f32.mrf.mxu0  ;;  %v1058_v3 = vpop.f32.mrf.mxu1 }
 0x12c   :  { %1259 = vst.msk [vmem:[%s2723_s3 + $0x88] sm:$0xff] %vm1242_vm1, %v1041_v15  ;;  %v1045_v18 = vadd.f32 %v1044_v4, %v727_v17 }
 0x12d   :  { %v729_v19 = vpop.f32.mrf.mxu0  ;;  %v1062_v21 = vpop.f32.mrf.mxu1 }
 0x12e   :  { %1260 = vst [vmem:[%s2723_s3 + $0x90] sm:$0xff] %v1045_v18  ;;  %v1047_v20 = vadd.f32 %v1046_v7, %v729_v19 }
 0x12f   :  { %v733_v22 = vpop.f32.mrf.mxu0  ;;  %v1064_v24 = vpop.f32.mrf.mxu1 }
 0x130   :  { %1261 = vst.msk [vmem:[%s2723_s3 + $0x98] sm:$0xff] %vm1242_vm1, %v1047_v20  ;;  %v1051_v23 = vadd.f32 %v1050_v10, %v733_v22 }
 0x131   :  { %v735_v25 = vpop.f32.mrf.mxu0  ;;  %v1068_v27 = vpop.f32.mrf.mxu1 }
 0x132   :  { %1262 = vst [vmem:[%s2723_s3 + $0xa0] sm:$0xff] %v1051_v23  ;;  %v1053_v26 = vadd.f32 %v1052_v13, %v735_v25 }
 0x133   :  { %v739_v28 = vpop.f32.mrf.mxu0  ;;  %v1070_v30 = vpop.f32.mrf.mxu1 }
 0x134   :  { %1263 = vst.msk [vmem:[%s2723_s3 + $0xa8] sm:$0xff] %vm1242_vm1, %v1053_v26  ;;  %v1057_v29 = vadd.f32 %v1056_v16, %v739_v28 }
 0x135   :  { %v741_v31 = vpop.f32.mrf.mxu0  ;;  %v1074_v33 = vpop.f32.mrf.mxu1 }
 0x136   :  { %1264 = vst [vmem:[%s2723_s3 + $0xb0] sm:$0xff] %v1057_v29  ;;  %v1059_v32 = vadd.f32 %v1058_v3, %v741_v31 }
 0x137   :  { %v745_v34 = vpop.f32.mrf.mxu0  ;;  %v1076_v36 = vpop.f32.mrf.mxu1 }
 0x138   :  { %1265 = vst.msk [vmem:[%s2723_s3 + $0xb8] sm:$0xff] %vm1242_vm1, %v1059_v32  ;;  %v1063_v35 = vadd.f32 %v1062_v21, %v745_v34 }
 0x139   :  { %v747_v37 = vpop.f32.mrf.mxu0  ;;  %v1080_v39 = vpop.f32.mrf.mxu1 }
 0x13a   :  { %1266 = vst [vmem:[%s2723_s3 + $0xc0] sm:$0xff] %v1063_v35  ;;  %v1065_v38 = vadd.f32 %v1064_v24, %v747_v37 }
 0x13b   :  { %v751_v40 = vpop.f32.mrf.mxu0  ;;  %v1082_v42 = vpop.f32.mrf.mxu1 }
 0x13c   :  { %1267 = vst.msk [vmem:[%s2723_s3 + $0xc8] sm:$0xff] %vm1242_vm1, %v1065_v38  ;;  %v1069_v41 = vadd.f32 %v1068_v27, %v751_v40 }
 0x13d   :  { %v753_v43 = vpop.f32.mrf.mxu0  ;;  %v1086_v45 = vpop.f32.mrf.mxu1 }
 0x13e   :  { %1268 = vst [vmem:[%s2723_s3 + $0xd0] sm:$0xff] %v1069_v41  ;;  %v1071_v44 = vadd.f32 %v1070_v30, %v753_v43 }
 0x13f   :  { %v757_v46 = vpop.f32.mrf.mxu0  ;;  %v1088_v48 = vpop.f32.mrf.mxu1 }
 0x140   :  { %1269 = vst.msk [vmem:[%s2723_s3 + $0xd8] sm:$0xff] %vm1242_vm1, %v1071_v44  ;;  %v1075_v47 = vadd.f32 %v1074_v33, %v757_v46 }
 0x141   :  { %v759_v49 = vpop.f32.mrf.mxu0  ;;  %v1092_v51 = vpop.f32.mrf.mxu1 }
 0x142   :  { %1270 = vst [vmem:[%s2723_s3 + $0xe0] sm:$0xff] %v1075_v47  ;;  %v1077_v50 = vadd.f32 %v1076_v36, %v759_v49 }
 0x143   :  { %v763_v52 = vpop.f32.mrf.mxu0  ;;  %v1094_v54 = vpop.f32.mrf.mxu1 }
 0x144   :  { %1271 = vst.msk [vmem:[%s2723_s3 + $0xe8] sm:$0xff] %vm1242_vm1, %v1077_v50  ;;  %v1081_v53 = vadd.f32 %v1080_v39, %v763_v52 }
 0x145   :  { %v765_v55 = vpop.f32.mrf.mxu0  ;;  %v1098_v57 = vpop.f32.mrf.mxu1 }
 0x146   :  { %1272 = vst [vmem:[%s2723_s3 + $0xf0] sm:$0xff] %v1081_v53  ;;  %v1083_v56 = vadd.f32 %v1082_v42, %v765_v55 }
 0x147   :  { %v769_v58 = vpop.f32.mrf.mxu0  ;;  %v1100_v60 = vpop.f32.mrf.mxu1 }
 0x148   :  { %1273 = vst.msk [vmem:[%s2723_s3 + $0xf8] sm:$0xff] %vm1242_vm1, %v1083_v56  ;;  %v1087_v59 = vadd.f32 %v1086_v45, %v769_v58 }
 0x149   :  { %v771_v61 = vpop.f32.mrf.mxu0  ;;  %v1104_v63 = vpop.f32.mrf.mxu1 }
 0x14a   :  { %1274 = vst [vmem:[%s2723_s3 + $0x100] sm:$0xff] %v1087_v59  ;;  %v1089_v62 = vadd.f32 %v1088_v48, %v771_v61 }
 0x14b   :  { %v775_v0 = vpop.f32.mrf.mxu0  ;;  %v1106_v2 = vpop.f32.mrf.mxu1 }
 0x14c   :  { %1275 = vst.msk [vmem:[%s2723_s3 + $0x108] sm:$0xff] %vm1242_vm1, %v1089_v62  ;;  %v1093_v1 = vadd.f32 %v1092_v51, %v775_v0 }
 0x14d   :  { %v777_v4 = vpop.f32.mrf.mxu0  ;;  %v1110_v6 = vpop.f32.mrf.mxu1 }
 0x14e   :  { %1276 = vst [vmem:[%s2723_s3 + $0x110] sm:$0xff] %v1093_v1  ;;  %v1095_v5 = vadd.f32 %v1094_v54, %v777_v4 }
 0x14f   :  { %v781_v7 = vpop.f32.mrf.mxu0  ;;  %v1112_v9 = vpop.f32.mrf.mxu1 }
 0x150   :  { %1277 = vst.msk [vmem:[%s2723_s3 + $0x118] sm:$0xff] %vm1242_vm1, %v1095_v5  ;;  %v1099_v8 = vadd.f32 %v1098_v57, %v781_v7 }
 0x151   :  { %v783_v10 = vpop.f32.mrf.mxu0  ;;  %v1116_v12 = vpop.f32.mrf.mxu1 }
 0x152   :  { %1278 = vst [vmem:[%s2723_s3 + $0x120] sm:$0xff] %v1099_v8  ;;  %v1101_v11 = vadd.f32 %v1100_v60, %v783_v10 }
 0x153   :  { %v787_v13 = vpop.f32.mrf.mxu0  ;;  %v1118_v15 = vpop.f32.mrf.mxu1 }
 0x154   :  { %1279 = vst.msk [vmem:[%s2723_s3 + $0x128] sm:$0xff] %vm1242_vm1, %v1101_v11  ;;  %v1105_v14 = vadd.f32 %v1104_v63, %v787_v13 }
 0x155   :  { %v789_v16 = vpop.f32.mrf.mxu0  ;;  %v1122_v18 = vpop.f32.mrf.mxu1 }
 0x156   :  { %1280 = vst [vmem:[%s2723_s3 + $0x130] sm:$0xff] %v1105_v14  ;;  %v1107_v17 = vadd.f32 %v1106_v2, %v789_v16 }
 0x157   :  { %v793_v3 = vpop.f32.mrf.mxu0  ;;  %v1124_v20 = vpop.f32.mrf.mxu1 }
 0x158   :  { %1281 = vst.msk [vmem:[%s2723_s3 + $0x138] sm:$0xff] %vm1242_vm1, %v1107_v17  ;;  %v1111_v19 = vadd.f32 %v1110_v6, %v793_v3 }
 0x159   :  { %v795_v21 = vpop.f32.mrf.mxu0  ;;  %v1128_v23 = vpop.f32.mrf.mxu1 }
 0x15a   :  { %1282 = vst [vmem:[%s2723_s3 + $0x140] sm:$0xff] %v1111_v19  ;;  %v1113_v22 = vadd.f32 %v1112_v9, %v795_v21 }
 0x15b   :  { %v799_v24 = vpop.f32.mrf.mxu0  ;;  %v1130_v26 = vpop.f32.mrf.mxu1 }
 0x15c   :  { %1283 = vst.msk [vmem:[%s2723_s3 + $0x148] sm:$0xff] %vm1242_vm1, %v1113_v22  ;;  %v1117_v25 = vadd.f32 %v1116_v12, %v799_v24 }
 0x15d   :  { %v801_v27 = vpop.f32.mrf.mxu0  ;;  %v1134_v29 = vpop.f32.mrf.mxu1 }
 0x15e   :  { %1284 = vst [vmem:[%s2723_s3 + $0x150] sm:$0xff] %v1117_v25  ;;  %v1119_v28 = vadd.f32 %v1118_v15, %v801_v27 }
 0x15f   :  { %v805_v30 = vpop.f32.mrf.mxu0  ;;  %v1136_v32 = vpop.f32.mrf.mxu1 }
 0x160   :  { %1285 = vst.msk [vmem:[%s2723_s3 + $0x158] sm:$0xff] %vm1242_vm1, %v1119_v28  ;;  %v1123_v31 = vadd.f32 %v1122_v18, %v805_v30 }
 0x161   :  { %v807_v33 = vpop.f32.mrf.mxu0  ;;  %v1140_v35 = vpop.f32.mrf.mxu1 }
 0x162   :  { %1286 = vst [vmem:[%s2723_s3 + $0x160] sm:$0xff] %v1123_v31  ;;  %v1125_v34 = vadd.f32 %v1124_v20, %v807_v33 }
 0x163   :  { %v811_v36 = vpop.f32.mrf.mxu0  ;;  %v1142_v38 = vpop.f32.mrf.mxu1 }
 0x164   :  { %1287 = vst.msk [vmem:[%s2723_s3 + $0x168] sm:$0xff] %vm1242_vm1, %v1125_v34  ;;  %v1129_v37 = vadd.f32 %v1128_v23, %v811_v36 }
 0x165   :  { %v813_v39 = vpop.f32.mrf.mxu0  ;;  %v1146_v41 = vpop.f32.mrf.mxu1 }
 0x166   :  { %1288 = vst [vmem:[%s2723_s3 + $0x170] sm:$0xff] %v1129_v37  ;;  %v1131_v40 = vadd.f32 %v1130_v26, %v813_v39 }
 0x167   :  { %v817_v42 = vpop.f32.mrf.mxu0  ;;  %v1148_v44 = vpop.f32.mrf.mxu1 }
 0x168   :  { %1289 = vst.msk [vmem:[%s2723_s3 + $0x178] sm:$0xff] %vm1242_vm1, %v1131_v40  ;;  %v1135_v43 = vadd.f32 %v1134_v29, %v817_v42 }
 0x169   :  { %v819_v45 = vpop.f32.mrf.mxu0  ;;  %v1152_v47 = vpop.f32.mrf.mxu1 }
 0x16a   :  { %1290 = vst [vmem:[%s2723_s3 + $0x180] sm:$0xff] %v1135_v43  ;;  %v1137_v46 = vadd.f32 %v1136_v32, %v819_v45 }
 0x16b   :  { %v823_v48 = vpop.f32.mrf.mxu0  ;;  %v1154_v50 = vpop.f32.mrf.mxu1 }
 0x16c   :  { %1291 = vst.msk [vmem:[%s2723_s3 + $0x188] sm:$0xff] %vm1242_vm1, %v1137_v46  ;;  %v1141_v49 = vadd.f32 %v1140_v35, %v823_v48 }
 0x16d   :  { %v825_v51 = vpop.f32.mrf.mxu0  ;;  %v1158_v53 = vpop.f32.mrf.mxu1 }
 0x16e   :  { %1292 = vst [vmem:[%s2723_s3 + $0x190] sm:$0xff] %v1141_v49  ;;  %v1143_v52 = vadd.f32 %v1142_v38, %v825_v51 }
 0x16f   :  { %v829_v54 = vpop.f32.mrf.mxu0  ;;  %v1160_v56 = vpop.f32.mrf.mxu1 }
 0x170   :  { %1293 = vst.msk [vmem:[%s2723_s3 + $0x198] sm:$0xff] %vm1242_vm1, %v1143_v52  ;;  %v1147_v55 = vadd.f32 %v1146_v41, %v829_v54 }
 0x171   :  { %v831_v57 = vpop.f32.mrf.mxu0  ;;  %v1164_v59 = vpop.f32.mrf.mxu1 }
 0x172   :  { %1294 = vst [vmem:[%s2723_s3 + $0x1a0] sm:$0xff] %v1147_v55  ;;  %v1149_v58 = vadd.f32 %v1148_v44, %v831_v57 }
 0x173   :  { %v835_v60 = vpop.f32.mrf.mxu0  ;;  %v1166_v62 = vpop.f32.mrf.mxu1 }
 0x174   :  { %1295 = vst.msk [vmem:[%s2723_s3 + $0x1a8] sm:$0xff] %vm1242_vm1, %v1149_v58  ;;  %v1153_v61 = vadd.f32 %v1152_v47, %v835_v60 }
 0x175   :  { %v837_v63 = vpop.f32.mrf.mxu0  ;;  %v1170_v1 = vpop.f32.mrf.mxu1 }
 0x176   :  { %1296 = vst [vmem:[%s2723_s3 + $0x1b0] sm:$0xff] %v1153_v61  ;;  %v1155_v0 = vadd.f32 %v1154_v50, %v837_v63 }
 0x177   :  { %v841_v2 = vpop.f32.mrf.mxu0  ;;  %v1172_v5 = vpop.f32.mrf.mxu1 }
 0x178   :  { %1297 = vst.msk [vmem:[%s2723_s3 + $0x1b8] sm:$0xff] %vm1242_vm1, %v1155_v0  ;;  %v1159_v4 = vadd.f32 %v1158_v53, %v841_v2 }
 0x179   :  { %v843_v6 = vpop.f32.mrf.mxu0  ;;  %v1176_v8 = vpop.f32.mrf.mxu1 }
 0x17a   :  { %1298 = vst [vmem:[%s2723_s3 + $0x1c0] sm:$0xff] %v1159_v4  ;;  %v1161_v7 = vadd.f32 %v1160_v56, %v843_v6 }
 0x17b   :  { %v847_v9 = vpop.f32.mrf.mxu0  ;;  %v1178_v11 = vpop.f32.mrf.mxu1 }
 0x17c   :  { %1299 = vst.msk [vmem:[%s2723_s3 + $0x1c8] sm:$0xff] %vm1242_vm1, %v1161_v7  ;;  %v1165_v10 = vadd.f32 %v1164_v59, %v847_v9 }
 0x17d   :  { %v849_v12 = vpop.f32.mrf.mxu0  ;;  %v1182_v14 = vpop.f32.mrf.mxu1 }
 0x17e   :  { %1300 = vst [vmem:[%s2723_s3 + $0x1d0] sm:$0xff] %v1165_v10  ;;  %v1167_v13 = vadd.f32 %v1166_v62, %v849_v12 }
 0x17f   :  { %v853_v15 = vpop.f32.mrf.mxu0  ;;  %v1184_v17 = vpop.f32.mrf.mxu1 }
 0x180   :  { %1301 = vst.msk [vmem:[%s2723_s3 + $0x1d8] sm:$0xff] %vm1242_vm1, %v1167_v13  ;;  %v1171_v16 = vadd.f32 %v1170_v1, %v853_v15 }
 0x181   :  { %v855_v18 = vpop.f32.mrf.mxu0  ;;  %v1188_v19 = vpop.f32.mrf.mxu1 }
 0x182   :  { %1302 = vst [vmem:[%s2723_s3 + $0x1e0] sm:$0xff] %v1171_v16  ;;  %v1173_v3 = vadd.f32 %v1172_v5, %v855_v18 }
 0x183   :  { %v859_v20 = vpop.f32.mrf.mxu0  ;;  %v1190_v22 = vpop.f32.mrf.mxu1 }
 0x184   :  { %1303 = vst.msk [vmem:[%s2723_s3 + $0x1e8] sm:$0xff] %vm1242_vm1, %v1173_v3  ;;  %v1177_v21 = vadd.f32 %v1176_v8, %v859_v20 }
 0x185   :  { %v861_v23 = vpop.f32.mrf.mxu0  ;;  %v1194_v25 = vpop.f32.mrf.mxu1 }
 0x186   :  { %1304 = vst [vmem:[%s2723_s3 + $0x1f0] sm:$0xff] %v1177_v21  ;;  %v1179_v24 = vadd.f32 %v1178_v11, %v861_v23 }
 0x187   :  { %v865_v26 = vpop.f32.mrf.mxu0  ;;  %v1196_v28 = vpop.f32.mrf.mxu1 }
 0x188   :  { %1305 = vst.msk [vmem:[%s2723_s3 + $0x1f8] sm:$0xff] %vm1242_vm1, %v1179_v24  ;;  %v1183_v27 = vadd.f32 %v1182_v14, %v865_v26 }
 0x189   :  { %v867_v29 = vpop.f32.mrf.mxu0  ;;  %v1200_v31 = vpop.f32.mrf.mxu1 }
 0x18a   :  { %1306 = vst [vmem:[%s2723_s3 + $0x200] sm:$0xff] %v1183_v27  ;;  %v1185_v30 = vadd.f32 %v1184_v17, %v867_v29 }
 0x18b   :  { %v871_v32 = vpop.f32.mrf.mxu0  ;;  %v1202_v34 = vpop.f32.mrf.mxu1 }
 0x18c   :  { %1307 = vst.msk [vmem:[%s2723_s3 + $0x208] sm:$0xff] %vm1242_vm1, %v1185_v30  ;;  %v1189_v33 = vadd.f32 %v1188_v19, %v871_v32 }
 0x18d   :  { %v873_v35 = vpop.f32.mrf.mxu0  ;;  %v1206_v37 = vpop.f32.mrf.mxu1 }
 0x18e   :  { %1308 = vst [vmem:[%s2723_s3 + $0x210] sm:$0xff] %v1189_v33  ;;  %v1191_v36 = vadd.f32 %v1190_v22, %v873_v35 }
 0x18f   :  { %v877_v38 = vpop.f32.mrf.mxu0  ;;  %v1208_v40 = vpop.f32.mrf.mxu1 }
 0x190   :  { %1309 = vst.msk [vmem:[%s2723_s3 + $0x218] sm:$0xff] %vm1242_vm1, %v1191_v36  ;;  %v1195_v39 = vadd.f32 %v1194_v25, %v877_v38 }
 0x191   :  { %v879_v41 = vpop.f32.mrf.mxu0  ;;  %v1212_v43 = vpop.f32.mrf.mxu1 }
 0x192   :  { %1310 = vst [vmem:[%s2723_s3 + $0x220] sm:$0xff] %v1195_v39  ;;  %v1197_v42 = vadd.f32 %v1196_v28, %v879_v41 }
 0x193   :  { %v883_v44 = vpop.f32.mrf.mxu0  ;;  %v1214_v46 = vpop.f32.mrf.mxu1 }
 0x194   :  { %1311 = vst.msk [vmem:[%s2723_s3 + $0x228] sm:$0xff] %vm1242_vm1, %v1197_v42  ;;  %v1201_v45 = vadd.f32 %v1200_v31, %v883_v44 }
 0x195   :  { %v885_v47 = vpop.f32.mrf.mxu0  ;;  %v1218_v49 = vpop.f32.mrf.mxu1 }
 0x196   :  { %1312 = vst [vmem:[%s2723_s3 + $0x230] sm:$0xff] %v1201_v45  ;;  %v1203_v48 = vadd.f32 %v1202_v34, %v885_v47 }
 0x197   :  { %v889_v50 = vpop.f32.mrf.mxu0  ;;  %v1220_v52 = vpop.f32.mrf.mxu1 }
 0x198   :  { %1313 = vst.msk [vmem:[%s2723_s3 + $0x238] sm:$0xff] %vm1242_vm1, %v1203_v48  ;;  %v1207_v51 = vadd.f32 %v1206_v37, %v889_v50 }
 0x199   :  { %v891_v53 = vpop.f32.mrf.mxu0  ;;  %v1224_v55 = vpop.f32.mrf.mxu1 }
 0x19a   :  { %1314 = vst [vmem:[%s2723_s3 + $0x240] sm:$0xff] %v1207_v51  ;;  %v1209_v54 = vadd.f32 %v1208_v40, %v891_v53 }
 0x19b   :  { %v895_v56 = vpop.f32.mrf.mxu0  ;;  %v1226_v59 = vpop.f32.mrf.mxu1 }
 0x19c   :  { %1315 = vst.msk [vmem:[%s2723_s3 + $0x248] sm:$0xff] %vm1242_vm1, %v1209_v54  ;;  %v1213_v57 = vadd.f32 %v1212_v43, %v895_v56 }
 0x19d   :  { %v897_v58 = vpop.f32.mrf.mxu0  ;;  %v1230_v0 = vpop.f32.mrf.mxu1 }
 0x19e   :  { %1316 = vst [vmem:[%s2723_s3 + $0x250] sm:$0xff] %v1213_v57  ;;  %v1215_v60 = vadd.f32 %v1214_v46, %v897_v58 }
 0x19f   :  { %v901_v61 = vpop.f32.mrf.mxu0  ;;  %v1232_v6 = vpop.f32.mrf.mxu1 }
 0x1a0   :  { %1317 = vst.msk [vmem:[%s2723_s3 + $0x258] sm:$0xff] %vm1242_vm1, %v1215_v60  ;;  %v1219_v62 = vadd.f32 %v1218_v49, %v901_v61 }
 0x1a1   :  { %v903_v63 = vpop.f32.mrf.mxu0  ;;  %v1236_v11 = vpop.f32.mrf.mxu1 }
 0x1a2   :  { %1318 = vst [vmem:[%s2723_s3 + $0x260] sm:$0xff] %v1219_v62  ;;  %v1221_v1 = vadd.f32 %v1220_v52, %v903_v63 }
 0x1a3   :  { %v907_v2 = vpop.f32.mrf.mxu0  ;;  %v1238_v15 = vpop.f32.mrf.mxu1 }
 0x1a4   :  { %1319 = vst.msk [vmem:[%s2723_s3 + $0x268] sm:$0xff] %vm1242_vm1, %v1221_v1  ;;  %v1225_v4 = vadd.f32 %v1224_v55, %v907_v2 }
 0x1a5   :  { %v909_v5 = vpop.f32.mrf.mxu0 }
 0x1a6   :  { %1320 = vst [vmem:[%s2723_s3 + $0x270] sm:$0xff] %v1225_v4  ;;  %v1227_v7 = vadd.f32 %v1226_v59, %v909_v5 }
 0x1a7   :  { %v913_v8 = vpop.f32.mrf.mxu0 }
 0x1a8   :  { %1321 = vst.msk [vmem:[%s2723_s3 + $0x278] sm:$0xff] %vm1242_vm1, %v1227_v7  ;;  %v1231_v9 = vadd.f32 %v1230_v0, %v913_v8 }
 0x1a9   :  { %v915_v10 = vpop.f32.mrf.mxu0 }
 0x1aa   :  { %1322 = vst [vmem:[%s2723_s3 + $0x280] sm:$0xff] %v1231_v9  ;;  %v1233_v12 = vadd.f32 %v1232_v6, %v915_v10 }
 0x1ab   :  { %v919_v13 = vpop.f32.mrf.mxu0 }
 0x1ac   :  { %1323 = vst.msk [vmem:[%s2723_s3 + $0x288] sm:$0xff] %vm1242_vm1, %v1233_v12  ;;  %v1237_v14 = vadd.f32 %v1236_v11, %v919_v13 }
 0x1ad   :  { %v921_v16 = vpop.f32.mrf.mxu0 }
 0x1ae   :  { %1324 = vst [vmem:[%s2723_s3 + $0x290] sm:$0xff] %v1237_v14  ;;  %v1239_v17 = vadd.f32 %v1238_v15, %v921_v16 }
 0x1b0   :  { %1325 = vst.msk [vmem:[%s2723_s3 + $0x298] sm:$0xff] %vm1242_vm1, %v1239_v17 }

</bundles_post_ra>
